<compile_context>
chip_gen: v7x
topology: tpu7x:2x2x1
jax: 0.10.0
libtpu: 0.0.40
codegen_flags: <defaults>
</compile_context>

<pallas_src>
import jax
import jax.numpy as jnp
from jax.experimental import pallas as pl
from jax.experimental.pallas import tpu as pltpu

HIDDEN1 = 64
HIDDEN2 = 32
LANES = 128
TILE_QUANT = 1024   # batch-tile quantum: keeps (tb // 128) a multiple of 8
BLOCK_B = 8192      # max rows DMA'd per grid step (~1 MiB of f32 x)
CHUNK = 1024        # rows per in-kernel compute chunk (keeps temporaries small)


def _round_up(n, m):
    return (n + m - 1) // m * m


def _make_mlp_kernel(tb, d_in):
    chunk = min(CHUNK, tb)
    n_chunks = tb // chunk
    rpc = chunk // LANES          # output-slab rows produced per chunk

    def mlp_kernel(x_ref, w1_ref, w2_ref, tail_ref, o_ref):
        """Fused 3-layer MLP on one batch tile.

        x_ref   : [tb, d_in]        f32   (pipelined per grid step)
        w1_ref  : [d_in, 64]        bf16  (resident)
        w2_ref  : [64, 32]          bf16  (resident)
        tail_ref: [4, 128]          f32   (resident) rows: b1 | b2 | w3^T | b3
        o_ref   : [tb//128, 128]    f32   (lane-dense output slab)
        """
        # Resident small operands, hoisted out of the chunk loop.
        w1 = w1_ref[...]                       # (d_in, 64)
        w2 = w2_ref[...]                       # (64, 32)
        b1 = tail_ref[0:1, 0:HIDDEN1]          # (1, 64)
        b2 = tail_ref[1:2, 0:HIDDEN2]          # (1, 32)
        w3 = tail_ref[2:3, 0:HIDDEN2]          # (1, 32)
        b3 = tail_ref[3:4, 0:1]                # (1, 1)

        # Static (trace-time) chunk loop: every slice offset is a compile-time
        # constant, so all VMEM loads/stores are aligned and unmasked.
        for c in range(n_chunks):
            xc = x_ref[c * chunk:(c + 1) * chunk, :].astype(jnp.bfloat16)

            # Layer 1: Linear(d_in, 64) + ReLU  (MXU bf16, f32 accumulate)
            h1 = jnp.dot(xc, w1, preferred_element_type=jnp.float32)
            h1 = jnp.maximum(h1 + b1, 0.0)

            # Layer 2: Linear(64, 32) + ReLU
            h2 = jnp.dot(h1.astype(jnp.bfloat16), w2,
                         preferred_element_type=jnp.float32)
            h2 = jnp.maximum(h2 + b2, 0.0)

            # Layer 3: Linear(32, 1) as VPU multiply + lane reduce (avoids a
            # 1-column MXU matmul), then relayout to a lane-dense slab so the
            # store is a full-width unmasked vst.
            col = jnp.sum(h2 * w3, axis=-1, keepdims=True) + b3   # (chunk, 1)
            o_ref[c * rpc:(c + 1) * rpc, :] = col.reshape(rpc, LANES)

    return mlp_kernel


@jax.jit
def simple_nn_forward(x, w1, b1, w2, b2, w3, b3):
    B, d_in = x.shape

    # Pack all the small tail parameters into one (4, 128) f32 resident operand.
    tail = jnp.zeros((4, LANES), jnp.float32)
    tail = tail.at[0, :HIDDEN1].set(b1.reshape(-1).astype(jnp.float32))
    tail = tail.at[1, :HIDDEN2].set(b2.reshape(-1).astype(jnp.float32))
    tail = tail.at[2, :HIDDEN2].set(w3.reshape(-1).astype(jnp.float32))
    tail = tail.at[3, 0].set(b3.reshape(-1)[0].astype(jnp.float32))

    # Only the tiny weight matrices are cast host-side; x stays in its native
    # dtype (the in-kernel VPU cast is hidden under the x DMA).
    w1b = w1.astype(jnp.bfloat16)
    w2b = w2.astype(jnp.bfloat16)

    # Batch tile: big enough to amortize per-step pipeline overhead, small
    # enough for v5e's 16 MiB scoped-VMEM default, and >= 2 grid steps when B
    # allows so v7x's two TensorCores both get work.
    tb = max(TILE_QUANT, min(BLOCK_B, _round_up((B + 1) // 2, TILE_QUANT)))

    if B < tb:                                  # tiny batch: pad up to one tile
        x = jnp.pad(x, ((0, tb - B), (0, 0)))
    rows = x.shape[0]
    grid = (pl.cdiv(rows, tb),)
    b_pad = grid[0] * tb                        # ragged last tile handled by
                                                # partial-block reads; junk rows
                                                # are sliced off below.

    kernel = _make_mlp_kernel(tb, d_in)

    out_slab = pl.pallas_call(
        kernel,
        out_shape=jax.ShapeDtypeStruct((b_pad // LANES, LANES), jnp.float32),
        grid_spec=pltpu.PrefetchScalarGridSpec(
            num_scalar_prefetch=0,
            grid=grid,
            in_specs=[
                pl.BlockSpec((tb, d_in), lambda i: (i, 0)),           # x tile
                pl.BlockSpec((d_in, HIDDEN1), lambda i: (0, 0)),      # w1 resident
                pl.BlockSpec((HIDDEN1, HIDDEN2), lambda i: (0, 0)),   # w2 resident
                pl.BlockSpec((4, LANES), lambda i: (0, 0)),           # tail resident
            ],
            out_specs=pl.BlockSpec((tb // LANES, LANES), lambda i: (i, 0)),
        ),
        compiler_params=pltpu.CompilerParams(
            dimension_semantics=("parallel",),  # batch axis -> both TCs on v7x
        ),
        cost_estimate=pl.CostEstimate(
            flops=2 * b_pad * (d_in * HIDDEN1 + HIDDEN1 * HIDDEN2 + HIDDEN2),
            transcendentals=0,
            bytes_accessed=b_pad * d_in * x.dtype.itemsize + b_pad * 4,
        ),
    )(x, w1b, w2b, tail)

    # Lane-dense slab (b_pad//128, 128) -> (B, 1) column.
    return out_slab.reshape(b_pad, 1)[:B]


def init_linear_params(key, fan_in, fan_out):
    """Deterministic init mimicking PyTorch nn.Linear default:
    U(-1/sqrt(fan_in), 1/sqrt(fan_in)) for both weight and bias.
    Weight returned as [fan_in, fan_out] (transposed vs. PyTorch's [out, in])."""
    k_w, k_b = jax.random.split(key)
    bound = 1.0 / jnp.sqrt(float(fan_in))
    w = jax.random.uniform(k_w, (fan_in, fan_out), jnp.float32, -bound, bound)
    b = jax.random.uniform(k_b, (1, fan_out), jnp.float32, -bound, bound)
    return w, b


if __name__ == "__main__":
    INPUT_SIZE = 32
    BATCH = 8

    root = jax.random.PRNGKey(0)
    k_x, k1, k2, k3 = jax.random.split(root, 4)

    x = jax.random.normal(k_x, (BATCH, INPUT_SIZE), jnp.float32)
    w1, b1 = init_linear_params(k1, INPUT_SIZE, HIDDEN1)
    w2, b2 = init_linear_params(k2, HIDDEN1, HIDDEN2)
    w3, b3 = init_linear_params(k3, HIDDEN2, 1)

    out = simple_nn_forward(x, w1, b1, w2, b2, w3, b3)
    out = jax.block_until_ready(out)
    assert out.shape == (BATCH, 1)

    # Reference 1: bf16-matched (same MXU precision as the kernel) — tight check.
    xb, w1b, w2b = (a.astype(jnp.bfloat16) for a in (x, w1, w2))
    h = jnp.maximum(jnp.dot(xb, w1b, preferred_element_type=jnp.float32) + b1, 0.0)
    h = jnp.maximum(
        jnp.dot(h.astype(jnp.bfloat16), w2b, preferred_element_type=jnp.float32) + b2,
        0.0)
    ref_bf16 = jnp.sum(h * w3.reshape(1, -1), axis=-1, keepdims=True) + b3

    # Reference 2: full-f32 module semantics — loose check (bf16 MXU inputs).
    ref_f32 = jnp.maximum(x @ w1 + b1, 0.0)
    ref_f32 = jnp.maximum(ref_f32 @ w2 + b2, 0.0)
    ref_f32 = ref_f32 @ w3 + b3

    assert jnp.allclose(out, ref_bf16, atol=5e-4, rtol=5e-4), "mismatch vs bf16 ref"
    assert jnp.allclose(out, ref_f32, atol=3e-2, rtol=3e-2), "mismatch vs f32 ref"

    print("KERNEL_OK")
</pallas_src>

<mosaic_0001>
module attributes {stable_mosaic.version = 11 : i64} {
  func.func @mlp_kernel(%arg0: i32, %arg1: memref<1024x32xf32, #tpu.memory_space<vmem>>, %arg2: memref<32x64xbf16, #tpu.memory_space<vmem>>, %arg3: memref<64x32xbf16, #tpu.memory_space<vmem>>, %arg4: memref<4x128xf32, #tpu.memory_space<vmem>>, %arg5: memref<8x128xf32, #tpu.memory_space<vmem>>) attributes {dimension_semantics = [#tpu.dimension_semantics<parallel>], iteration_bounds = array<i64: 1>, scalar_prefetch = 0 : i64, scratch_operands = 0 : i64, tpu.core_type = #tpu.core_type<tc>, window_params = [{transform_indices = @transform_0, window_bounds = array<i64: 1024, 32>}, {pipeline_mode = #tpu.pipeline_mode<synchronous>, transform_indices = @transform_1, window_bounds = array<i64: 32, 64>}, {pipeline_mode = #tpu.pipeline_mode<synchronous>, transform_indices = @transform_2, window_bounds = array<i64: 64, 32>}, {pipeline_mode = #tpu.pipeline_mode<synchronous>, transform_indices = @transform_3, window_bounds = array<i64: 4, 128>}, {transform_indices = @transform_4, window_bounds = array<i64: 8, 128>}]} {
    %c0 = arith.constant 0 : index
    %c0_0 = arith.constant 0 : index
    %0 = vector.load %arg2[%c0, %c0_0] : memref<32x64xbf16, #tpu.memory_space<vmem>>, vector<32x64xbf16>
    %c0_1 = arith.constant 0 : index
    %c0_2 = arith.constant 0 : index
    %1 = vector.load %arg3[%c0_1, %c0_2] : memref<64x32xbf16, #tpu.memory_space<vmem>>, vector<64x32xbf16>
    %c0_3 = arith.constant 0 : index
    %c0_4 = arith.constant 0 : index
    %2 = vector.load %arg4[%c0_3, %c0_4] : memref<4x128xf32, #tpu.memory_space<vmem>>, vector<1x64xf32>
    %c1 = arith.constant 1 : index
    %c0_5 = arith.constant 0 : index
    %3 = vector.load %arg4[%c1, %c0_5] : memref<4x128xf32, #tpu.memory_space<vmem>>, vector<1x32xf32>
    %c2 = arith.constant 2 : index
    %c0_6 = arith.constant 0 : index
    %4 = vector.load %arg4[%c2, %c0_6] : memref<4x128xf32, #tpu.memory_space<vmem>>, vector<1x32xf32>
    %c3 = arith.constant 3 : index
    %c0_7 = arith.constant 0 : index
    %5 = vector.load %arg4[%c3, %c0_7] : memref<4x128xf32, #tpu.memory_space<vmem>>, vector<1x1xf32>
    %c0_8 = arith.constant 0 : index
    %c0_9 = arith.constant 0 : index
    %6 = vector.load %arg1[%c0_8, %c0_9] : memref<1024x32xf32, #tpu.memory_space<vmem>>, vector<1024x32xf32>
    %7 = arith.truncf %6 : vector<1024x32xf32> to vector<1024x32xbf16>
    %cst = arith.constant dense<0.000000e+00> : vector<1024x64xf32>
    %8 = tpu.matmul %7, %0, %cst {dimension_numbers = #tpu.dot_dimension_numbers<[1], [0], [0], [1], [0, 0, 1, 1], [], []>} : vector<1024x32xbf16>, vector<32x64xbf16>, vector<1024x64xf32> -> vector<1024x64xf32>
    %9 = vector.broadcast %2 : vector<1x64xf32> to vector<1024x64xf32>
    %10 = arith.addf %8, %9 : vector<1024x64xf32>
    %cst_10 = arith.constant 0.000000e+00 : f32
    %11 = vector.broadcast %cst_10 : f32 to vector<1024x64xf32>
    %12 = arith.maximumf %10, %11 : vector<1024x64xf32>
    %13 = arith.truncf %12 : vector<1024x64xf32> to vector<1024x64xbf16>
    %cst_11 = arith.constant dense<0.000000e+00> : vector<1024x32xf32>
    %14 = tpu.matmul %13, %1, %cst_11 {dimension_numbers = #tpu.dot_dimension_numbers<[1], [0], [0], [1], [0, 0, 1, 1], [], []>} : vector<1024x64xbf16>, vector<64x32xbf16>, vector<1024x32xf32> -> vector<1024x32xf32>
    %15 = vector.broadcast %3 : vector<1x32xf32> to vector<1024x32xf32>
    %16 = arith.addf %14, %15 : vector<1024x32xf32>
    %cst_12 = arith.constant 0.000000e+00 : f32
    %17 = vector.broadcast %cst_12 : f32 to vector<1024x32xf32>
    %18 = arith.maximumf %16, %17 : vector<1024x32xf32>
    %19 = vector.broadcast %4 : vector<1x32xf32> to vector<1024x32xf32>
    %20 = arith.mulf %18, %19 : vector<1024x32xf32>
    %cst_13 = arith.constant dense<0.000000e+00> : vector<1024xf32>
    %21 = vector.multi_reduction <add>, %20, %cst_13 [1] : vector<1024x32xf32> to vector<1024xf32>
    %22 = vector.shape_cast %21 : vector<1024xf32> to vector<1024x1xf32>
    %23 = vector.broadcast %5 : vector<1x1xf32> to vector<1024x1xf32>
    %24 = arith.addf %22, %23 : vector<1024x1xf32>
    %25 = vector.shape_cast %24 : vector<1024x1xf32> to vector<8x128xf32>
    %c0_14 = arith.constant 0 : index
    %c0_15 = arith.constant 0 : index
    %26 = vector.load %arg5[%c0_14, %c0_15] : memref<8x128xf32, #tpu.memory_space<vmem>>, vector<8x128xf32>
    tpu.vector_store %arg5[%c0_14, %c0_15], %25 {strides = array<i32>} : memref<8x128xf32, #tpu.memory_space<vmem>>, vector<8x128xf32>,
    return
  }
  func.func @transform_0(%arg0: i32) -> (i32, i32) {
    %c0_i32 = arith.constant 0 : i32
    %c0_i32_0 = arith.constant 0 : i32
    return %arg0, %c0_i32 : i32, i32
  }
  func.func @transform_1(%arg0: i32) -> (i32, i32) {
    %c0_i32 = arith.constant 0 : i32
    %c0_i32_0 = arith.constant 0 : i32
    %c0_i32_1 = arith.constant 0 : i32
    return %c0_i32, %c0_i32_0 : i32, i32
  }
  func.func @transform_2(%arg0: i32) -> (i32, i32) {
    %c0_i32 = arith.constant 0 : i32
    %c0_i32_0 = arith.constant 0 : i32
    %c0_i32_1 = arith.constant 0 : i32
    return %c0_i32, %c0_i32_0 : i32, i32
  }
  func.func @transform_3(%arg0: i32) -> (i32, i32) {
    %c0_i32 = arith.constant 0 : i32
    %c0_i32_0 = arith.constant 0 : i32
    %c0_i32_1 = arith.constant 0 : i32
    return %c0_i32, %c0_i32_0 : i32, i32
  }
  func.func @transform_4(%arg0: i32) -> (i32, i32) {
    %c0_i32 = arith.constant 0 : i32
    %c0_i32_0 = arith.constant 0 : i32
    return %arg0, %c0_i32 : i32, i32
  }
}

</mosaic_0001>

<bundles_post_ra>
// kernel: simple_nn_forward.1
= control target key start
LH: loop header
LB: loop body
LE: loop exit
PB: predicated region body
PF: predicated region fallthrough
CT: control target
= control target key end

     0   :  { %vm242_vm0 = vcmask 261120   ;;  %vm1200_vm1 = vcmask 523264   ;;  %vm3237_vm2 = vcmask 130112   ;;  %vm3244_vm3 = vcmask 195712   ;;  %s6613_s1 = inlined_call_operand.vmem [shape: bf16[32,64], index: 1, kind: input, shape index: {}]   ;;  %s6614_s0 = inlined_call_operand.vmem [shape: f32[1024,32], index: 0, kind: input, shape index: {}]   ;;  %s6615_s2 = inlined_call_operand.vmem [shape: bf16[64,32], index: 2, kind: input, shape index: {}]   ;;  %s6616_s3 = inlined_call_operand.vmem [shape: f32[4,128], index: 3, kind: input, shape index: {}]   ;;  %s6617_s4 = inlined_call_operand.vmem [shape: f32[8,128], index: 4, kind: output, shape index: {}]  }
   0x1   :  { %v4453_v0 = vld [vmem:[%s6613_s1] sm:$0xff]   ;;  %v4454_v1 = vld [vmem:[%s6613_s1 + $0x8] sm:$0xff]   ;;  %v36_v5 = vld [vmem:[%s6614_s0 + $0x10] sm:$0xff]  ;;  %vm3251_vm4 = vcmask 261312   ;;  %vm3258_vm5 = vcmask 326912   ;;  %vm3265_vm6 = vcmask 392512  }
   0x2   :  { %4182 = vmatprep.subr.bf16.mxu0 %v4453_v0  ;;  %v34_v2 = vld [vmem:[%s6614_s0] sm:$0xff]  ;;  %v35_v3 = vld [vmem:[%s6614_s0 + $0x8] sm:$0xff]  ;;  %v37_v6 = vld [vmem:[%s6614_s0 + $0x18] sm:$0xff]  ;;  %vm3272_vm7 = vcmask 458112   ;;  %vm3279_vm8 = vcmask 523712   ;;  %vm3286_vm9 = vcmask 589312  }
   0x3   :  { %4183 = vmatpush3.bf16.msra.mxu0 %v4453_v0  ;;  %v162_v4 = vpack.c.bf16 %v35_v3, %v34_v2  ;;  %v38_v7 = vld [vmem:[%s6614_s0 + $0x20] sm:$0xff]  ;;  %v39_v8 = vld [vmem:[%s6614_s0 + $0x28] sm:$0xff]  ;;  %v163_v9 = vpack.c.bf16 %v37_v6, %v36_v5  ;;  %v40_v11 = vld [vmem:[%s6614_s0 + $0x30] sm:$0xff]  ;;  %vm3293_vm10 = vcmask 654912   ;;  %vm6623_vm11 = vcmask 720512  }
   0x4   :  { %4184 = vmatprep.subr.bf16.mxu0 %v4454_v1  ;;  %v164_v10 = vpack.c.bf16 %v39_v8, %v38_v7  ;;  %v41_v12 = vld [vmem:[%s6614_s0 + $0x38] sm:$0xff]  ;;  %v42_v13 = vld [vmem:[%s6614_s0 + $0x40] sm:$0xff]  ;;  %v43_v14 = vld [vmem:[%s6614_s0 + $0x48] sm:$0xff]  ;;  %vm6622_vm12 = vcmask 786112   ;;  %vm3314_vm13 = vcmask 851712   ;;  %vm3321_vm14 = vcmask 917312  }
   0x5   :  { %4186 = vmatprep.mubr.msk.bf16.mxu0 %vm242_vm0, %v162_v4  ;;  %v165_v15 = vpack.c.bf16 %v41_v12, %v40_v11  ;;  %v166_v16 = vpack.c.bf16 %v43_v14, %v42_v13  ;;  %v44_v17 = vld [vmem:[%s6614_s0 + $0x50] sm:$0xff]  ;;  %v45_v18 = vld [vmem:[%s6614_s0 + $0x58] sm:$0xff]  ;;  %v46_v19 = vld [vmem:[%s6614_s0 + $0x60] sm:$0xff]  ;;  %vm3328_vm15 = vcmask 982912  }
   0x6   :  { %v47_v20 = vld [vmem:[%s6614_s0 + $0x68] sm:$0xff]  ;;  %v167_v21 = vpack.c.bf16 %v45_v18, %v44_v17  ;;  %v48_v23 = vld [vmem:[%s6614_s0 + $0x70] sm:$0xff]  ;;  %v49_v24 = vld [vmem:[%s6614_s0 + $0x78] sm:$0xff] }
   0x7   :  { %4185 = vmatpush3.bf16.msra.mxu0 %v4454_v1  ;;  %v168_v22 = vpack.c.bf16 %v47_v20, %v46_v19  ;;  %v50_v25 = vld [vmem:[%s6614_s0 + $0x80] sm:$0xff]  ;;  %v51_v26 = vld [vmem:[%s6614_s0 + $0x88] sm:$0xff]  ;;  %v169_v27 = vpack.c.bf16 %v49_v24, %v48_v23  ;;  %v52_v29 = vld [vmem:[%s6614_s0 + $0x90] sm:$0xff] }
   0x8   :  { %v170_v28 = vpack.c.bf16 %v51_v26, %v50_v25  ;;  %v53_v30 = vld [vmem:[%s6614_s0 + $0x98] sm:$0xff]  ;;  %v4455_v31 = vld [vmem:[%s6615_s2] sm:$0xff]   ;;  %v55_v33 = vld [vmem:[%s6614_s0 + $0xa8] sm:$0xff] }
   0x9   :  { %v54_v32 = vld [vmem:[%s6614_s0 + $0xa0] sm:$0xff]  ;;  %4314 = vmatprep.subr.bf16.mxu1 %v4455_v31  ;;  %v171_v34 = vpack.c.bf16 %v53_v30, %v52_v29  ;;  %v4456_v36 = vld [vmem:[%s6615_s2 + $0x8] sm:$0xff]   ;;  %v56_v37 = vld [vmem:[%s6614_s0 + $0xb0] sm:$0xff] }
   0xa   :  { %4187 = vmatmul.mubr.msk.bf16.vlgmr.msra.gmra.mrb[0].mxu0 %vm242_vm0, %v163_v9  ;;  %4315 = vmatpush3.bf16.msra.mxu1 %v4455_v31  ;;  %v172_v35 = vpack.c.bf16 %v55_v33, %v54_v32  ;;  %v57_v38 = vld [vmem:[%s6614_s0 + $0xb8] sm:$0xff]  ;;  %v58_v39 = vld [vmem:[%s6614_s0 + $0xc0] sm:$0xff]  ;;  %v59_v40 = vld [vmem:[%s6614_s0 + $0xc8] sm:$0xff] }
   0xb   :  { %4190 = vmatprep.mubr.msk.bf16.mxu0 %vm242_vm0, %v164_v10  ;;  %4316 = vmatprep.subr.bf16.mxu1 %v4456_v36  ;;  %v173_v41 = vpack.c.bf16 %v57_v38, %v56_v37  ;;  %v174_v42 = vpack.c.bf16 %v59_v40, %v58_v39  ;;  %v60_v43 = vld [vmem:[%s6614_s0 + $0xd0] sm:$0xff]  ;;  %v61_v44 = vld [vmem:[%s6614_s0 + $0xd8] sm:$0xff]  ;;  %v62_v45 = vld [vmem:[%s6614_s0 + $0xe0] sm:$0xff] }
   0xc   :  { %v63_v46 = vld [vmem:[%s6614_s0 + $0xe8] sm:$0xff]  ;;  %v175_v47 = vpack.c.bf16 %v61_v44, %v60_v43  ;;  %v64_v49 = vld [vmem:[%s6614_s0 + $0xf0] sm:$0xff]  ;;  %v65_v50 = vld [vmem:[%s6614_s0 + $0xf8] sm:$0xff] }
   0xd   :  { %v176_v48 = vpack.c.bf16 %v63_v46, %v62_v45  ;;  %v66_v51 = vld [vmem:[%s6614_s0 + $0x100] sm:$0xff]  ;;  %v67_v52 = vld [vmem:[%s6614_s0 + $0x108] sm:$0xff]  ;;  %v177_v53 = vpack.c.bf16 %v65_v50, %v64_v49  ;;  %v68_v55 = vld [vmem:[%s6614_s0 + $0x110] sm:$0xff] }
   0xe   :  { %4317 = vmatpush3.bf16.msra.mxu1 %v4456_v36  ;;  %v178_v54 = vpack.c.bf16 %v67_v52, %v66_v51  ;;  %v69_v56 = vld [vmem:[%s6614_s0 + $0x118] sm:$0xff]  ;;  %v70_v57 = vld [vmem:[%s6614_s0 + $0x120] sm:$0xff]  ;;  %v71_v58 = vld [vmem:[%s6614_s0 + $0x128] sm:$0xff] }
   0xf   :  { %v179_v59 = vpack.c.bf16 %v69_v56, %v68_v55  ;;  %v180_v60 = vpack.c.bf16 %v71_v58, %v70_v57  ;;  %v72_v61 = vld [vmem:[%s6614_s0 + $0x130] sm:$0xff]  ;;  %v73_v62 = vld [vmem:[%s6614_s0 + $0x138] sm:$0xff]  ;;  %v74_v63 = vld [vmem:[%s6614_s0 + $0x140] sm:$0xff] }
  0x10   :  { %v75_v0 = vld [vmem:[%s6614_s0 + $0x148] sm:$0xff]  ;;  %v181_v1 = vpack.c.bf16 %v73_v62, %v72_v61  ;;  %v76_v3 = vld [vmem:[%s6614_s0 + $0x150] sm:$0xff]  ;;  %v77_v4 = vld [vmem:[%s6614_s0 + $0x158] sm:$0xff] }
  0x11   :  { %v182_v2 = vpack.c.bf16 %v75_v0, %v74_v63  ;;  %v78_v5 = vld [vmem:[%s6614_s0 + $0x160] sm:$0xff]  ;;  %v79_v6 = vld [vmem:[%s6614_s0 + $0x168] sm:$0xff]  ;;  %v183_v7 = vpack.c.bf16 %v77_v4, %v76_v3  ;;  %v80_v9 = vld [vmem:[%s6614_s0 + $0x170] sm:$0xff] }
  0x12   :  { %4191 = vmatmul.mubr.msk.bf16.gmra.mrb[4].mxu0 %vm242_vm0, %v165_v15  ;;  %v184_v8 = vpack.c.bf16 %v79_v6, %v78_v5  ;;  %v81_v10 = vld [vmem:[%s6614_s0 + $0x178] sm:$0xff]  ;;  %v82_v11 = vld [vmem:[%s6614_s0 + $0x180] sm:$0xff]  ;;  %v83_v12 = vld [vmem:[%s6614_s0 + $0x188] sm:$0xff] }
  0x13   :  { %4194 = vmatprep.mubr.msk.bf16.mxu0 %vm242_vm0, %v166_v16  ;;  %v185_v13 = vpack.c.bf16 %v81_v10, %v80_v9  ;;  %v4457_v14 = vld [vmem:[%s6615_s2 + $0x10] sm:$0xff]   ;;  %v186_v15 = vpack.c.bf16 %v83_v12, %v82_v11  ;;  %v4458_v16 = vld [vmem:[%s6615_s2 + $0x18] sm:$0xff]   ;;  %v86_v19 = vld [vmem:[%s6614_s0 + $0x1a0] sm:$0xff] }
  0x14   :  { %4318 = vmatprep.subr.bf16.mxu1 %v4457_v14  ;;  %v84_v17 = vld [vmem:[%s6614_s0 + $0x190] sm:$0xff]  ;;  %v85_v18 = vld [vmem:[%s6614_s0 + $0x198] sm:$0xff]  ;;  %v87_v20 = vld [vmem:[%s6614_s0 + $0x1a8] sm:$0xff] }
  0x15   :  { %4319 = vmatpush3.bf16.msra.mxu1 %v4457_v14  ;;  %v88_v23 = vld [vmem:[%s6614_s0 + $0x1b0] sm:$0xff]  ;;  %v89_v24 = vld [vmem:[%s6614_s0 + $0x1b8] sm:$0xff]  ;;  %v90_v25 = vld [vmem:[%s6614_s0 + $0x1c0] sm:$0xff] }
  0x16   :  { %4320 = vmatprep.subr.bf16.mxu1 %v4458_v16  ;;  %v91_v26 = vld [vmem:[%s6614_s0 + $0x1c8] sm:$0xff]  ;;  %v92_v29 = vld [vmem:[%s6614_s0 + $0x1d0] sm:$0xff]  ;;  %v93_v30 = vld [vmem:[%s6614_s0 + $0x1d8] sm:$0xff] }
  0x17   :  { %v94_v31 = vld [vmem:[%s6614_s0 + $0x1e0] sm:$0xff]  ;;  %v95_v32 = vld [vmem:[%s6614_s0 + $0x1e8] sm:$0xff]  ;;  %v191_v33 = vpack.c.bf16 %v93_v30, %v92_v29  ;;  %v97_v36 = vld [vmem:[%s6614_s0 + $0x1f8] sm:$0xff] }
  0x18   :  { %v98_v37 = vld [vmem:[%s6614_s0 + $0x200] sm:$0xff]  ;;  %v99_v38 = vld [vmem:[%s6614_s0 + $0x208] sm:$0xff]  ;;  %v125_v14 = vld [vmem:[%s6614_s0 + $0x2d8] sm:$0xff] }
  0x19   :  { %4321 = vmatpush3.bf16.msra.mxu1 %v4458_v16  ;;  %v194_v40 = vpack.c.bf16 %v99_v38, %v98_v37  ;;  %v102_v43 = vld [vmem:[%s6614_s0 + $0x220] sm:$0xff]  ;;  %v103_v44 = vld [vmem:[%s6614_s0 + $0x228] sm:$0xff] }
  0x1a   :  { %4195 = vmatmul.mubr.msk.bf16.gmra.mrb[8].mxu0 %vm242_vm0, %v167_v21  ;;  %v187_v21 = vpack.c.bf16 %v85_v18, %v84_v17  ;;  %v196_v46 = vpack.c.bf16 %v103_v44, %v102_v43  ;;  %v106_v49 = vld [vmem:[%s6614_s0 + $0x240] sm:$0xff]  ;;  %v107_v50 = vld [vmem:[%s6614_s0 + $0x248] sm:$0xff] }
  0x1b   :  { %4198 = vmatprep.mubr.msk.bf16.mxu0 %vm242_vm0, %v168_v22  ;;  %v188_v22 = vpack.c.bf16 %v87_v20, %v86_v19  ;;  %v198_v52 = vpack.c.bf16 %v107_v50, %v106_v49  ;;  %v110_v55 = vld [vmem:[%s6614_s0 + $0x260] sm:$0xff]  ;;  %v111_v56 = vld [vmem:[%s6614_s0 + $0x268] sm:$0xff] }
  0x1c   :  { %v200_v58 = vpack.c.bf16 %v111_v56, %v110_v55  ;;  %v114_v61 = vld [vmem:[%s6614_s0 + $0x280] sm:$0xff]  ;;  %v115_v62 = vld [vmem:[%s6614_s0 + $0x288] sm:$0xff] }
  0x1d   :  { %v202_v0 = vpack.c.bf16 %v115_v62, %v114_v61  ;;  %v118_v3 = vld [vmem:[%s6614_s0 + $0x2a0] sm:$0xff]  ;;  %v119_v4 = vld [vmem:[%s6614_s0 + $0x2a8] sm:$0xff] }
  0x1e   :  { %v204_v6 = vpack.c.bf16 %v119_v4, %v118_v3  ;;  %v122_v10 = vld [vmem:[%s6614_s0 + $0x2c0] sm:$0xff]  ;;  %v123_v11 = vld [vmem:[%s6614_s0 + $0x2c8] sm:$0xff]  ;;  %v128_v4 = vld [vmem:[%s6614_s0 + $0x2f0] sm:$0xff] }
  0x1f   :  { %v206_v12 = vpack.c.bf16 %v123_v11, %v122_v10  ;;  %v4836_v16 = vld [vmem:[%s6616_s3] ss:$0 sm:$0xff]  ;;  %v127_v3 = vld [vmem:[%s6614_s0 + $0x2e8] sm:$0xff] }
  0x22   :  { %4199 = vmatmul.mubr.msk.bf16.gmra.mrb[12].mxu0 %vm242_vm0, %v169_v27  ;;  %v189_v27 = vpack.c.bf16 %v89_v24, %v88_v23 }
  0x23   :  { %4202 = vmatprep.mubr.msk.bf16.mxu0 %vm242_vm0, %v170_v28  ;;  %v190_v28 = vpack.c.bf16 %v91_v26, %v90_v25 }
  0x2a   :  { %4203 = vmatmul.mubr.msk.bf16.gmra.mrb[16].mxu0 %vm242_vm0, %v171_v34  ;;  %v192_v34 = vpack.c.bf16 %v95_v32, %v94_v31 }
  0x2b   :  { %4206 = vmatprep.mubr.msk.bf16.mxu0 %vm242_vm0, %v172_v35  ;;  %v96_v35 = vld [vmem:[%s6614_s0 + $0x1f0] sm:$0xff] }
  0x2c   :  { %v193_v39 = vpack.c.bf16 %v97_v36, %v96_v35 }
  0x32   :  { %4207 = vmatmul.mubr.msk.bf16.gmra.mrb[20].mxu0 %vm242_vm0, %v173_v41  ;;  %v100_v41 = vld [vmem:[%s6614_s0 + $0x210] sm:$0xff] }
  0x33   :  { %4210 = vmatprep.mubr.msk.bf16.mxu0 %vm242_vm0, %v174_v42  ;;  %v101_v42 = vld [vmem:[%s6614_s0 + $0x218] sm:$0xff] }
  0x34   :  { %v195_v45 = vpack.c.bf16 %v101_v42, %v100_v41 }
  0x3a   :  { %4211 = vmatmul.mubr.msk.bf16.gmra.mrb[24].mxu0 %vm242_vm0, %v175_v47  ;;  %v104_v47 = vld [vmem:[%s6614_s0 + $0x230] sm:$0xff] }
  0x3b   :  { %4214 = vmatprep.mubr.msk.bf16.mxu0 %vm242_vm0, %v176_v48  ;;  %v105_v48 = vld [vmem:[%s6614_s0 + $0x238] sm:$0xff] }
  0x3c   :  { %v197_v51 = vpack.c.bf16 %v105_v48, %v104_v47 }
  0x42   :  { %4215 = vmatmul.mubr.msk.bf16.gmra.mrb[28].mxu0 %vm242_vm0, %v177_v53  ;;  %v108_v53 = vld [vmem:[%s6614_s0 + $0x250] sm:$0xff] }
  0x43   :  { %4218 = vmatprep.mubr.msk.bf16.mxu0 %vm242_vm0, %v178_v54  ;;  %v109_v54 = vld [vmem:[%s6614_s0 + $0x258] sm:$0xff] }
  0x44   :  { %v199_v57 = vpack.c.bf16 %v109_v54, %v108_v53 }
  0x4a   :  { %4219 = vmatmul.mubr.msk.bf16.gmra.mrb[32].mxu0 %vm242_vm0, %v179_v59  ;;  %v112_v59 = vld [vmem:[%s6614_s0 + $0x270] sm:$0xff] }
  0x4b   :  { %4222 = vmatprep.mubr.msk.bf16.mxu0 %vm242_vm0, %v180_v60  ;;  %v113_v60 = vld [vmem:[%s6614_s0 + $0x278] sm:$0xff] }
  0x4c   :  { %v201_v63 = vpack.c.bf16 %v113_v60, %v112_v59 }
  0x52   :  { %4223 = vmatmul.mubr.msk.bf16.gmra.mrb[36].mxu0 %vm242_vm0, %v181_v1  ;;  %v116_v1 = vld [vmem:[%s6614_s0 + $0x290] sm:$0xff] }
  0x53   :  { %4226 = vmatprep.mubr.msk.bf16.mxu0 %vm242_vm0, %v182_v2  ;;  %v117_v2 = vld [vmem:[%s6614_s0 + $0x298] sm:$0xff] }
  0x54   :  { %v203_v5 = vpack.c.bf16 %v117_v2, %v116_v1  ;;  %v126_v2 = vld [vmem:[%s6614_s0 + $0x2e0] sm:$0xff] }
  0x5a   :  { %4227 = vmatmul.mubr.msk.bf16.gmra.mrb[40].mxu0 %vm242_vm0, %v183_v7  ;;  %v120_v7 = vld [vmem:[%s6614_s0 + $0x2b0] sm:$0xff] }
  0x5b   :  { %4230 = vmatprep.mubr.msk.bf16.mxu0 %vm242_vm0, %v184_v8  ;;  %v121_v8 = vld [vmem:[%s6614_s0 + $0x2b8] sm:$0xff] }
  0x5c   :  { %v205_v9 = vpack.c.bf16 %v121_v8, %v120_v7  ;;  %v129_v7 = vld [vmem:[%s6614_s0 + $0x2f8] sm:$0xff] }
  0x5d   :  { %v209_v10 = vpack.c.bf16 %v129_v7, %v128_v4 }
  0x62   :  { %4231 = vmatmul.mubr.msk.bf16.gmra.mrb[44].mxu0 %vm242_vm0, %v185_v13  ;;  %v124_v13 = vld [vmem:[%s6614_s0 + $0x2d0] sm:$0xff] }
  0x63   :  { %4234 = vmatprep.mubr.msk.bf16.mxu0 %vm242_vm0, %v186_v15  ;;  %v207_v15 = vpack.c.bf16 %v125_v14, %v124_v13 }
  0x6a   :  { %4235 = vmatmul.mubr.msk.bf16.gmra.mrb[48].mxu0 %vm242_vm0, %v187_v21 }
  0x6b   :  { %4238 = vmatprep.mubr.msk.bf16.mxu0 %vm242_vm0, %v188_v22 }
  0x72   :  { %4239 = vmatmul.mubr.msk.bf16.gmra.mrb[52].mxu0 %vm242_vm0, %v189_v27 }
  0x73   :  { %4242 = vmatprep.mubr.msk.bf16.mxu0 %vm242_vm0, %v190_v28 }
  0x7a   :  { %4243 = vmatmul.mubr.msk.bf16.gmra.mrb[56].mxu0 %vm242_vm0, %v191_v33 }
  0x7b   :  { %4246 = vmatprep.mubr.msk.bf16.mxu0 %vm242_vm0, %v192_v34 }
  0x82   :  { %4247 = vmatmul.mubr.msk.bf16.gmra.mrb[60].mxu0 %vm242_vm0, %v193_v39 }
  0x83   :  { %4250 = vmatprep.mubr.msk.bf16.mxu0 %vm242_vm0, %v194_v40 }
  0x8a   :  { %4251 = vmatmul.mubr.msk.bf16.gmra.mrb[64].mxu0 %vm242_vm0, %v195_v45 }
  0x8b   :  { %4254 = vmatprep.mubr.msk.bf16.mxu0 %vm242_vm0, %v196_v46 }
  0x92   :  { %4255 = vmatmul.mubr.msk.bf16.gmra.mrb[68].mxu0 %vm242_vm0, %v197_v51 }
  0x93   :  { %4258 = vmatprep.mubr.msk.bf16.mxu0 %vm242_vm0, %v198_v52 }
  0x9a   :  { %4259 = vmatmul.mubr.msk.bf16.gmra.mrb[72].mxu0 %vm242_vm0, %v199_v57 }
  0x9b   :  { %4262 = vmatprep.mubr.msk.bf16.mxu0 %vm242_vm0, %v200_v58 }
  0xa2   :  { %4263 = vmatmul.mubr.msk.bf16.gmra.mrb[76].mxu0 %vm242_vm0, %v201_v63 }
  0xa3   :  { %4266 = vmatprep.mubr.msk.bf16.mxu0 %vm242_vm0, %v202_v0 }
  0xaa   :  { %4267 = vmatmul.mubr.msk.bf16.gmra.mrb[80].mxu0 %vm242_vm0, %v203_v5 }
  0xab   :  { %4270 = vmatprep.mubr.msk.bf16.mxu0 %vm242_vm0, %v204_v6  ;;  %v208_v6 = vpack.c.bf16 %v127_v3, %v126_v2 }
  0xb2   :  { %4271 = vmatmul.mubr.msk.bf16.gmra.mrb[84].mxu0 %vm242_vm0, %v205_v9 }
  0xb3   :  { %4274 = vmatprep.mubr.msk.bf16.mxu0 %vm242_vm0, %v206_v12 }
  0xba   :  { %4275 = vmatmul.mubr.msk.bf16.gmra.mrb[88].mxu0 %vm242_vm0, %v207_v15 }
  0xbb   :  { %4278 = vmatprep.mubr.msk.bf16.mxu0 %vm242_vm0, %v208_v6 }
  0xc2   :  { %4279 = vmatmul.mubr.msk.bf16.gmra.mrb[92].mxu0 %vm242_vm0, %v209_v10 }
  0xdd   :  { %v4188_v17 = vpop.f32.mrb[0].mxu0 }
  0xde   :  { %v478_v18 = vadd.f32 %v4188_v17, %v4836_v16  ;;  %v469_v19 = vpop.f32.mrb[1].mxu0 }
  0xdf   :  { %v470_v20 = vadd.f32 %v4836_v16, %v469_v19  ;;  %v4189_v21 = vpop.f32.mrb[2].mxu0 }
  0xe0   :  { %v481_v22 = vadd.f32 %v4189_v21, %v4836_v16  ;;  %v472_v23 = vpop.f32.mrb[3].mxu0  ;;  %v982_v25 = vmax.f32 %v478_v18, 0.0 }
  0xe1   :  { %v473_v24 = vadd.f32 %v4836_v16, %v472_v23  ;;  %v980_v27 = vmax.f32 %v470_v20, 0.0 }
  0xe2   :  { %v983_v26 = vmax.f32 %v481_v22, 0.0 }
  0xe3   :  { %v981_v28 = vmax.f32 %v473_v24, 0.0 }
  0xe4   :  { %v1109_v29 = vpack.c.bf16 %v983_v26, %v982_v25 }
  0xe5   :  { %v4192_v30 = vpop.f32.mrb[4].mxu0  ;;  %v1108_v31 = vpack.c.bf16 %v981_v28, %v980_v27 }
  0xe6   :  { %v494_v32 = vadd.f32 %v4192_v30, %v4836_v16  ;;  %v485_v33 = vpop.f32.mrb[5].mxu0 }
  0xe7   :  { %v486_v34 = vadd.f32 %v4836_v16, %v485_v33  ;;  %v4193_v35 = vpop.f32.mrb[6].mxu0  ;;  %4322 = vmatprep.mubr.msk.bf16.mxu1 %vm1200_vm1, %v1108_v31 }
  0xe8   :  { %v497_v36 = vadd.f32 %v4193_v35, %v4836_v16  ;;  %v488_v37 = vpop.f32.mrb[7].mxu0  ;;  %4323 = vmatmul.mubr.msk.bf16.vlgmr.msra.gmra.mrb[0].mxu1 %vm1200_vm1, %v1109_v29  ;;  %v986_v39 = vmax.f32 %v494_v32, 0.0 }
  0xe9   :  { %v489_v38 = vadd.f32 %v4836_v16, %v488_v37  ;;  %v984_v41 = vmax.f32 %v486_v34, 0.0 }
  0xea   :  { %v987_v40 = vmax.f32 %v497_v36, 0.0 }
  0xeb   :  { %v985_v42 = vmax.f32 %v489_v38, 0.0 }
  0xec   :  { %v1111_v43 = vpack.c.bf16 %v987_v40, %v986_v39 }
  0xed   :  { %v1110_v44 = vpack.c.bf16 %v985_v42, %v984_v41  ;;  %v4196_v45 = vpop.f32.mrb[8].mxu0 }
  0xee   :  { %v510_v46 = vadd.f32 %v4196_v45, %v4836_v16  ;;  %v501_v47 = vpop.f32.mrb[9].mxu0 }
  0xef   :  { %v502_v48 = vadd.f32 %v4836_v16, %v501_v47  ;;  %v4197_v49 = vpop.f32.mrb[10].mxu0  ;;  %4326 = vmatprep.mubr.msk.bf16.mxu1 %vm1200_vm1, %v1110_v44 }
  0xf0   :  { %v513_v50 = vadd.f32 %v4197_v49, %v4836_v16  ;;  %v504_v51 = vpop.f32.mrb[11].mxu0  ;;  %4327 = vmatmul.mubr.msk.bf16.gmra.mrb[4].mxu1 %vm1200_vm1, %v1111_v43  ;;  %v990_v53 = vmax.f32 %v510_v46, 0.0 }
  0xf1   :  { %v505_v52 = vadd.f32 %v4836_v16, %v504_v51  ;;  %v988_v55 = vmax.f32 %v502_v48, 0.0 }
  0xf2   :  { %v991_v54 = vmax.f32 %v513_v50, 0.0 }
  0xf3   :  { %v989_v56 = vmax.f32 %v505_v52, 0.0 }
  0xf4   :  { %v1113_v57 = vpack.c.bf16 %v991_v54, %v990_v53 }
  0xf5   :  { %v1112_v58 = vpack.c.bf16 %v989_v56, %v988_v55  ;;  %v4200_v59 = vpop.f32.mrb[12].mxu0 }
  0xf6   :  { %v526_v60 = vadd.f32 %v4200_v59, %v4836_v16  ;;  %v517_v61 = vpop.f32.mrb[13].mxu0 }
  0xf7   :  { %v518_v62 = vadd.f32 %v4836_v16, %v517_v61  ;;  %v4201_v63 = vpop.f32.mrb[14].mxu0  ;;  %4330 = vmatprep.mubr.msk.bf16.mxu1 %vm1200_vm1, %v1112_v58 }
  0xf8   :  { %v529_v0 = vadd.f32 %v4201_v63, %v4836_v16  ;;  %v520_v1 = vpop.f32.mrb[15].mxu0  ;;  %4331 = vmatmul.mubr.msk.bf16.gmra.mrb[8].mxu1 %vm1200_vm1, %v1113_v57  ;;  %v994_v8 = vmax.f32 %v526_v60, 0.0 }
  0xf9   :  { %v521_v5 = vadd.f32 %v4836_v16, %v520_v1  ;;  %v992_v11 = vmax.f32 %v518_v62, 0.0 }
  0xfa   :  { %v995_v9 = vmax.f32 %v529_v0, 0.0 }
  0xfb   :  { %v993_v12 = vmax.f32 %v521_v5, 0.0 }
  0xfc   :  { %v1115_v13 = vpack.c.bf16 %v995_v9, %v994_v8 }
  0xfd   :  { %v1114_v14 = vpack.c.bf16 %v993_v12, %v992_v11  ;;  %v4204_v15 = vpop.f32.mrb[16].mxu0 }
  0xfe   :  { %v542_v17 = vadd.f32 %v4204_v15, %v4836_v16  ;;  %v533_v18 = vpop.f32.mrb[17].mxu0 }
  0xff   :  { %v534_v19 = vadd.f32 %v4836_v16, %v533_v18  ;;  %v4205_v20 = vpop.f32.mrb[18].mxu0  ;;  %4334 = vmatprep.mubr.msk.bf16.mxu1 %vm1200_vm1, %v1114_v14 }
 0x100   :  { %v545_v21 = vadd.f32 %v4205_v20, %v4836_v16  ;;  %v536_v22 = vpop.f32.mrb[19].mxu0  ;;  %4335 = vmatmul.mubr.msk.bf16.gmra.mrb[12].mxu1 %vm1200_vm1, %v1115_v13  ;;  %v998_v24 = vmax.f32 %v542_v17, 0.0 }
 0x101   :  { %v537_v23 = vadd.f32 %v4836_v16, %v536_v22  ;;  %v996_v26 = vmax.f32 %v534_v19, 0.0 }
 0x102   :  { %v999_v25 = vmax.f32 %v545_v21, 0.0 }
 0x103   :  { %v997_v27 = vmax.f32 %v537_v23, 0.0 }
 0x104   :  { %v1117_v28 = vpack.c.bf16 %v999_v25, %v998_v24 }
 0x105   :  { %v1116_v29 = vpack.c.bf16 %v997_v27, %v996_v26  ;;  %v4208_v30 = vpop.f32.mrb[20].mxu0 }
 0x106   :  { %v558_v31 = vadd.f32 %v4208_v30, %v4836_v16  ;;  %v549_v32 = vpop.f32.mrb[21].mxu0 }
 0x107   :  { %v550_v33 = vadd.f32 %v4836_v16, %v549_v32  ;;  %v4209_v34 = vpop.f32.mrb[22].mxu0  ;;  %4338 = vmatprep.mubr.msk.bf16.mxu1 %vm1200_vm1, %v1116_v29 }
 0x108   :  { %v561_v35 = vadd.f32 %v4209_v34, %v4836_v16  ;;  %v552_v36 = vpop.f32.mrb[23].mxu0  ;;  %4339 = vmatmul.mubr.msk.bf16.gmra.mrb[16].mxu1 %vm1200_vm1, %v1117_v28  ;;  %v1002_v38 = vmax.f32 %v558_v31, 0.0 }
 0x109   :  { %v553_v37 = vadd.f32 %v4836_v16, %v552_v36  ;;  %v1000_v40 = vmax.f32 %v550_v33, 0.0 }
 0x10a   :  { %v1003_v39 = vmax.f32 %v561_v35, 0.0 }
 0x10b   :  { %v1001_v41 = vmax.f32 %v553_v37, 0.0 }
 0x10c   :  { %v1119_v42 = vpack.c.bf16 %v1003_v39, %v1002_v38 }
 0x10d   :  { %v1118_v43 = vpack.c.bf16 %v1001_v41, %v1000_v40  ;;  %v4212_v44 = vpop.f32.mrb[24].mxu0 }
 0x10e   :  { %v574_v45 = vadd.f32 %v4212_v44, %v4836_v16  ;;  %v565_v46 = vpop.f32.mrb[25].mxu0 }
 0x10f   :  { %v566_v47 = vadd.f32 %v4836_v16, %v565_v46  ;;  %v4213_v48 = vpop.f32.mrb[26].mxu0  ;;  %4342 = vmatprep.mubr.msk.bf16.mxu1 %vm1200_vm1, %v1118_v43 }
 0x110   :  { %v577_v49 = vadd.f32 %v4213_v48, %v4836_v16  ;;  %v568_v50 = vpop.f32.mrb[27].mxu0  ;;  %4343 = vmatmul.mubr.msk.bf16.gmra.mrb[20].mxu1 %vm1200_vm1, %v1119_v42  ;;  %v1006_v52 = vmax.f32 %v574_v45, 0.0 }
 0x111   :  { %v569_v51 = vadd.f32 %v4836_v16, %v568_v50  ;;  %v1004_v54 = vmax.f32 %v566_v47, 0.0 }
 0x112   :  { %v1007_v53 = vmax.f32 %v577_v49, 0.0 }
 0x113   :  { %v1005_v55 = vmax.f32 %v569_v51, 0.0 }
 0x114   :  { %v1121_v56 = vpack.c.bf16 %v1007_v53, %v1006_v52 }
 0x115   :  { %v1120_v57 = vpack.c.bf16 %v1005_v55, %v1004_v54  ;;  %v4216_v58 = vpop.f32.mrb[28].mxu0 }
 0x116   :  { %v590_v59 = vadd.f32 %v4216_v58, %v4836_v16  ;;  %v581_v60 = vpop.f32.mrb[29].mxu0 }
 0x117   :  { %v582_v61 = vadd.f32 %v4836_v16, %v581_v60  ;;  %v4217_v62 = vpop.f32.mrb[30].mxu0  ;;  %4346 = vmatprep.mubr.msk.bf16.mxu1 %vm1200_vm1, %v1120_v57 }
 0x118   :  { %v593_v63 = vadd.f32 %v4217_v62, %v4836_v16  ;;  %v584_v0 = vpop.f32.mrb[31].mxu0  ;;  %4347 = vmatmul.mubr.msk.bf16.gmra.mrb[24].mxu1 %vm1200_vm1, %v1121_v56  ;;  %v1010_v2 = vmax.f32 %v590_v59, 0.0 }
 0x119   :  { %v585_v1 = vadd.f32 %v4836_v16, %v584_v0  ;;  %v1008_v4 = vmax.f32 %v582_v61, 0.0 }
 0x11a   :  { %v1011_v3 = vmax.f32 %v593_v63, 0.0 }
 0x11b   :  { %v1009_v5 = vmax.f32 %v585_v1, 0.0 }
 0x11c   :  { %v1123_v6 = vpack.c.bf16 %v1011_v3, %v1010_v2 }
 0x11d   :  { %v1122_v7 = vpack.c.bf16 %v1009_v5, %v1008_v4  ;;  %v4220_v8 = vpop.f32.mrb[32].mxu0 }
 0x11e   :  { %v606_v9 = vadd.f32 %v4220_v8, %v4836_v16  ;;  %v597_v10 = vpop.f32.mrb[33].mxu0 }
 0x11f   :  { %v598_v11 = vadd.f32 %v4836_v16, %v597_v10  ;;  %v4221_v12 = vpop.f32.mrb[34].mxu0  ;;  %4350 = vmatprep.mubr.msk.bf16.mxu1 %vm1200_vm1, %v1122_v7 }
 0x120   :  { %v609_v13 = vadd.f32 %v4221_v12, %v4836_v16  ;;  %v600_v14 = vpop.f32.mrb[35].mxu0  ;;  %4351 = vmatmul.mubr.msk.bf16.gmra.mrb[28].mxu1 %vm1200_vm1, %v1123_v6  ;;  %v1014_v17 = vmax.f32 %v606_v9, 0.0 }
 0x121   :  { %v601_v15 = vadd.f32 %v4836_v16, %v600_v14  ;;  %v1012_v19 = vmax.f32 %v598_v11, 0.0 }
 0x122   :  { %v1015_v18 = vmax.f32 %v609_v13, 0.0 }
 0x123   :  { %v1013_v20 = vmax.f32 %v601_v15, 0.0 }
 0x124   :  { %v1125_v21 = vpack.c.bf16 %v1015_v18, %v1014_v17 }
 0x125   :  { %v1124_v22 = vpack.c.bf16 %v1013_v20, %v1012_v19  ;;  %v4224_v23 = vpop.f32.mrb[36].mxu0 }
 0x126   :  { %v622_v24 = vadd.f32 %v4224_v23, %v4836_v16  ;;  %v613_v25 = vpop.f32.mrb[37].mxu0 }
 0x127   :  { %v614_v26 = vadd.f32 %v4836_v16, %v613_v25  ;;  %v4225_v27 = vpop.f32.mrb[38].mxu0  ;;  %4354 = vmatprep.mubr.msk.bf16.mxu1 %vm1200_vm1, %v1124_v22 }
 0x128   :  { %v625_v28 = vadd.f32 %v4225_v27, %v4836_v16  ;;  %v616_v29 = vpop.f32.mrb[39].mxu0  ;;  %4355 = vmatmul.mubr.msk.bf16.gmra.mrb[32].mxu1 %vm1200_vm1, %v1125_v21  ;;  %v1018_v31 = vmax.f32 %v622_v24, 0.0 }
 0x129   :  { %v617_v30 = vadd.f32 %v4836_v16, %v616_v29  ;;  %v1016_v33 = vmax.f32 %v614_v26, 0.0  ;;  %v130_v29 = vld [vmem:[%s6614_s0 + $0x300] sm:$0xff] }
 0x12a   :  { %v1019_v32 = vmax.f32 %v625_v28, 0.0 }
 0x12b   :  { %v1017_v34 = vmax.f32 %v617_v30, 0.0  ;;  %v131_v30 = vld [vmem:[%s6614_s0 + $0x308] sm:$0xff] }
 0x12c   :  { %v1127_v35 = vpack.c.bf16 %v1019_v32, %v1018_v31 }
 0x12d   :  { %v1126_v36 = vpack.c.bf16 %v1017_v34, %v1016_v33  ;;  %v4228_v37 = vpop.f32.mrb[40].mxu0  ;;  %v210_v33 = vpack.c.bf16 %v131_v30, %v130_v29  ;;  %v132_v34 = vld [vmem:[%s6614_s0 + $0x310] sm:$0xff] }
 0x12e   :  { %v638_v38 = vadd.f32 %v4228_v37, %v4836_v16  ;;  %v629_v39 = vpop.f32.mrb[41].mxu0 }
 0x12f   :  { %v630_v40 = vadd.f32 %v4836_v16, %v629_v39  ;;  %v4229_v41 = vpop.f32.mrb[42].mxu0  ;;  %4358 = vmatprep.mubr.msk.bf16.mxu1 %vm1200_vm1, %v1126_v36  ;;  %4282 = vmatprep.mubr.msk.bf16.mxu0 %vm242_vm0, %v210_v33 }
 0x130   :  { %v641_v42 = vadd.f32 %v4229_v41, %v4836_v16  ;;  %v632_v43 = vpop.f32.mrb[43].mxu0  ;;  %4359 = vmatmul.mubr.msk.bf16.gmra.mrb[36].mxu1 %vm1200_vm1, %v1127_v35  ;;  %v1022_v45 = vmax.f32 %v638_v38, 0.0  ;;  %v133_v35 = vld [vmem:[%s6614_s0 + $0x318] sm:$0xff] }
 0x131   :  { %v633_v44 = vadd.f32 %v4836_v16, %v632_v43  ;;  %v1020_v47 = vmax.f32 %v630_v40, 0.0  ;;  %v211_v38 = vpack.c.bf16 %v133_v35, %v132_v34 }
 0x132   :  { %v1023_v46 = vmax.f32 %v641_v42, 0.0 }
 0x133   :  { %v1021_v48 = vmax.f32 %v633_v44, 0.0  ;;  %4283 = vmatmul.mubr.msk.bf16.gmra.mrb[96].mxu0 %vm242_vm0, %v211_v38 }
 0x134   :  { %v1129_v49 = vpack.c.bf16 %v1023_v46, %v1022_v45 }
 0x135   :  { %v1128_v50 = vpack.c.bf16 %v1021_v48, %v1020_v47  ;;  %v4232_v51 = vpop.f32.mrb[44].mxu0 }
 0x136   :  { %v654_v52 = vadd.f32 %v4232_v51, %v4836_v16  ;;  %v645_v53 = vpop.f32.mrb[45].mxu0 }
 0x137   :  { %v646_v54 = vadd.f32 %v4836_v16, %v645_v53  ;;  %v4233_v55 = vpop.f32.mrb[46].mxu0  ;;  %4362 = vmatprep.mubr.msk.bf16.mxu1 %vm1200_vm1, %v1128_v50 }
 0x138   :  { %v657_v56 = vadd.f32 %v4233_v55, %v4836_v16  ;;  %v648_v57 = vpop.f32.mrb[47].mxu0  ;;  %4363 = vmatmul.mubr.msk.bf16.gmra.mrb[40].mxu1 %vm1200_vm1, %v1129_v49  ;;  %v1026_v59 = vmax.f32 %v654_v52, 0.0 }
 0x139   :  { %v649_v58 = vadd.f32 %v4836_v16, %v648_v57  ;;  %v1024_v61 = vmax.f32 %v646_v54, 0.0 }
 0x13a   :  { %v1027_v60 = vmax.f32 %v657_v56, 0.0 }
 0x13b   :  { %v1025_v62 = vmax.f32 %v649_v58, 0.0 }
 0x13c   :  { %v1131_v63 = vpack.c.bf16 %v1027_v60, %v1026_v59 }
 0x13d   :  { %v1130_v0 = vpack.c.bf16 %v1025_v62, %v1024_v61  ;;  %v4236_v1 = vpop.f32.mrb[48].mxu0 }
 0x13e   :  { %v670_v2 = vadd.f32 %v4236_v1, %v4836_v16  ;;  %v661_v3 = vpop.f32.mrb[49].mxu0 }
 0x13f   :  { %v662_v4 = vadd.f32 %v4836_v16, %v661_v3  ;;  %v4237_v5 = vpop.f32.mrb[50].mxu0  ;;  %4366 = vmatprep.mubr.msk.bf16.mxu1 %vm1200_vm1, %v1130_v0 }
 0x140   :  { %v673_v6 = vadd.f32 %v4237_v5, %v4836_v16  ;;  %v664_v7 = vpop.f32.mrb[51].mxu0  ;;  %4367 = vmatmul.mubr.msk.bf16.gmra.mrb[44].mxu1 %vm1200_vm1, %v1131_v63  ;;  %v1030_v9 = vmax.f32 %v670_v2, 0.0 }
 0x141   :  { %v665_v8 = vadd.f32 %v4836_v16, %v664_v7  ;;  %v1028_v11 = vmax.f32 %v662_v4, 0.0 }
 0x142   :  { %v1031_v10 = vmax.f32 %v673_v6, 0.0 }
 0x143   :  { %v1029_v12 = vmax.f32 %v665_v8, 0.0 }
 0x144   :  { %v1133_v13 = vpack.c.bf16 %v1031_v10, %v1030_v9 }
 0x145   :  { %v1132_v14 = vpack.c.bf16 %v1029_v12, %v1028_v11  ;;  %v4240_v15 = vpop.f32.mrb[52].mxu0 }
 0x146   :  { %v686_v17 = vadd.f32 %v4240_v15, %v4836_v16  ;;  %v677_v18 = vpop.f32.mrb[53].mxu0 }
 0x147   :  { %v678_v19 = vadd.f32 %v4836_v16, %v677_v18  ;;  %v4241_v20 = vpop.f32.mrb[54].mxu0  ;;  %4370 = vmatprep.mubr.msk.bf16.mxu1 %vm1200_vm1, %v1132_v14 }
 0x148   :  { %v689_v21 = vadd.f32 %v4241_v20, %v4836_v16  ;;  %v680_v22 = vpop.f32.mrb[55].mxu0  ;;  %4371 = vmatmul.mubr.msk.bf16.gmra.mrb[48].mxu1 %vm1200_vm1, %v1133_v13  ;;  %v1034_v24 = vmax.f32 %v686_v17, 0.0 }
 0x149   :  { %v681_v23 = vadd.f32 %v4836_v16, %v680_v22  ;;  %v1032_v26 = vmax.f32 %v678_v19, 0.0 }
 0x14a   :  { %v1035_v25 = vmax.f32 %v689_v21, 0.0 }
 0x14b   :  { %v1033_v27 = vmax.f32 %v681_v23, 0.0 }
 0x14c   :  { %v1135_v28 = vpack.c.bf16 %v1035_v25, %v1034_v24 }
 0x14d   :  { %v1134_v31 = vpack.c.bf16 %v1033_v27, %v1032_v26  ;;  %v4244_v32 = vpop.f32.mrb[56].mxu0 }
 0x14e   :  { %v702_v36 = vadd.f32 %v4244_v32, %v4836_v16  ;;  %v693_v37 = vpop.f32.mrb[57].mxu0 }
 0x14f   :  { %v694_v39 = vadd.f32 %v4836_v16, %v693_v37  ;;  %v4245_v40 = vpop.f32.mrb[58].mxu0  ;;  %4374 = vmatprep.mubr.msk.bf16.mxu1 %vm1200_vm1, %v1134_v31 }
 0x150   :  { %v705_v41 = vadd.f32 %v4245_v40, %v4836_v16  ;;  %v696_v42 = vpop.f32.mrb[59].mxu0  ;;  %4375 = vmatmul.mubr.msk.bf16.gmra.mrb[52].mxu1 %vm1200_vm1, %v1135_v28  ;;  %v1038_v44 = vmax.f32 %v702_v36, 0.0 }
 0x151   :  { %v697_v43 = vadd.f32 %v4836_v16, %v696_v42  ;;  %v1036_v46 = vmax.f32 %v694_v39, 0.0 }
 0x152   :  { %v1039_v45 = vmax.f32 %v705_v41, 0.0 }
 0x153   :  { %v1037_v47 = vmax.f32 %v697_v43, 0.0 }
 0x154   :  { %v1137_v48 = vpack.c.bf16 %v1039_v45, %v1038_v44 }
 0x155   :  { %v1136_v49 = vpack.c.bf16 %v1037_v47, %v1036_v46  ;;  %v4248_v50 = vpop.f32.mrb[60].mxu0 }
 0x156   :  { %v718_v51 = vadd.f32 %v4248_v50, %v4836_v16  ;;  %v709_v52 = vpop.f32.mrb[61].mxu0 }
 0x157   :  { %v710_v53 = vadd.f32 %v4836_v16, %v709_v52  ;;  %v4249_v54 = vpop.f32.mrb[62].mxu0  ;;  %4378 = vmatprep.mubr.msk.bf16.mxu1 %vm1200_vm1, %v1136_v49 }
 0x158   :  { %v721_v55 = vadd.f32 %v4249_v54, %v4836_v16  ;;  %v712_v56 = vpop.f32.mrb[63].mxu0  ;;  %4379 = vmatmul.mubr.msk.bf16.gmra.mrb[56].mxu1 %vm1200_vm1, %v1137_v48  ;;  %v1042_v58 = vmax.f32 %v718_v51, 0.0 }
 0x159   :  { %v713_v57 = vadd.f32 %v4836_v16, %v712_v56  ;;  %v1040_v60 = vmax.f32 %v710_v53, 0.0 }
 0x15a   :  { %v1043_v59 = vmax.f32 %v721_v55, 0.0 }
 0x15b   :  { %v1041_v61 = vmax.f32 %v713_v57, 0.0 }
 0x15c   :  { %v1139_v62 = vpack.c.bf16 %v1043_v59, %v1042_v58 }
 0x15d   :  { %v1138_v63 = vpack.c.bf16 %v1041_v61, %v1040_v60  ;;  %v4252_v0 = vpop.f32.mrb[64].mxu0 }
 0x15e   :  { %v734_v1 = vadd.f32 %v4252_v0, %v4836_v16  ;;  %v725_v2 = vpop.f32.mrb[65].mxu0 }
 0x15f   :  { %v726_v3 = vadd.f32 %v4836_v16, %v725_v2  ;;  %v4253_v4 = vpop.f32.mrb[66].mxu0  ;;  %4382 = vmatprep.mubr.msk.bf16.mxu1 %vm1200_vm1, %v1138_v63 }
 0x160   :  { %v737_v5 = vadd.f32 %v4253_v4, %v4836_v16  ;;  %v728_v6 = vpop.f32.mrb[67].mxu0  ;;  %4383 = vmatmul.mubr.msk.bf16.gmra.mrb[60].mxu1 %vm1200_vm1, %v1139_v62  ;;  %v1046_v8 = vmax.f32 %v734_v1, 0.0 }
 0x161   :  { %v729_v7 = vadd.f32 %v4836_v16, %v728_v6  ;;  %v1044_v10 = vmax.f32 %v726_v3, 0.0 }
 0x162   :  { %v1047_v9 = vmax.f32 %v737_v5, 0.0 }
 0x163   :  { %v1045_v11 = vmax.f32 %v729_v7, 0.0 }
 0x164   :  { %v1141_v12 = vpack.c.bf16 %v1047_v9, %v1046_v8 }
 0x165   :  { %v1140_v13 = vpack.c.bf16 %v1045_v11, %v1044_v10  ;;  %v4256_v14 = vpop.f32.mrb[68].mxu0 }
 0x166   :  { %v750_v15 = vadd.f32 %v4256_v14, %v4836_v16  ;;  %v741_v17 = vpop.f32.mrb[69].mxu0 }
 0x167   :  { %v742_v18 = vadd.f32 %v4836_v16, %v741_v17  ;;  %v4257_v19 = vpop.f32.mrb[70].mxu0  ;;  %4386 = vmatprep.mubr.msk.bf16.mxu1 %vm1200_vm1, %v1140_v13 }
 0x168   :  { %v753_v20 = vadd.f32 %v4257_v19, %v4836_v16  ;;  %v744_v21 = vpop.f32.mrb[71].mxu0  ;;  %4387 = vmatmul.mubr.msk.bf16.gmra.mrb[64].mxu1 %vm1200_vm1, %v1141_v12  ;;  %v1050_v23 = vmax.f32 %v750_v15, 0.0  ;;  %v135_v19 = vld [vmem:[%s6614_s0 + $0x328] sm:$0xff] }
 0x169   :  { %v745_v22 = vadd.f32 %v4836_v16, %v744_v21  ;;  %v1048_v25 = vmax.f32 %v742_v18, 0.0  ;;  %v134_v18 = vld [vmem:[%s6614_s0 + $0x320] sm:$0xff] }
 0x16a   :  { %v1051_v24 = vmax.f32 %v753_v20, 0.0  ;;  %v212_v21 = vpack.c.bf16 %v135_v19, %v134_v18 }
 0x16b   :  { %v1049_v26 = vmax.f32 %v745_v22, 0.0  ;;  %v136_v22 = vld [vmem:[%s6614_s0 + $0x330] sm:$0xff] }
 0x16c   :  { %v1143_v27 = vpack.c.bf16 %v1051_v24, %v1050_v23  ;;  %v137_v23 = vld [vmem:[%s6614_s0 + $0x338] sm:$0xff]  ;;  %4286 = vmatprep.mubr.msk.bf16.mxu0 %vm242_vm0, %v212_v21 }
 0x16d   :  { %v1142_v28 = vpack.c.bf16 %v1049_v26, %v1048_v25  ;;  %v4260_v29 = vpop.f32.mrb[72].mxu0  ;;  %v213_v25 = vpack.c.bf16 %v137_v23, %v136_v22 }
 0x16e   :  { %v766_v30 = vadd.f32 %v4260_v29, %v4836_v16  ;;  %v757_v31 = vpop.f32.mrb[73].mxu0 }
 0x16f   :  { %v758_v32 = vadd.f32 %v4836_v16, %v757_v31  ;;  %4390 = vmatprep.mubr.msk.bf16.mxu1 %vm1200_vm1, %v1142_v28  ;;  %v4261_v33 = vpop.f32.mrb[74].mxu0  ;;  %4287 = vmatmul.mubr.msk.bf16.gmra.mrb[100].mxu0 %vm242_vm0, %v213_v25 }
 0x170   :  { %v1054_v34 = vmax.f32 %v766_v30, 0.0  ;;  %v769_v35 = vadd.f32 %v4261_v33, %v4836_v16  ;;  %4391 = vmatmul.mubr.msk.bf16.gmra.mrb[68].mxu1 %vm1200_vm1, %v1143_v27  ;;  %v760_v36 = vpop.f32.mrb[75].mxu0 }
 0x171   :  { %v1052_v37 = vmax.f32 %v758_v32, 0.0  ;;  %v761_v38 = vadd.f32 %v4836_v16, %v760_v36 }
 0x172   :  { %v1055_v39 = vmax.f32 %v769_v35, 0.0 }
 0x173   :  { %v1053_v40 = vmax.f32 %v761_v38, 0.0 }
 0x174   :  { %v1145_v41 = vpack.c.bf16 %v1055_v39, %v1054_v34 }
 0x175   :  { %v1144_v42 = vpack.c.bf16 %v1053_v40, %v1052_v37  ;;  %v4264_v43 = vpop.f32.mrb[76].mxu0 }
 0x176   :  { %v782_v44 = vadd.f32 %v4264_v43, %v4836_v16  ;;  %v773_v45 = vpop.f32.mrb[77].mxu0 }
 0x177   :  { %4394 = vmatprep.mubr.msk.bf16.mxu1 %vm1200_vm1, %v1144_v42  ;;  %v774_v46 = vadd.f32 %v4836_v16, %v773_v45  ;;  %v4265_v47 = vpop.f32.mrb[78].mxu0  ;;  %v5021_v42 = vld [vmem:[%s6616_s3 + $0x1] ss:$0 sm:$0xff] }
 0x178   :  { %4395 = vmatmul.mubr.msk.bf16.gmra.mrb[72].mxu1 %vm1200_vm1, %v1145_v41  ;;  %v1058_v48 = vmax.f32 %v782_v44, 0.0  ;;  %v785_v49 = vadd.f32 %v4265_v47, %v4836_v16  ;;  %v776_v50 = vpop.f32.mrb[79].mxu0  ;;  %v5028_v47 = vld [vmem:[%s6616_s3 + $0x2] ss:$0 sm:$0xff] }
 0x179   :  { %v1056_v51 = vmax.f32 %v774_v46, 0.0  ;;  %v777_v52 = vadd.f32 %v4836_v16, %v776_v50 }
 0x17a   :  { %v1059_v53 = vmax.f32 %v785_v49, 0.0 }
 0x17b   :  { %v1057_v54 = vmax.f32 %v777_v52, 0.0 }
 0x17c   :  { %v1147_v55 = vpack.c.bf16 %v1059_v53, %v1058_v48 }
 0x17d   :  { %v1146_v56 = vpack.c.bf16 %v1057_v54, %v1056_v51  ;;  %v4268_v57 = vpop.f32.mrb[80].mxu0 }
 0x17e   :  { %v798_v58 = vadd.f32 %v4268_v57, %v4836_v16  ;;  %v789_v59 = vpop.f32.mrb[81].mxu0 }
 0x17f   :  { %v790_v60 = vadd.f32 %v4836_v16, %v789_v59  ;;  %v4269_v61 = vpop.f32.mrb[82].mxu0  ;;  %4398 = vmatprep.mubr.msk.bf16.mxu1 %vm1200_vm1, %v1146_v56 }
 0x180   :  { %v1062_v62 = vmax.f32 %v798_v58, 0.0  ;;  %v801_v63 = vadd.f32 %v4269_v61, %v4836_v16  ;;  %v792_v0 = vpop.f32.mrb[83].mxu0  ;;  %4399 = vmatmul.mubr.msk.bf16.gmra.mrb[76].mxu1 %vm1200_vm1, %v1147_v55 }
 0x181   :  { %v1060_v1 = vmax.f32 %v790_v60, 0.0  ;;  %v793_v2 = vadd.f32 %v4836_v16, %v792_v0 }
 0x182   :  { %v1063_v3 = vmax.f32 %v801_v63, 0.0 }
 0x183   :  { %v1061_v4 = vmax.f32 %v793_v2, 0.0 }
 0x184   :  { %v1149_v5 = vpack.c.bf16 %v1063_v3, %v1062_v62 }
 0x185   :  { %v1148_v6 = vpack.c.bf16 %v1061_v4, %v1060_v1  ;;  %v4272_v7 = vpop.f32.mrb[84].mxu0 }
 0x186   :  { %v814_v8 = vadd.f32 %v4272_v7, %v4836_v16  ;;  %v805_v9 = vpop.f32.mrb[85].mxu0  ;;  %v139_v7 = vld [vmem:[%s6614_s0 + $0x348] sm:$0xff] }
 0x187   :  { %4402 = vmatprep.mubr.msk.bf16.mxu1 %vm1200_vm1, %v1148_v6  ;;  %v806_v10 = vadd.f32 %v4836_v16, %v805_v9  ;;  %v4273_v11 = vpop.f32.mrb[86].mxu0  ;;  %v138_v6 = vld [vmem:[%s6614_s0 + $0x340] sm:$0xff] }
 0x188   :  { %4403 = vmatmul.mubr.msk.bf16.gmra.mrb[80].mxu1 %vm1200_vm1, %v1149_v5  ;;  %v1066_v12 = vmax.f32 %v814_v8, 0.0  ;;  %v817_v13 = vadd.f32 %v4273_v11, %v4836_v16  ;;  %v808_v14 = vpop.f32.mrb[87].mxu0  ;;  %v214_v11 = vpack.c.bf16 %v139_v7, %v138_v6 }
 0x189   :  { %v1064_v15 = vmax.f32 %v806_v10, 0.0  ;;  %v809_v17 = vadd.f32 %v4836_v16, %v808_v14 }
 0x18a   :  { %v1067_v20 = vmax.f32 %v817_v13, 0.0  ;;  %v141_v13 = vld [vmem:[%s6614_s0 + $0x358] sm:$0xff]  ;;  %4290 = vmatprep.mubr.msk.bf16.mxu0 %vm242_vm0, %v214_v11 }
 0x18b   :  { %v1065_v24 = vmax.f32 %v809_v17, 0.0 }
 0x18c   :  { %v1151_v26 = vpack.c.bf16 %v1067_v20, %v1066_v12  ;;  %v140_v12 = vld [vmem:[%s6614_s0 + $0x350] sm:$0xff] }
 0x18d   :  { %v1150_v27 = vpack.c.bf16 %v1065_v24, %v1064_v15  ;;  %v4276_v28 = vpop.f32.mrb[88].mxu0  ;;  %v215_v17 = vpack.c.bf16 %v141_v13, %v140_v12 }
 0x18e   :  { %v830_v29 = vadd.f32 %v4276_v28, %v4836_v16  ;;  %v821_v30 = vpop.f32.mrb[89].mxu0 }
 0x18f   :  { %4406 = vmatprep.mubr.msk.bf16.mxu1 %vm1200_vm1, %v1150_v27  ;;  %v822_v31 = vadd.f32 %v4836_v16, %v821_v30  ;;  %v4277_v32 = vpop.f32.mrb[90].mxu0  ;;  %4291 = vmatmul.mubr.msk.bf16.gmra.mrb[104].mxu0 %vm242_vm0, %v215_v17 }
 0x190   :  { %4407 = vmatmul.mubr.msk.bf16.gmra.mrb[84].mxu1 %vm1200_vm1, %v1151_v26  ;;  %v1070_v33 = vmax.f32 %v830_v29, 0.0  ;;  %v833_v34 = vadd.f32 %v4277_v32, %v4836_v16  ;;  %v824_v35 = vpop.f32.mrb[91].mxu0 }
 0x191   :  { %v1068_v36 = vmax.f32 %v822_v31, 0.0  ;;  %v825_v37 = vadd.f32 %v4836_v16, %v824_v35 }
 0x192   :  { %v1071_v38 = vmax.f32 %v833_v34, 0.0 }
 0x193   :  { %v1069_v39 = vmax.f32 %v825_v37, 0.0 }
 0x194   :  { %v1153_v40 = vpack.c.bf16 %v1071_v38, %v1070_v33 }
 0x195   :  { %v1152_v41 = vpack.c.bf16 %v1069_v39, %v1068_v36 }
 0x197   :  { %4410 = vmatprep.mubr.msk.bf16.mxu1 %vm1200_vm1, %v1152_v41 }
 0x198   :  { %4411 = vmatmul.mubr.msk.bf16.gmra.mrb[88].mxu1 %vm1200_vm1, %v1153_v40 }
 0x1bb   :  { %v4324_v43 = vpop.f32.mrb[0].mxu1 }
 0x1bc   :  { %v1436_v44 = vadd.f32 %v4324_v43, %v5021_v42  ;;  %v1427_v45 = vpop.f32.mrb[1].mxu1 }
 0x1bd   :  { %v1428_v46 = vadd.f32 %v5021_v42, %v1427_v45  ;;  %v4325_v16 = vpop.f32.mrb[2].mxu1 }
 0x1be   :  { %v1940_v48 = vmax.f32 %v1436_v44, 0.0  ;;  %v1439_v49 = vadd.f32 %v4325_v16, %v5021_v42  ;;  %v1430_v50 = vpop.f32.mrb[3].mxu1 }
 0x1bf   :  { %v1938_v51 = vmax.f32 %v1428_v46, 0.0  ;;  %v1431_v52 = vadd.f32 %v5021_v42, %v1430_v50 }
 0x1c0   :  { %v1941_v53 = vmax.f32 %v1439_v49, 0.0  ;;  %v2072_v54 = vmul.f32 %v5028_v47, %v1940_v48 }
 0x1c1   :  { %v1939_v55 = vmax.f32 %v1431_v52, 0.0  ;;  %v2070_v56 = vmul.f32 %v5028_v47, %v1938_v51 }
 0x1c2   :  { %v2204_v57 = vsel %vm242_vm0, %v2072_v54, 0.0  ;;  %v2073_v58 = vmul.f32 %v5028_v47, %v1941_v53 }
 0x1c3   :  { %2205 = vadd.xlane.f32.xlu1 %v2204_v57  ;;  %v4328_v59 = vpop.f32.mrb[4].mxu1  ;;  %v2198_v60 = vsel %vm242_vm0, %v2070_v56, 0.0  ;;  %v2071_v61 = vmul.f32 %v5028_v47, %v1939_v55 }
 0x1c4   :  { %v1452_v62 = vadd.f32 %v4328_v59, %v5021_v42  ;;  %v1443_v63 = vpop.f32.mrb[5].mxu1  ;;  %2199 = vadd.xlane.f32.xlu0 %v2198_v60  ;;  %v2207_v5 = vsel %vm242_vm0, %v2073_v58, 0.0 }
 0x1c5   :  { %v1444_v0 = vadd.f32 %v5021_v42, %v1443_v63  ;;  %v4329_v1 = vpop.f32.mrb[6].mxu1  ;;  %v2201_v10 = vsel %vm242_vm0, %v2071_v61, 0.0 }
 0x1c6   :  { %v1944_v2 = vmax.f32 %v1452_v62, 0.0  ;;  %v1455_v3 = vadd.f32 %v4329_v1, %v5021_v42  ;;  %v1446_v4 = vpop.f32.mrb[7].mxu1 }
 0x1c7   :  { %v1942_v8 = vmax.f32 %v1444_v0, 0.0  ;;  %v1447_v9 = vadd.f32 %v5021_v42, %v1446_v4  ;;  %2208 = vadd.xlane.f32.xlu1 %v2207_v5 }
 0x1c8   :  { %v1945_v14 = vmax.f32 %v1455_v3, 0.0  ;;  %2202 = vadd.xlane.f32.xlu0 %v2201_v10  ;;  %v2076_v15 = vmul.f32 %v5028_v47, %v1944_v2 }
 0x1c9   :  { %v1943_v18 = vmax.f32 %v1447_v9, 0.0  ;;  %v2074_v22 = vmul.f32 %v5028_v47, %v1942_v8 }
 0x1ca   :  { %v2216_v19 = vsel %vm242_vm0, %v2076_v15, 0.0  ;;  %v2077_v20 = vmul.f32 %v5028_v47, %v1945_v14  ;;  %v4467_v15 = vmov 0  }
 0x1cb   :  { %v4332_v21 = vpop.f32.mrb[8].mxu1  ;;  %v2075_v26 = vmul.f32 %v5028_v47, %v1943_v18  ;;  %v2210_v34 = vsel %vm242_vm0, %v2074_v22, 0.0  ;;  %4451 = vset.pattern.permute.xlu1 %v4467_v15  ;;  %4452 = vset.pattern.permute.xlu0 %v4467_v15 }
 0x1cc   :  { %v1468_v23 = vadd.f32 %v4332_v21, %v5021_v42  ;;  %v1459_v24 = vpop.f32.mrb[9].mxu1  ;;  %2217 = vadd.xlane.f32.xlu0 %v2216_v19  ;;  %v2219_v25 = vsel %vm242_vm0, %v2077_v20, 0.0 }
 0x1cd   :  { %v1460_v27 = vadd.f32 %v5021_v42, %v1459_v24  ;;  %2220 = vadd.xlane.f32.xlu1 %v2219_v25  ;;  %v4333_v28 = vpop.f32.mrb[10].mxu1  ;;  %v2213_v36 = vsel %vm242_vm0, %v2075_v26, 0.0 }
 0x1ce   :  { %v1948_v29 = vmax.f32 %v1468_v23, 0.0  ;;  %v1471_v30 = vadd.f32 %v4333_v28, %v5021_v42  ;;  %v1462_v31 = vpop.f32.mrb[11].mxu1 }
 0x1cf   :  { %v1946_v32 = vmax.f32 %v1460_v27, 0.0  ;;  %v1463_v33 = vadd.f32 %v5021_v42, %v1462_v31  ;;  %v4280_v31 = vpop.f32.mrb[92].mxu0 }
 0x1d0   :  { %v1949_v35 = vmax.f32 %v1471_v30, 0.0  ;;  %2211 = vadd.xlane.f32.xlu0 %v2210_v34  ;;  %v2080_v37 = vmul.f32 %v5028_v47, %v1948_v29 }
 0x1d1   :  { %v1947_v38 = vmax.f32 %v1463_v33, 0.0  ;;  %2214 = vadd.xlane.f32.xlu1 %v2213_v36  ;;  %v2078_v43 = vmul.f32 %v5028_v47, %v1946_v32 }
 0x1d2   :  { %v2228_v39 = vsel %vm242_vm0, %v2080_v37, 0.0  ;;  %v2081_v40 = vmul.f32 %v5028_v47, %v1949_v35  ;;  %v5108_v35 = vld [vmem:[%s6616_s3] ss:$0 sm:$0xff]  ;;  %v837_v37 = vpop.f32.mrb[93].mxu0 }
 0x1d3   :  { %v4336_v41 = vpop.f32.mrb[12].mxu1  ;;  %v2079_v16 = vmul.f32 %v5028_v47, %v1947_v38  ;;  %v2222_v55 = vsel %vm242_vm0, %v2078_v43, 0.0  ;;  %v846_v36 = vadd.f32 %v5108_v35, %v4280_v31  ;;  %v4281_v43 = vpop.f32.mrb[94].mxu0 }
 0x1d4   :  { %v1484_v44 = vadd.f32 %v4336_v41, %v5021_v42  ;;  %v1475_v45 = vpop.f32.mrb[13].mxu1  ;;  %2229 = vadd.xlane.f32.xlu0 %v2228_v39  ;;  %v2231_v46 = vsel %vm242_vm0, %v2081_v40, 0.0  ;;  %v838_v41 = vadd.f32 %v5108_v35, %v837_v37 }
 0x1d5   :  { %v1476_v48 = vadd.f32 %v5021_v42, %v1475_v45  ;;  %v4337_v49 = vpop.f32.mrb[14].mxu1  ;;  %2232 = vadd.xlane.f32.xlu1 %v2231_v46  ;;  %v2225_v57 = vsel %vm242_vm0, %v2079_v16, 0.0  ;;  %v1074_v45 = vmax.f32 %v846_v36, 0.0  ;;  %v849_v46 = vadd.f32 %v5108_v35, %v4281_v43  ;;  %v840_v16 = vpop.f32.mrb[95].mxu0 }
 0x1d6   :  { %v1952_v50 = vmax.f32 %v1484_v44, 0.0  ;;  %v1487_v51 = vadd.f32 %v4337_v49, %v5021_v42  ;;  %v1478_v52 = vpop.f32.mrb[15].mxu1 }
 0x1d7   :  { %v1950_v53 = vmax.f32 %v1476_v48, 0.0  ;;  %v1479_v54 = vadd.f32 %v5021_v42, %v1478_v52 }
 0x1d8   :  { %v1953_v56 = vmax.f32 %v1487_v51, 0.0  ;;  %2223 = vadd.xlane.f32.xlu0 %v2222_v55  ;;  %v2084_v58 = vmul.f32 %v5028_v47, %v1952_v50  ;;  %v1072_v50 = vmax.f32 %v838_v41, 0.0  ;;  %v841_v51 = vadd.f32 %v5108_v35, %v840_v16 }
 0x1d9   :  { %v1951_v59 = vmax.f32 %v1479_v54, 0.0  ;;  %2226 = vadd.xlane.f32.xlu1 %v2225_v57  ;;  %v2082_v63 = vmul.f32 %v5028_v47, %v1950_v53  ;;  %v1075_v54 = vmax.f32 %v849_v46, 0.0 }
 0x1da   :  { %v2240_v60 = vsel %vm242_vm0, %v2084_v58, 0.0  ;;  %v2085_v61 = vmul.f32 %v5028_v47, %v1953_v56 }
 0x1db   :  { %v4340_v62 = vpop.f32.mrb[16].mxu1  ;;  %v2083_v3 = vmul.f32 %v5028_v47, %v1951_v59  ;;  %v2234_v11 = vsel %vm242_vm0, %v2082_v63, 0.0  ;;  %v1073_v59 = vmax.f32 %v841_v51, 0.0 }
 0x1dc   :  { %v1500_v0 = vadd.f32 %v4340_v62, %v5021_v42  ;;  %v1491_v1 = vpop.f32.mrb[17].mxu1  ;;  %2241 = vadd.xlane.f32.xlu0 %v2240_v60  ;;  %v2243_v2 = vsel %vm242_vm0, %v2085_v61, 0.0  ;;  %v1155_v62 = vpack.c.bf16 %v1075_v54, %v1074_v45 }
 0x1dd   :  { %v1492_v4 = vadd.f32 %v5021_v42, %v1491_v1  ;;  %v4341_v5 = vpop.f32.mrb[18].mxu1  ;;  %2244 = vadd.xlane.f32.xlu1 %v2243_v2  ;;  %v2237_v13 = vsel %vm242_vm0, %v2083_v3, 0.0  ;;  %v1154_v2 = vpack.c.bf16 %v1073_v59, %v1072_v50 }
 0x1de   :  { %v1956_v6 = vmax.f32 %v1500_v0, 0.0  ;;  %v1503_v7 = vadd.f32 %v4341_v5, %v5021_v42  ;;  %v1494_v8 = vpop.f32.mrb[19].mxu1 }
 0x1df   :  { %v1954_v9 = vmax.f32 %v1492_v4, 0.0  ;;  %v1495_v10 = vadd.f32 %v5021_v42, %v1494_v8  ;;  %4414 = vmatprep.mubr.msk.bf16.mxu1 %vm1200_vm1, %v1154_v2 }
 0x1e0   :  { %v1957_v12 = vmax.f32 %v1503_v7, 0.0  ;;  %2235 = vadd.xlane.f32.xlu0 %v2234_v11  ;;  %v2088_v14 = vmul.f32 %v5028_v47, %v1956_v6  ;;  %4415 = vmatmul.mubr.msk.bf16.gmra.mrb[92].mxu1 %vm1200_vm1, %v1155_v62 }
 0x1e1   :  { %v1955_v17 = vmax.f32 %v1495_v10, 0.0  ;;  %2238 = vadd.xlane.f32.xlu1 %v2237_v13  ;;  %v2086_v21 = vmul.f32 %v5028_v47, %v1954_v9 }
 0x1e2   :  { %v2252_v18 = vsel %vm242_vm0, %v2088_v14, 0.0  ;;  %v2089_v19 = vmul.f32 %v5028_v47, %v1957_v12 }
 0x1e3   :  { %v4344_v20 = vpop.f32.mrb[20].mxu1  ;;  %v2087_v25 = vmul.f32 %v5028_v47, %v1955_v17  ;;  %v2246_v34 = vsel %vm242_vm0, %v2086_v21, 0.0 }
 0x1e4   :  { %v1516_v22 = vadd.f32 %v4344_v20, %v5021_v42  ;;  %v1507_v23 = vpop.f32.mrb[21].mxu1  ;;  %2253 = vadd.xlane.f32.xlu0 %v2252_v18  ;;  %v2255_v24 = vsel %vm242_vm0, %v2089_v19, 0.0 }
 0x1e5   :  { %v1508_v26 = vadd.f32 %v5021_v42, %v1507_v23  ;;  %v4345_v27 = vpop.f32.mrb[22].mxu1  ;;  %2256 = vadd.xlane.f32.xlu1 %v2255_v24  ;;  %v2249_v39 = vsel %vm242_vm0, %v2087_v25, 0.0 }
 0x1e6   :  { %v1960_v28 = vmax.f32 %v1516_v22, 0.0  ;;  %v1519_v29 = vadd.f32 %v4345_v27, %v5021_v42  ;;  %v1510_v30 = vpop.f32.mrb[23].mxu1 }
 0x1e7   :  { %v1958_v32 = vmax.f32 %v1508_v26, 0.0  ;;  %v1511_v33 = vadd.f32 %v5021_v42, %v1510_v30 }
 0x1e8   :  { %v1961_v38 = vmax.f32 %v1519_v29, 0.0  ;;  %2247 = vadd.xlane.f32.xlu0 %v2246_v34  ;;  %v2092_v40 = vmul.f32 %v5028_v47, %v1960_v28 }
 0x1e9   :  { %v1959_v44 = vmax.f32 %v1511_v33, 0.0  ;;  %2250 = vadd.xlane.f32.xlu1 %v2249_v39  ;;  %v2090_v53 = vmul.f32 %v5028_v47, %v1958_v32 }
 0x1ea   :  { %v2264_v48 = vsel %vm242_vm0, %v2092_v40, 0.0  ;;  %v2093_v49 = vmul.f32 %v5028_v47, %v1961_v38 }
 0x1eb   :  { %v4348_v52 = vpop.f32.mrb[24].mxu1  ;;  %v2091_v58 = vmul.f32 %v5028_v47, %v1959_v44  ;;  %v2258_v5 = vsel %vm242_vm0, %v2090_v53, 0.0 }
 0x1ec   :  { %v1532_v55 = vadd.f32 %v4348_v52, %v5021_v42  ;;  %v1523_v56 = vpop.f32.mrb[25].mxu1  ;;  %2265 = vadd.xlane.f32.xlu0 %v2264_v48  ;;  %v2267_v57 = vsel %vm242_vm0, %v2093_v49, 0.0 }
 0x1ed   :  { %v1524_v60 = vadd.f32 %v5021_v42, %v1523_v56  ;;  %v4349_v61 = vpop.f32.mrb[26].mxu1  ;;  %2268 = vadd.xlane.f32.xlu1 %v2267_v57  ;;  %v2261_v7 = vsel %vm242_vm0, %v2091_v58, 0.0  ;;  %v142_v57 = vld [vmem:[%s6614_s0 + $0x360] sm:$0xff]  ;;  %v143_v58 = vld [vmem:[%s6614_s0 + $0x368] sm:$0xff] }
 0x1ee   :  { %v1964_v63 = vmax.f32 %v1532_v55, 0.0  ;;  %v1535_v0 = vadd.f32 %v4349_v61, %v5021_v42  ;;  %v1526_v1 = vpop.f32.mrb[27].mxu1 }
 0x1ef   :  { %v1962_v3 = vmax.f32 %v1524_v60, 0.0  ;;  %v1527_v4 = vadd.f32 %v5021_v42, %v1526_v1  ;;  %v145_v1 = vld [vmem:[%s6614_s0 + $0x378] sm:$0xff] }
 0x1f0   :  { %v1965_v6 = vmax.f32 %v1535_v0, 0.0  ;;  %2259 = vadd.xlane.f32.xlu0 %v2258_v5  ;;  %v2096_v8 = vmul.f32 %v5028_v47, %v1964_v63  ;;  %v216_v63 = vpack.c.bf16 %v143_v58, %v142_v57  ;;  %v144_v0 = vld [vmem:[%s6614_s0 + $0x370] sm:$0xff] }
 0x1f1   :  { %v1963_v9 = vmax.f32 %v1527_v4, 0.0  ;;  %2262 = vadd.xlane.f32.xlu1 %v2261_v7  ;;  %v2094_v13 = vmul.f32 %v5028_v47, %v1962_v3  ;;  %v217_v4 = vpack.c.bf16 %v145_v1, %v144_v0 }
 0x1f2   :  { %v2276_v10 = vsel %vm242_vm0, %v2096_v8, 0.0  ;;  %v2097_v11 = vmul.f32 %v5028_v47, %v1965_v6  ;;  %4294 = vmatprep.mubr.msk.bf16.mxu0 %vm242_vm0, %v216_v63 }
 0x1f3   :  { %v4352_v12 = vpop.f32.mrb[28].mxu1  ;;  %v2095_v18 = vmul.f32 %v5028_v47, %v1963_v9  ;;  %v2270_v26 = vsel %vm242_vm0, %v2094_v13, 0.0  ;;  %4295 = vmatmul.mubr.msk.bf16.gmra.mrb[108].mxu0 %vm242_vm0, %v217_v4 }
 0x1f4   :  { %v1548_v14 = vadd.f32 %v4352_v12, %v5021_v42  ;;  %v1539_v15 = vpop.f32.mrb[29].mxu1  ;;  %2277 = vadd.xlane.f32.xlu0 %v2276_v10  ;;  %v2279_v17 = vsel %vm242_vm0, %v2097_v11, 0.0 }
 0x1f5   :  { %v1540_v19 = vadd.f32 %v5021_v42, %v1539_v15  ;;  %v4353_v20 = vpop.f32.mrb[30].mxu1  ;;  %2280 = vadd.xlane.f32.xlu1 %v2279_v17  ;;  %v2273_v28 = vsel %vm242_vm0, %v2095_v18, 0.0 }
 0x1f6   :  { %v1968_v21 = vmax.f32 %v1548_v14, 0.0  ;;  %v1551_v22 = vadd.f32 %v4353_v20, %v5021_v42  ;;  %v1542_v23 = vpop.f32.mrb[31].mxu1 }
 0x1f7   :  { %v1966_v24 = vmax.f32 %v1540_v19, 0.0  ;;  %v1543_v25 = vadd.f32 %v5021_v42, %v1542_v23 }
 0x1f8   :  { %v1969_v27 = vmax.f32 %v1551_v22, 0.0  ;;  %2271 = vadd.xlane.f32.xlu0 %v2270_v26  ;;  %v2100_v29 = vmul.f32 %v5028_v47, %v1968_v21 }
 0x1f9   :  { %v1967_v30 = vmax.f32 %v1543_v25, 0.0  ;;  %2274 = vadd.xlane.f32.xlu1 %v2273_v28  ;;  %v2098_v34 = vmul.f32 %v5028_v47, %v1966_v24 }
 0x1fa   :  { %v2288_v31 = vsel %vm242_vm0, %v2100_v29, 0.0  ;;  %v2101_v32 = vmul.f32 %v5028_v47, %v1969_v27 }
 0x1fb   :  { %v4356_v33 = vpop.f32.mrb[32].mxu1  ;;  %v2099_v39 = vmul.f32 %v5028_v47, %v1967_v30  ;;  %v2282_v48 = vsel %vm242_vm0, %v2098_v34, 0.0 }
 0x1fc   :  { %v1564_v36 = vadd.f32 %v4356_v33, %v5021_v42  ;;  %v1555_v37 = vpop.f32.mrb[33].mxu1  ;;  %2289 = vadd.xlane.f32.xlu0 %v2288_v31  ;;  %v2291_v38 = vsel %vm242_vm0, %v2101_v32, 0.0 }
 0x1fd   :  { %v1556_v40 = vadd.f32 %v5021_v42, %v1555_v37  ;;  %v4357_v41 = vpop.f32.mrb[34].mxu1  ;;  %2292 = vadd.xlane.f32.xlu1 %v2291_v38  ;;  %v2285_v50 = vsel %vm242_vm0, %v2099_v39, 0.0 }
 0x1fe   :  { %v1972_v43 = vmax.f32 %v1564_v36, 0.0  ;;  %v1567_v44 = vadd.f32 %v4357_v41, %v5021_v42  ;;  %v1558_v45 = vpop.f32.mrb[35].mxu1 }
 0x1ff   :  { %v1970_v46 = vmax.f32 %v1556_v40, 0.0  ;;  %v1559_v16 = vadd.f32 %v5021_v42, %v1558_v45 }
 0x200   :  { %v1973_v49 = vmax.f32 %v1567_v44, 0.0  ;;  %2283 = vadd.xlane.f32.xlu0 %v2282_v48  ;;  %v2104_v51 = vmul.f32 %v5028_v47, %v1972_v43 }
 0x201   :  { %v1971_v52 = vmax.f32 %v1559_v16, 0.0  ;;  %2286 = vadd.xlane.f32.xlu1 %v2285_v50  ;;  %v2102_v56 = vmul.f32 %v5028_v47, %v1970_v46 }
 0x202   :  { %v2300_v53 = vsel %vm242_vm0, %v2104_v51, 0.0  ;;  %v2105_v54 = vmul.f32 %v5028_v47, %v1973_v49 }
 0x203   :  { %v4360_v55 = vpop.f32.mrb[36].mxu1  ;;  %v2103_v62 = vmul.f32 %v5028_v47, %v1971_v52  ;;  %v2294_v10 = vsel %vm242_vm0, %v2102_v56, 0.0 }
 0x204   :  { %v1580_v59 = vadd.f32 %v4360_v55, %v5021_v42  ;;  %v1571_v60 = vpop.f32.mrb[37].mxu1  ;;  %2301 = vadd.xlane.f32.xlu0 %v2300_v53  ;;  %v2303_v61 = vsel %vm242_vm0, %v2105_v54, 0.0 }
 0x205   :  { %v1572_v2 = vadd.f32 %v5021_v42, %v1571_v60  ;;  %v4361_v3 = vpop.f32.mrb[38].mxu1  ;;  %2304 = vadd.xlane.f32.xlu1 %v2303_v61  ;;  %v2297_v12 = vsel %vm242_vm0, %v2103_v62, 0.0 }
 0x206   :  { %v1976_v5 = vmax.f32 %v1580_v59, 0.0  ;;  %v1583_v6 = vadd.f32 %v4361_v3, %v5021_v42  ;;  %v1574_v7 = vpop.f32.mrb[39].mxu1 }
 0x207   :  { %v1974_v8 = vmax.f32 %v1572_v2, 0.0  ;;  %v1575_v9 = vadd.f32 %v5021_v42, %v1574_v7 }
 0x208   :  { %v1977_v11 = vmax.f32 %v1583_v6, 0.0  ;;  %2295 = vadd.xlane.f32.xlu0 %v2294_v10  ;;  %v2108_v13 = vmul.f32 %v5028_v47, %v1976_v5 }
 0x209   :  { %v1975_v14 = vmax.f32 %v1575_v9, 0.0  ;;  %2298 = vadd.xlane.f32.xlu1 %v2297_v12  ;;  %v2106_v19 = vmul.f32 %v5028_v47, %v1974_v8 }
 0x20a   :  { %v2312_v15 = vsel %vm242_vm0, %v2108_v13, 0.0  ;;  %v2109_v17 = vmul.f32 %v5028_v47, %v1977_v11 }
 0x20b   :  { %v4364_v18 = vpop.f32.mrb[40].mxu1  ;;  %v2107_v23 = vmul.f32 %v5028_v47, %v1975_v14  ;;  %v2306_v31 = vsel %vm242_vm0, %v2106_v19, 0.0  ;;  %v4284_v19 = vpop.f32.mrb[96].mxu0 }
 0x20c   :  { %v1596_v20 = vadd.f32 %v4364_v18, %v5021_v42  ;;  %v1587_v21 = vpop.f32.mrb[41].mxu1  ;;  %2313 = vadd.xlane.f32.xlu0 %v2312_v15  ;;  %v2315_v22 = vsel %vm242_vm0, %v2109_v17, 0.0 }
 0x20d   :  { %v1588_v24 = vadd.f32 %v5021_v42, %v1587_v21  ;;  %v4365_v25 = vpop.f32.mrb[42].mxu1  ;;  %2316 = vadd.xlane.f32.xlu1 %v2315_v22  ;;  %v2309_v33 = vsel %vm242_vm0, %v2107_v23, 0.0 }
 0x20e   :  { %v1980_v26 = vmax.f32 %v1596_v20, 0.0  ;;  %v1599_v27 = vadd.f32 %v4365_v25, %v5021_v42  ;;  %v1590_v28 = vpop.f32.mrb[43].mxu1  ;;  %v853_v25 = vpop.f32.mrb[97].mxu0 }
 0x20f   :  { %v1978_v29 = vmax.f32 %v1588_v24, 0.0  ;;  %v1591_v30 = vadd.f32 %v5021_v42, %v1590_v28  ;;  %v862_v24 = vadd.f32 %v5108_v35, %v4284_v19 }
 0x210   :  { %v1981_v32 = vmax.f32 %v1599_v27, 0.0  ;;  %2307 = vadd.xlane.f32.xlu0 %v2306_v31  ;;  %v2112_v34 = vmul.f32 %v5028_v47, %v1980_v26 }
 0x211   :  { %v1979_v36 = vmax.f32 %v1591_v30, 0.0  ;;  %2310 = vadd.xlane.f32.xlu1 %v2309_v33  ;;  %v2110_v40 = vmul.f32 %v5028_v47, %v1978_v29  ;;  %v854_v29 = vadd.f32 %v5108_v35, %v853_v25  ;;  %v4285_v30 = vpop.f32.mrb[98].mxu0 }
 0x212   :  { %v2324_v37 = vsel %vm242_vm0, %v2112_v34, 0.0  ;;  %v2113_v38 = vmul.f32 %v5028_v47, %v1981_v32  ;;  %v1078_v34 = vmax.f32 %v862_v24, 0.0 }
 0x213   :  { %v4368_v39 = vpop.f32.mrb[44].mxu1  ;;  %v2111_v45 = vmul.f32 %v5028_v47, %v1979_v36  ;;  %v2318_v53 = vsel %vm242_vm0, %v2110_v40, 0.0  ;;  %v865_v36 = vadd.f32 %v5108_v35, %v4285_v30  ;;  %v1076_v40 = vmax.f32 %v854_v29, 0.0 }
 0x214   :  { %v1612_v41 = vadd.f32 %v4368_v39, %v5021_v42  ;;  %v1603_v43 = vpop.f32.mrb[45].mxu1  ;;  %2325 = vadd.xlane.f32.xlu0 %v2324_v37  ;;  %v2327_v44 = vsel %vm242_vm0, %v2113_v38, 0.0  ;;  %v856_v37 = vpop.f32.mrb[99].mxu0 }
 0x215   :  { %v1604_v46 = vadd.f32 %v5021_v42, %v1603_v43  ;;  %v4369_v16 = vpop.f32.mrb[46].mxu1  ;;  %2328 = vadd.xlane.f32.xlu1 %v2327_v44  ;;  %v2321_v55 = vsel %vm242_vm0, %v2111_v45, 0.0 }
 0x216   :  { %v1984_v48 = vmax.f32 %v1612_v41, 0.0  ;;  %v1615_v49 = vadd.f32 %v4369_v16, %v5021_v42  ;;  %v1606_v50 = vpop.f32.mrb[47].mxu1  ;;  %v857_v41 = vadd.f32 %v5108_v35, %v856_v37 }
 0x217   :  { %v1982_v51 = vmax.f32 %v1604_v46, 0.0  ;;  %v1607_v52 = vadd.f32 %v5021_v42, %v1606_v50  ;;  %v1079_v46 = vmax.f32 %v865_v36, 0.0 }
 0x218   :  { %v1985_v54 = vmax.f32 %v1615_v49, 0.0  ;;  %2319 = vadd.xlane.f32.xlu0 %v2318_v53  ;;  %v2116_v56 = vmul.f32 %v5028_v47, %v1984_v48  ;;  %v1077_v48 = vmax.f32 %v857_v41, 0.0 }
 0x219   :  { %v1983_v57 = vmax.f32 %v1607_v52, 0.0  ;;  %2322 = vadd.xlane.f32.xlu1 %v2321_v55  ;;  %v2114_v61 = vmul.f32 %v5028_v47, %v1982_v51  ;;  %v1157_v51 = vpack.c.bf16 %v1079_v46, %v1078_v34 }
 0x21a   :  { %v2336_v58 = vsel %vm242_vm0, %v2116_v56, 0.0  ;;  %v2117_v59 = vmul.f32 %v5028_v47, %v1985_v54  ;;  %v1156_v54 = vpack.c.bf16 %v1077_v48, %v1076_v40 }
 0x21b   :  { %v4372_v60 = vpop.f32.mrb[48].mxu1  ;;  %v2115_v1 = vmul.f32 %v5028_v47, %v1983_v57  ;;  %v2330_v9 = vsel %vm242_vm0, %v2114_v61, 0.0 }
 0x21c   :  { %v1628_v62 = vadd.f32 %v4372_v60, %v5021_v42  ;;  %v1619_v63 = vpop.f32.mrb[49].mxu1  ;;  %2337 = vadd.xlane.f32.xlu0 %v2336_v58  ;;  %v2339_v0 = vsel %vm242_vm0, %v2117_v59, 0.0  ;;  %4418 = vmatprep.mubr.msk.bf16.mxu1 %vm1200_vm1, %v1156_v54  ;;  %v149_v54 = vld [vmem:[%s6614_s0 + $0x398] sm:$0xff] }
 0x21d   :  { %v1620_v2 = vadd.f32 %v5021_v42, %v1619_v63  ;;  %v4373_v3 = vpop.f32.mrb[50].mxu1  ;;  %2340 = vadd.xlane.f32.xlu1 %v2339_v0  ;;  %v2333_v11 = vsel %vm242_vm0, %v2115_v1, 0.0  ;;  %4419 = vmatmul.mubr.msk.bf16.gmra.mrb[96].mxu1 %vm1200_vm1, %v1157_v51 }
 0x21e   :  { %v1988_v4 = vmax.f32 %v1628_v62, 0.0  ;;  %v1631_v5 = vadd.f32 %v4373_v3, %v5021_v42  ;;  %v1622_v6 = vpop.f32.mrb[51].mxu1 }
 0x21f   :  { %v1986_v7 = vmax.f32 %v1620_v2, 0.0  ;;  %v1623_v8 = vadd.f32 %v5021_v42, %v1622_v6 }
 0x220   :  { %v1989_v10 = vmax.f32 %v1631_v5, 0.0  ;;  %2331 = vadd.xlane.f32.xlu0 %v2330_v9  ;;  %v2120_v12 = vmul.f32 %v5028_v47, %v1988_v4 }
 0x221   :  { %v1987_v13 = vmax.f32 %v1623_v8, 0.0  ;;  %2334 = vadd.xlane.f32.xlu1 %v2333_v11  ;;  %v2118_v14 = vmul.f32 %v5028_v47, %v1986_v7 }
 0x222   :  { %v2348_v15 = vsel %vm242_vm0, %v2120_v12, 0.0  ;;  %v2121_v17 = vmul.f32 %v5028_v47, %v1989_v10 }
 0x223   :  { %v4376_v18 = vpop.f32.mrb[52].mxu1  ;;  %v2119_v23 = vmul.f32 %v5028_v47, %v1987_v13  ;;  %v2342_v28 = vsel %vm242_vm0, %v2118_v14, 0.0 }
 0x224   :  { %v1644_v20 = vadd.f32 %v4376_v18, %v5021_v42  ;;  %v1635_v21 = vpop.f32.mrb[53].mxu1  ;;  %2349 = vadd.xlane.f32.xlu0 %v2348_v15  ;;  %v2351_v22 = vsel %vm242_vm0, %v2121_v17, 0.0 }
 0x225   :  { %v1636_v26 = vadd.f32 %v5021_v42, %v1635_v21  ;;  %v4377_v27 = vpop.f32.mrb[54].mxu1  ;;  %2352 = vadd.xlane.f32.xlu1 %v2351_v22  ;;  %v2345_v44 = vsel %vm242_vm0, %v2119_v23, 0.0 }
 0x226   :  { %v1992_v31 = vmax.f32 %v1644_v20, 0.0  ;;  %v1647_v32 = vadd.f32 %v4377_v27, %v5021_v42  ;;  %v1638_v33 = vpop.f32.mrb[55].mxu1 }
 0x227   :  { %v1990_v38 = vmax.f32 %v1636_v26, 0.0  ;;  %v1639_v39 = vadd.f32 %v5021_v42, %v1638_v33 }
 0x228   :  { %v1993_v43 = vmax.f32 %v1647_v32, 0.0  ;;  %2343 = vadd.xlane.f32.xlu0 %v2342_v28  ;;  %v2124_v45 = vmul.f32 %v5028_v47, %v1992_v31 }
 0x229   :  { %v1991_v16 = vmax.f32 %v1639_v39, 0.0  ;;  %2346 = vadd.xlane.f32.xlu1 %v2345_v44  ;;  %v2122_v53 = vmul.f32 %v5028_v47, %v1990_v38 }
 0x22a   :  { %v2360_v49 = vsel %vm242_vm0, %v2124_v45, 0.0  ;;  %v2125_v50 = vmul.f32 %v5028_v47, %v1993_v43 }
 0x22b   :  { %v4380_v52 = vpop.f32.mrb[56].mxu1  ;;  %v2123_v58 = vmul.f32 %v5028_v47, %v1991_v16  ;;  %v2354_v2 = vsel %vm242_vm0, %v2122_v53, 0.0  ;;  %v148_v53 = vld [vmem:[%s6614_s0 + $0x390] sm:$0xff] }
 0x22c   :  { %v1660_v55 = vadd.f32 %v4380_v52, %v5021_v42  ;;  %v1651_v56 = vpop.f32.mrb[57].mxu1  ;;  %2361 = vadd.xlane.f32.xlu0 %v2360_v49  ;;  %v2363_v57 = vsel %vm242_vm0, %v2125_v50, 0.0  ;;  %v146_v49 = vld [vmem:[%s6614_s0 + $0x380] sm:$0xff]  ;;  %v147_v50 = vld [vmem:[%s6614_s0 + $0x388] sm:$0xff] }
 0x22d   :  { %v1652_v59 = vadd.f32 %v5021_v42, %v1651_v56  ;;  %v4381_v60 = vpop.f32.mrb[58].mxu1  ;;  %2364 = vadd.xlane.f32.xlu1 %v2363_v57  ;;  %v2357_v4 = vsel %vm242_vm0, %v2123_v58, 0.0  ;;  %v218_v52 = vpack.c.bf16 %v147_v50, %v146_v49  ;;  %v219_v57 = vpack.c.bf16 %v149_v54, %v148_v53 }
 0x22e   :  { %v1996_v61 = vmax.f32 %v1660_v55, 0.0  ;;  %v1663_v62 = vadd.f32 %v4381_v60, %v5021_v42  ;;  %v1654_v63 = vpop.f32.mrb[59].mxu1 }
 0x22f   :  { %v1994_v0 = vmax.f32 %v1652_v59, 0.0  ;;  %v1655_v1 = vadd.f32 %v5021_v42, %v1654_v63  ;;  %4298 = vmatprep.mubr.msk.bf16.mxu0 %vm242_vm0, %v218_v52 }
 0x230   :  { %v1997_v3 = vmax.f32 %v1663_v62, 0.0  ;;  %2355 = vadd.xlane.f32.xlu0 %v2354_v2  ;;  %v2128_v5 = vmul.f32 %v5028_v47, %v1996_v61  ;;  %4299 = vmatmul.mubr.msk.bf16.gmra.mrb[112].mxu0 %vm242_vm0, %v219_v57 }
 0x231   :  { %v1995_v6 = vmax.f32 %v1655_v1, 0.0  ;;  %2358 = vadd.xlane.f32.xlu1 %v2357_v4  ;;  %v2126_v10 = vmul.f32 %v5028_v47, %v1994_v0 }
 0x232   :  { %v2372_v7 = vsel %vm242_vm0, %v2128_v5, 0.0  ;;  %v2129_v8 = vmul.f32 %v5028_v47, %v1997_v3 }
 0x233   :  { %v4384_v9 = vpop.f32.mrb[60].mxu1  ;;  %v2127_v14 = vmul.f32 %v5028_v47, %v1995_v6  ;;  %v2366_v23 = vsel %vm242_vm0, %v2126_v10, 0.0 }
 0x234   :  { %v1676_v11 = vadd.f32 %v4384_v9, %v5021_v42  ;;  %v1667_v12 = vpop.f32.mrb[61].mxu1  ;;  %2373 = vadd.xlane.f32.xlu0 %v2372_v7  ;;  %v2375_v13 = vsel %vm242_vm0, %v2129_v8, 0.0 }
 0x235   :  { %v1668_v15 = vadd.f32 %v5021_v42, %v1667_v12  ;;  %v4385_v17 = vpop.f32.mrb[62].mxu1  ;;  %2376 = vadd.xlane.f32.xlu1 %v2375_v13  ;;  %v2369_v25 = vsel %vm242_vm0, %v2127_v14, 0.0 }
 0x236   :  { %v2000_v18 = vmax.f32 %v1676_v11, 0.0  ;;  %v1679_v19 = vadd.f32 %v4385_v17, %v5021_v42  ;;  %v1670_v20 = vpop.f32.mrb[63].mxu1 }
 0x237   :  { %v1998_v21 = vmax.f32 %v1668_v15, 0.0  ;;  %v1671_v22 = vadd.f32 %v5021_v42, %v1670_v20 }
 0x238   :  { %v2001_v24 = vmax.f32 %v1679_v19, 0.0  ;;  %2367 = vadd.xlane.f32.xlu0 %v2366_v23  ;;  %v2132_v26 = vmul.f32 %v5028_v47, %v2000_v18 }
 0x239   :  { %v1999_v27 = vmax.f32 %v1671_v22, 0.0  ;;  %2370 = vadd.xlane.f32.xlu1 %v2369_v25  ;;  %v2130_v31 = vmul.f32 %v5028_v47, %v1998_v21 }
 0x23a   :  { %v2384_v28 = vsel %vm242_vm0, %v2132_v26, 0.0  ;;  %v2133_v29 = vmul.f32 %v5028_v47, %v2001_v24 }
 0x23b   :  { %v4388_v30 = vpop.f32.mrb[64].mxu1  ;;  %v2131_v36 = vmul.f32 %v5028_v47, %v1999_v27  ;;  %v2378_v45 = vsel %vm242_vm0, %v2130_v31, 0.0 }
 0x23c   :  { %v1692_v32 = vadd.f32 %v4388_v30, %v5021_v42  ;;  %v1683_v33 = vpop.f32.mrb[65].mxu1  ;;  %2385 = vadd.xlane.f32.xlu0 %v2384_v28  ;;  %v2387_v34 = vsel %vm242_vm0, %v2133_v29, 0.0 }
 0x23d   :  { %v1684_v37 = vadd.f32 %v5021_v42, %v1683_v33  ;;  %v4389_v38 = vpop.f32.mrb[66].mxu1  ;;  %2388 = vadd.xlane.f32.xlu1 %v2387_v34  ;;  %v2381_v16 = vsel %vm242_vm0, %v2131_v36, 0.0 }
 0x23e   :  { %v2004_v39 = vmax.f32 %v1692_v32, 0.0  ;;  %v1695_v40 = vadd.f32 %v4389_v38, %v5021_v42  ;;  %v1686_v41 = vpop.f32.mrb[67].mxu1  ;;  %v5318_v38 = vld [vmem:[%s6616_s3 + $0x3] ss:$0 sm:$0xff] }
 0x23f   :  { %v2002_v43 = vmax.f32 %v1684_v37, 0.0  ;;  %v1687_v44 = vadd.f32 %v5021_v42, %v1686_v41 }
 0x240   :  { %v2005_v46 = vmax.f32 %v1695_v40, 0.0  ;;  %2379 = vadd.xlane.f32.xlu0 %v2378_v45  ;;  %v2136_v48 = vmul.f32 %v5028_v47, %v2004_v39 }
 0x241   :  { %v2003_v51 = vmax.f32 %v1687_v44, 0.0  ;;  %2382 = vadd.xlane.f32.xlu1 %v2381_v16  ;;  %v2134_v59 = vmul.f32 %v5028_v47, %v2002_v43 }
 0x242   :  { %v2396_v55 = vsel %vm242_vm0, %v2136_v48, 0.0  ;;  %v2137_v56 = vmul.f32 %v5028_v47, %v2005_v46  ;;  %v4288_v43 = vpop.f32.mrb[100].mxu0 }
 0x243   :  { %v4392_v58 = vpop.f32.mrb[68].mxu1  ;;  %v2135_v63 = vmul.f32 %v5028_v47, %v2003_v51  ;;  %v2390_v7 = vsel %vm242_vm0, %v2134_v59, 0.0  ;;  %v878_v44 = vadd.f32 %v5108_v35, %v4288_v43  ;;  %v869_v45 = vpop.f32.mrb[101].mxu0 }
 0x244   :  { %v1708_v60 = vadd.f32 %v4392_v58, %v5021_v42  ;;  %v1699_v61 = vpop.f32.mrb[69].mxu1  ;;  %2397 = vadd.xlane.f32.xlu0 %v2396_v55  ;;  %v2399_v62 = vsel %vm242_vm0, %v2137_v56, 0.0  ;;  %v870_v46 = vadd.f32 %v5108_v35, %v869_v45  ;;  %v4289_v16 = vpop.f32.mrb[102].mxu0 }
 0x245   :  { %v1700_v0 = vadd.f32 %v5021_v42, %v1699_v61  ;;  %v4393_v1 = vpop.f32.mrb[70].mxu1  ;;  %2400 = vadd.xlane.f32.xlu1 %v2399_v62  ;;  %v2393_v9 = vsel %vm242_vm0, %v2135_v63, 0.0  ;;  %v872_v49 = vpop.f32.mrb[103].mxu0  ;;  %v1082_v51 = vmax.f32 %v878_v44, 0.0  ;;  %v881_v52 = vadd.f32 %v5108_v35, %v4289_v16  ;;  %v150_v61 = vld [vmem:[%s6614_s0 + $0x3a0] sm:$0xff]  ;;  %v151_v62 = vld [vmem:[%s6614_s0 + $0x3a8] sm:$0xff] }
 0x246   :  { %v2008_v2 = vmax.f32 %v1708_v60, 0.0  ;;  %v1711_v3 = vadd.f32 %v4393_v1, %v5021_v42  ;;  %v1702_v4 = vpop.f32.mrb[71].mxu1  ;;  %v1080_v53 = vmax.f32 %v870_v46, 0.0  ;;  %v873_v54 = vadd.f32 %v5108_v35, %v872_v49  ;;  %v152_v63 = vld [vmem:[%s6614_s0 + $0x3b0] sm:$0xff]  ;;  %v5350_v1 = vld [vmem:[%s6616_s3 + $0x1] ss:$0 sm:$0xff] }
 0x247   :  { %v2006_v5 = vmax.f32 %v1700_v0, 0.0  ;;  %v1703_v6 = vadd.f32 %v5021_v42, %v1702_v4  ;;  %v1083_v55 = vmax.f32 %v881_v52, 0.0  ;;  %v153_v4 = vld [vmem:[%s6614_s0 + $0x3b8] sm:$0xff] }
 0x248   :  { %v2009_v8 = vmax.f32 %v1711_v3, 0.0  ;;  %2391 = vadd.xlane.f32.xlu0 %v2390_v7  ;;  %v2140_v10 = vmul.f32 %v5028_v47, %v2008_v2  ;;  %v1081_v56 = vmax.f32 %v873_v54, 0.0  ;;  %v220_v3 = vpack.c.bf16 %v151_v62, %v150_v61  ;;  %v154_v62 = vld [vmem:[%s6614_s0 + $0x3c0] sm:$0xff] }
 0x249   :  { %v2007_v11 = vmax.f32 %v1703_v6, 0.0  ;;  %2394 = vadd.xlane.f32.xlu1 %v2393_v9  ;;  %v2138_v15 = vmul.f32 %v5028_v47, %v2006_v5  ;;  %v1159_v57 = vpack.c.bf16 %v1083_v55, %v1082_v51  ;;  %v221_v6 = vpack.c.bf16 %v153_v4, %v152_v63  ;;  %v5364_v9 = vld [vmem:[%s6616_s3 + $0x2] ss:$0 sm:$0xff]  ;;  %v155_v63 = vld [vmem:[%s6614_s0 + $0x3c8] sm:$0xff] }
 0x24a   :  { %v2408_v12 = vsel %vm242_vm0, %v2140_v10, 0.0  ;;  %v2141_v13 = vmul.f32 %v5028_v47, %v2009_v8  ;;  %v1158_v59 = vpack.c.bf16 %v1081_v56, %v1080_v53  ;;  %4302 = vmatprep.mubr.msk.bf16.mxu0 %vm242_vm0, %v220_v3  ;;  %v222_v3 = vpack.c.bf16 %v155_v63, %v154_v62 }
 0x24b   :  { %v4396_v14 = vpop.f32.mrb[72].mxu1  ;;  %v2139_v20 = vmul.f32 %v5028_v47, %v2007_v11  ;;  %v2402_v26 = vsel %vm242_vm0, %v2138_v15, 0.0  ;;  %4303 = vmatmul.mubr.msk.bf16.gmra.mrb[116].mxu0 %vm242_vm0, %v221_v6 }
 0x24c   :  { %v1724_v17 = vadd.f32 %v4396_v14, %v5021_v42  ;;  %2409 = vadd.xlane.f32.xlu0 %v2408_v12  ;;  %v2411_v18 = vsel %vm242_vm0, %v2141_v13, 0.0  ;;  %v1715_v19 = vpop.f32.mrb[73].mxu1  ;;  %4422 = vmatprep.mubr.msk.bf16.mxu1 %vm1200_vm1, %v1158_v59 }
 0x24d   :  { %2412 = vadd.xlane.f32.xlu1 %v2411_v18  ;;  %v1716_v21 = vadd.f32 %v5021_v42, %v1715_v19  ;;  %v4397_v22 = vpop.f32.mrb[74].mxu1  ;;  %v2405_v27 = vsel %vm242_vm0, %v2139_v20, 0.0  ;;  %4423 = vmatmul.mubr.msk.bf16.gmra.mrb[100].mxu1 %vm1200_vm1, %v1159_v57 }
 0x24e   :  { %v2012_v23 = vmax.f32 %v1724_v17, 0.0  ;;  %v5303_v24 = vpop.f32.mrb[75].mxu1  ;;  %v1727_v2 = vadd.f32 %v5350_v1, %v4397_v22  ;;  %4306 = vmatprep.mubr.msk.bf16.mxu0 %vm242_vm0, %v222_v3 }
 0x24f   :  { %v2010_v25 = vmax.f32 %v1716_v21, 0.0  ;;  %v1719_v59 = vadd.f32 %v5350_v1, %v5303_v24  ;;  %v157_v24 = vld [vmem:[%s6614_s0 + $0x3d8] sm:$0xff] }
 0x250   :  { %2403 = vadd.xlane.f32.xlu0 %v2402_v26  ;;  %v2144_v28 = vmul.f32 %v5028_v47, %v2012_v23  ;;  %v2013_v7 = vmax.f32 %v1727_v2, 0.0  ;;  %v156_v2 = vld [vmem:[%s6614_s0 + $0x3d0] sm:$0xff] }
 0x251   :  { %2406 = vadd.xlane.f32.xlu1 %v2405_v27  ;;  %v2142_v29 = vmul.f32 %v5028_v47, %v2010_v25  ;;  %v2206_v47 = vpop.xlane.xlu1 %2205  ;;  %v2200_v58 = vpop.xlane.xlu0 %2199  ;;  %v2011_v61 = vmax.f32 %v1719_v59, 0.0  ;;  %v223_v4 = vpack.c.bf16 %v157_v24, %v156_v2  ;;  %v160_v59 = vld [vmem:[%s6614_s0 + $0x3f0] sm:$0xff] }
 0x252   :  { %v2420_v30 = vsel %vm242_vm0, %v2144_v28, 0.0  ;;  %v2588_v41 = vadd.f32 %v5318_v38, %v2206_v47  ;;  %v2586_v60 = vadd.f32 %v5318_v38, %v2200_v58  ;;  %v2145_v10 = vmul.f32 %v5364_v9, %v2013_v7 }
 0x253   :  { %v4400_v31 = vpop.f32.mrb[76].mxu1  ;;  %v2414_v32 = vsel %vm242_vm0, %v2142_v29, 0.0  ;;  %v2143_v6 = vmul.f32 %v5364_v9, %v2011_v61  ;;  %4307 = vmatmul.mubr.msk.bf16.gmra.mrb[120].mxu0 %vm242_vm0, %v223_v4  ;;  %v161_v61 = vld [vmem:[%s6614_s0 + $0x3f8] sm:$0xff] }
 0x254   :  { %2421 = vadd.xlane.f32.xlu0 %v2420_v30  ;;  %v1731_v42 = vpop.f32.mrb[77].mxu1  ;;  %v1740_v8 = vadd.f32 %v5350_v1, %v4400_v31  ;;  %v2423_v13 = vsel %vm242_vm0, %v2145_v10, 0.0  ;;  %v225_v62 = vpack.c.bf16 %v161_v61, %v160_v59 }
 0x255   :  { %v5311_v33 = vpop.f32.mrb[78].mxu1  ;;  %v1732_v12 = vadd.f32 %v5350_v1, %v1731_v42  ;;  %v2209_v28 = vpop.xlane.xlu1 %2208  ;;  %v2417_v7 = vsel %vm242_vm0, %v2143_v6, 0.0 }
 0x256   :  { %v5313_v34 = vpop.f32.mrb[79].mxu1  ;;  %v2016_v11 = vmax.f32 %v1740_v8, 0.0  ;;  %v2589_v31 = vadd.f32 %v5318_v38, %v2209_v28 }
 0x257   :  { %v2014_v14 = vmax.f32 %v1732_v12, 0.0 }
 0x258   :  { %2415 = vadd.xlane.f32.xlu0 %v2414_v32  ;;  %v2148_v17 = vmul.f32 %v5364_v9, %v2016_v11  ;;  %v2203_v11 = vpop.xlane.xlu0 %2202 }
 0x259   :  { %v2146_v23 = vmul.f32 %v5364_v9, %v2014_v14 }
 0x25a   :  { %v2432_v21 = vsel %vm242_vm0, %v2148_v17, 0.0  ;;  %v5384_v32 = vpop.xlane.xlu1 %2220 }
 0x25b   :  { %v4404_v36 = vpop.f32.mrb[80].mxu1  ;;  %v2426_v26 = vsel %vm242_vm0, %v2146_v23, 0.0 }
 0x25c   :  { %v1747_v37 = vpop.f32.mrb[81].mxu1  ;;  %v1756_v15 = vadd.f32 %v5350_v1, %v4404_v36 }
 0x25d   :  { %v5320_v39 = vpop.f32.mrb[82].mxu1  ;;  %v1748_v22 = vadd.f32 %v5350_v1, %v1747_v37 }
 0x25e   :  { %v5322_v40 = vpop.f32.mrb[83].mxu1  ;;  %v2020_v20 = vmax.f32 %v1756_v15, 0.0  ;;  %v5390_v51 = vpop.xlane.xlu1 %2214 }
 0x25f   :  { %v2018_v25 = vmax.f32 %v1748_v22, 0.0 }
 0x260   :  { %v2152_v27 = vmul.f32 %v5364_v9, %v2020_v20  ;;  %v2218_v20 = vpop.xlane.xlu0 %2217 }
 0x261   :  { %v2150_v30 = vmul.f32 %v5364_v9, %v2018_v25  ;;  %v2592_v25 = vadd.f32 %v5318_v38, %v2218_v20 }
 0x262   :  { %2849 = vperm.xlu1 %4451, %v2588_v41   ;;  %v2444_v29 = vsel %vm242_vm0, %v2152_v27, 0.0  ;;  %v4292_v36 = vpop.f32.mrb[104].mxu0  ;;  %v2233_v56 = vpop.xlane.xlu1 %2232 }
 0x263   :  { %v5327_v48 = vpop.f32.mrb[84].mxu1  ;;  %v2438_v42 = vsel %vm242_vm0, %v2150_v30, 0.0  ;;  %v894_v37 = vadd.f32 %v5108_v35, %v4292_v36  ;;  %v885_v47 = vpop.f32.mrb[105].mxu0  ;;  %v2597_v57 = vadd.f32 %v5318_v38, %v2233_v56 }
 0x264   :  { %v5329_v50 = vpop.f32.mrb[85].mxu1  ;;  %v886_v41 = vadd.f32 %v5108_v35, %v885_v47  ;;  %v4293_v43 = vpop.f32.mrb[106].mxu0  ;;  %v1772_v12 = vadd.f32 %v5350_v1, %v5327_v48 }
 0x265   :  { %v5345_v0 = vpop.f32.mrb[86].mxu1  ;;  %v1086_v44 = vmax.f32 %v894_v37, 0.0  ;;  %v897_v45 = vadd.f32 %v5108_v35, %v4293_v43  ;;  %v888_v46 = vpop.f32.mrb[107].mxu0  ;;  %v1764_v17 = vadd.f32 %v5350_v1, %v5329_v50 }
 0x266   :  { %v5356_v5 = vpop.f32.mrb[87].mxu1  ;;  %v1084_v16 = vmax.f32 %v886_v41, 0.0  ;;  %v889_v49 = vadd.f32 %v5108_v35, %v888_v46  ;;  %v2227_v58 = vpop.xlane.xlu1 %2226  ;;  %v2024_v15 = vmax.f32 %v1772_v12, 0.0  ;;  %v2593_v12 = vadd.f32 %v5318_v38, %v5384_v32 }
 0x267   :  { %v1087_v52 = vmax.f32 %v897_v45, 0.0  ;;  %v2022_v22 = vmax.f32 %v1764_v17, 0.0 }
 0x268   :  { %v1085_v53 = vmax.f32 %v889_v49, 0.0  ;;  %v2156_v23 = vmul.f32 %v5364_v9, %v2024_v15 }
 0x269   :  { %v1161_v54 = vpack.c.bf16 %v1087_v52, %v1086_v44  ;;  %v2154_v27 = vmul.f32 %v5364_v9, %v2022_v22 }
 0x26a   :  { %v1160_v55 = vpack.c.bf16 %v1085_v53, %v1084_v16  ;;  %v2456_v48 = vsel %vm242_vm0, %v2156_v23, 0.0  ;;  %v2245_v52 = vpop.xlane.xlu1 %2244 }
 0x26b   :  { %v5371_v18 = vpop.f32.mrb[88].mxu1  ;;  %v2450_v50 = vsel %vm242_vm0, %v2154_v27, 0.0  ;;  %v2601_v53 = vadd.f32 %v5318_v38, %v2245_v52  ;;  %v2591_v52 = vadd.f32 %v5318_v38, %v5390_v51 }
 0x26c   :  { %v5373_v19 = vpop.f32.mrb[89].mxu1  ;;  %4426 = vmatprep.mubr.msk.bf16.mxu1 %vm1200_vm1, %v1160_v55  ;;  %v1743_v55 = vadd.f32 %v5350_v1, %v5311_v33  ;;  %v1788_v24 = vadd.f32 %v5350_v1, %v5371_v18 }
 0x26d   :  { %4427 = vmatmul.mubr.msk.bf16.gmra.mrb[104].mxu1 %vm1200_vm1, %v1161_v54  ;;  %v5414_v8 = vpop.f32.mrb[90].mxu1 }
 0x26e   :  { %2843 = vperm.xlu0 %4452, %v2586_v60   ;;  %v2595_v60 = vadd.f32 %v5318_v38, %v2227_v58  ;;  %v5416_v10 = vpop.f32.mrb[91].mxu1  ;;  %v2239_v54 = vpop.xlane.xlu1 %2238  ;;  %v159_v58 = vld [vmem:[%s6614_s0 + $0x3e8] sm:$0xff] }
 0x26f   :  { %v2599_v56 = vadd.f32 %v5318_v38, %v2239_v54 }
 0x286   :  { %2424 = vadd.xlane.f32.xlu1 %v2423_v13 }
 0x28d   :  { %2433 = vadd.xlane.f32.xlu0 %v2432_v21  ;;  %v2587_v21 = vadd.f32 %v5318_v38, %v2203_v11  ;;  %v1780_v11 = vadd.f32 %v5350_v1, %v5373_v19  ;;  %v5480_v19 = vld [vmem:[%s6616_s3] ss:$0 sm:$0xff] }
 0x28f   :  { %v2026_v17 = vmax.f32 %v1780_v11, 0.0 }
 0x291   :  { %2427 = vadd.xlane.f32.xlu0 %v2426_v26  ;;  %v2212_v26 = vpop.xlane.xlu0 %2211  ;;  %v2158_v20 = vmul.f32 %v5364_v9, %v2026_v17 }
 0x292   :  { %v2590_v28 = vadd.f32 %v5318_v38, %v2212_v26 }
 0x293   :  { %v2462_v18 = vsel %vm242_vm0, %v2158_v20, 0.0 }
 0x295   :  { %2445 = vadd.xlane.f32.xlu0 %v2444_v29 }
 0x297   :  { %2852 = vperm.xlu1 %4451, %v2589_v31  }
 0x299   :  { %2439 = vadd.xlane.f32.xlu0 %v2438_v42 }
 0x2af   :  { %2876 = vperm.xlu0 %4452, %v2597_v57   ;;  %v2017_v57 = vmax.f32 %v1743_v55, 0.0 }
 0x2b1   :  { %v2149_v63 = vmul.f32 %v5364_v9, %v2017_v57 }
 0x2b3   :  { %2870 = vperm.xlu0 %4452, %v2595_v60   ;;  %v5420_v13 = vpop.f32.mrb[92].mxu1  ;;  %v2435_v2 = vsel %vm242_vm0, %v2149_v63, 0.0 }
 0x2b4   :  { %v5422_v14 = vpop.f32.mrb[93].mxu1  ;;  %v1804_v54 = vadd.f32 %v5350_v1, %v5420_v13 }
 0x2b5   :  { %v5452_v60 = vpop.f32.mrb[94].mxu1 }
 0x2b6   :  { %v5461_v3 = vpop.f32.mrb[95].mxu1 }
 0x2bb   :  { %2418 = vadd.xlane.f32.xlu1 %v2417_v7  ;;  %v2028_v7 = vmax.f32 %v1788_v24, 0.0 }
 0x2bd   :  { %v2160_v15 = vmul.f32 %v5364_v9, %v2028_v7 }
 0x2c6   :  { %v4296_v29 = vpop.f32.mrb[108].mxu0 }
 0x2c7   :  { %v910_v30 = vadd.f32 %v5108_v35, %v4296_v29  ;;  %v901_v31 = vpop.f32.mrb[109].mxu0 }
 0x2c8   :  { %v902_v42 = vadd.f32 %v5108_v35, %v901_v31  ;;  %v4297_v36 = vpop.f32.mrb[110].mxu0 }
 0x2c9   :  { %v1090_v37 = vmax.f32 %v910_v30, 0.0  ;;  %v913_v47 = vadd.f32 %v5108_v35, %v4297_v36  ;;  %v904_v41 = vpop.f32.mrb[111].mxu0 }
 0x2ca   :  { %v1088_v43 = vmax.f32 %v902_v42, 0.0  ;;  %v905_v44 = vadd.f32 %v5108_v35, %v904_v41  ;;  %v158_v35 = vld [vmem:[%s6614_s0 + $0x3e0] sm:$0xff] }
 0x2cb   :  { %v1091_v45 = vmax.f32 %v913_v47, 0.0  ;;  %v224_v33 = vpack.c.bf16 %v159_v58, %v158_v35  ;;  %v2257_v47 = vpop.xlane.xlu1 %2256  ;;  %v2032_v35 = vmax.f32 %v1804_v54, 0.0  ;;  %v1796_v58 = vadd.f32 %v5350_v1, %v5422_v14 }
 0x2cc   :  { %2846 = vperm.xlu1 %4451, %v2587_v21   ;;  %v1089_v46 = vmax.f32 %v905_v44, 0.0  ;;  %v2468_v21 = vsel %vm242_vm0, %v2160_v15, 0.0 }
 0x2cd   :  { %v1163_v16 = vpack.c.bf16 %v1091_v45, %v1090_v37  ;;  %4310 = vmatprep.mubr.msk.bf16.mxu0 %vm242_vm0, %v224_v33  ;;  %v1735_v37 = vadd.f32 %v5350_v1, %v5313_v34  ;;  %v2164_v33 = vmul.f32 %v5364_v9, %v2032_v35  ;;  %v2030_v61 = vmax.f32 %v1796_v58, 0.0 }
 0x2ce   :  { %v1162_v49 = vpack.c.bf16 %v1089_v46, %v1088_v43  ;;  %4311 = vmatmul.mubr.msk.bf16.gmra.mrb[124].mxu0 %vm242_vm0, %v225_v62  ;;  %v2605_v43 = vadd.f32 %v5318_v38, %v2257_v47 }
 0x2cf   :  { %v2015_v41 = vmax.f32 %v1735_v37, 0.0  ;;  %v2251_v44 = vpop.xlane.xlu1 %2250  ;;  %v2162_v13 = vmul.f32 %v5364_v9, %v2030_v61  ;;  %v2480_v62 = vsel %vm242_vm0, %v2164_v33, 0.0 }
 0x2d0   :  { %2861 = vperm.xlu1 %4451, %v2592_v25   ;;  %4430 = vmatprep.mubr.msk.bf16.mxu1 %vm1200_vm1, %v1162_v49  ;;  %v2603_v46 = vadd.f32 %v5318_v38, %v2251_v44  ;;  %v2230_v49 = vpop.xlane.xlu0 %2229 }
 0x2d1   :  { %4431 = vmatmul.mubr.msk.bf16.gmra.mrb[108].mxu1 %vm1200_vm1, %v1163_v16  ;;  %v2147_v45 = vmul.f32 %v5364_v9, %v2015_v41  ;;  %v2474_v63 = vsel %vm242_vm0, %v2162_v13, 0.0 }
 0x2d2   :  { %2457 = vadd.xlane.f32.xlu0 %v2456_v48 }
 0x2d3   :  { %v2429_v16 = vsel %vm242_vm0, %v2147_v45, 0.0 }
 0x2d4   :  { %2855 = vperm.xlu1 %4451, %v2590_v28   ;;  %v2224_v57 = vpop.xlane.xlu0 %2223 }
 0x2d5   :  { %v2594_v51 = vadd.f32 %v5318_v38, %v2224_v57 }
 0x2d6   :  { %2451 = vadd.xlane.f32.xlu0 %v2450_v50 }
 0x2ec   :  { %2888 = vperm.xlu0 %4452, %v2601_v53  }
 0x2f0   :  { %2882 = vperm.xlu0 %4452, %v2599_v56   ;;  %v5465_v4 = vpop.f32.mrb[96].mxu1  ;;  %v2596_v56 = vadd.f32 %v5318_v38, %v2230_v49 }
 0x2f1   :  { %v5467_v6 = vpop.f32.mrb[97].mxu1 }
 0x2f2   :  { %v5494_v34 = vpop.f32.mrb[98].mxu1  ;;  %v1812_v49 = vadd.f32 %v5350_v1, %v5467_v6 }
 0x2f3   :  { %v5498_v53 = vpop.f32.mrb[99].mxu1 }
 0x2f8   :  { %2436 = vadd.xlane.f32.xlu1 %v2435_v2 }
 0x303   :  { %v4300_v22 = vpop.f32.mrb[112].mxu0 }
 0x304   :  { %v926_v32 = vadd.f32 %v5480_v19, %v4300_v22  ;;  %v917_v23 = vpop.f32.mrb[113].mxu0 }
 0x305   :  { %v918_v25 = vadd.f32 %v5480_v19, %v917_v23  ;;  %v4301_v26 = vpop.f32.mrb[114].mxu0 }
 0x306   :  { %v1094_v48 = vmax.f32 %v926_v32, 0.0  ;;  %v929_v27 = vadd.f32 %v5480_v19, %v4301_v26  ;;  %v920_v28 = vpop.f32.mrb[115].mxu0  ;;  %v2269_v26 = vpop.xlane.xlu1 %2268 }
 0x307   :  { %v1092_v50 = vmax.f32 %v918_v25, 0.0  ;;  %v921_v29 = vadd.f32 %v5480_v19, %v920_v28  ;;  %v1759_v25 = vadd.f32 %v5350_v1, %v5320_v39  ;;  %v2242_v28 = vpop.xlane.xlu0 %2241 }
 0x308   :  { %v1095_v30 = vmax.f32 %v929_v27, 0.0  ;;  %v1751_v27 = vadd.f32 %v5350_v1, %v5322_v40  ;;  %v2600_v45 = vadd.f32 %v5318_v38, %v2242_v28 }
 0x309   :  { %2864 = vperm.xlu1 %4451, %v2593_v12   ;;  %v1093_v31 = vmax.f32 %v921_v29, 0.0 }
 0x30a   :  { %v1165_v42 = vpack.c.bf16 %v1095_v30, %v1094_v48  ;;  %v2021_v48 = vmax.f32 %v1759_v25, 0.0  ;;  %v2263_v29 = vpop.xlane.xlu1 %2262 }
 0x30b   :  { %v1164_v36 = vpack.c.bf16 %v1093_v31, %v1092_v50  ;;  %v2609_v50 = vadd.f32 %v5318_v38, %v2269_v26  ;;  %v2019_v31 = vmax.f32 %v1751_v27, 0.0  ;;  %v2236_v39 = vpop.xlane.xlu0 %2235 }
 0x30c   :  { %v2153_v30 = vmul.f32 %v5364_v9, %v2021_v48 }
 0x30d   :  { %4434 = vmatprep.mubr.msk.bf16.mxu1 %vm1200_vm1, %v1164_v36  ;;  %v2151_v36 = vmul.f32 %v5364_v9, %v2019_v31 }
 0x30e   :  { %4435 = vmatmul.mubr.msk.bf16.gmra.mrb[112].mxu1 %vm1200_vm1, %v1165_v42  ;;  %v2607_v42 = vadd.f32 %v5318_v38, %v2263_v29  ;;  %v2447_v37 = vsel %vm242_vm0, %v2153_v30, 0.0 }
 0x30f   :  { %2469 = vadd.xlane.f32.xlu0 %v2468_v21  ;;  %v2441_v47 = vsel %vm242_vm0, %v2151_v36, 0.0  ;;  %v2254_v35 = vpop.xlane.xlu0 %2253 }
 0x310   :  { %v2604_v36 = vadd.f32 %v5318_v38, %v2254_v35 }
 0x313   :  { %2463 = vadd.xlane.f32.xlu0 %v2462_v18 }
 0x31e   :  { %v4304_v2 = vpop.f32.mrb[116].mxu0 }
 0x31f   :  { %v942_v14 = vadd.f32 %v5480_v19, %v4304_v2  ;;  %v933_v24 = vpop.f32.mrb[117].mxu0 }
 0x320   :  { %v5502_v55 = vpop.f32.mrb[100].mxu1  ;;  %v934_v7 = vadd.f32 %v5480_v19, %v933_v24  ;;  %v4305_v11 = vpop.f32.mrb[118].mxu0 }
 0x321   :  { %v5507_v59 = vpop.f32.mrb[101].mxu1  ;;  %v1098_v12 = vmax.f32 %v942_v14, 0.0  ;;  %v945_v15 = vadd.f32 %v5480_v19, %v4305_v11  ;;  %v936_v17 = vpop.f32.mrb[119].mxu0  ;;  %v1836_v31 = vadd.f32 %v5350_v1, %v5502_v55 }
 0x322   :  { %v1096_v20 = vmax.f32 %v934_v7, 0.0  ;;  %v937_v21 = vadd.f32 %v5480_v19, %v936_v17  ;;  %v5530_v40 = vpop.f32.mrb[102].mxu1 }
 0x323   :  { %v1099_v18 = vmax.f32 %v945_v15, 0.0  ;;  %v5532_v41 = vpop.f32.mrb[103].mxu1 }
 0x324   :  { %v1097_v22 = vmax.f32 %v937_v21, 0.0  ;;  %v2281_v21 = vpop.xlane.xlu1 %2280 }
 0x325   :  { %v1167_v32 = vpack.c.bf16 %v1099_v18, %v1098_v12 }
 0x326   :  { %v1166_v23 = vpack.c.bf16 %v1097_v22, %v1096_v20  ;;  %v1775_v20 = vadd.f32 %v5350_v1, %v5345_v0  ;;  %v1767_v22 = vadd.f32 %v5350_v1, %v5356_v5 }
 0x328   :  { %4438 = vmatprep.mubr.msk.bf16.mxu1 %vm1200_vm1, %v1166_v23  ;;  %v2025_v18 = vmax.f32 %v1775_v20, 0.0  ;;  %v2613_v23 = vadd.f32 %v5318_v38, %v2281_v21  ;;  %v2275_v25 = vpop.xlane.xlu1 %2274  ;;  %v2023_v48 = vmax.f32 %v1767_v22, 0.0 }
 0x329   :  { %2900 = vperm.xlu0 %4452, %v2605_v43   ;;  %4439 = vmatmul.mubr.msk.bf16.gmra.mrb[116].mxu1 %vm1200_vm1, %v1167_v32  ;;  %v1820_v43 = vadd.f32 %v5350_v1, %v5465_v4  ;;  %v2611_v27 = vadd.f32 %v5318_v38, %v2275_v25 }
 0x32a   :  { %v2157_v26 = vmul.f32 %v5364_v9, %v2025_v18  ;;  %v2155_v28 = vmul.f32 %v5364_v9, %v2023_v48 }
 0x32c   :  { %v2459_v0 = vsel %vm242_vm0, %v2157_v26, 0.0  ;;  %v2453_v5 = vsel %vm242_vm0, %v2155_v28, 0.0 }
 0x32d   :  { %2430 = vadd.xlane.f32.xlu1 %v2429_v16  ;;  %2894 = vperm.xlu0 %4452, %v2603_v46   ;;  %v2036_v16 = vmax.f32 %v1820_v43, 0.0 }
 0x32f   :  { %v2168_v54 = vmul.f32 %v5364_v9, %v2036_v16 }
 0x331   :  { %v2492_v4 = vsel %vm242_vm0, %v2168_v54, 0.0 }
 0x33e   :  { %2858 = vperm.xlu1 %4451, %v2591_v52   ;;  %v2598_v52 = vadd.f32 %v5318_v38, %v2236_v39  ;;  %v2040_v39 = vmax.f32 %v1836_v31, 0.0 }
 0x340   :  { %v5536_v44 = vpop.f32.mrb[104].mxu1 }
 0x341   :  { %v5539_v46 = vpop.f32.mrb[105].mxu1  ;;  %v1852_v48 = vadd.f32 %v5350_v1, %v5536_v44 }
 0x342   :  { %2873 = vperm.xlu1 %4451, %v2596_v56   ;;  %v2034_v56 = vmax.f32 %v1812_v49, 0.0  ;;  %v5568_v29 = vpop.f32.mrb[106].mxu1  ;;  %v1844_v31 = vadd.f32 %v5350_v1, %v5539_v46  ;;  %v1807_v46 = vadd.f32 %v5350_v1, %v5452_v60 }
 0x343   :  { %v5570_v30 = vpop.f32.mrb[107].mxu1 }
 0x344   :  { %v2166_v57 = vmul.f32 %v5364_v9, %v2034_v56 }
 0x346   :  { %2867 = vperm.xlu1 %4451, %v2594_v51   ;;  %v2486_v58 = vsel %vm242_vm0, %v2166_v57, 0.0  ;;  %v4308_v51 = vpop.f32.mrb[120].mxu0 }
 0x347   :  { %v958_v33 = vadd.f32 %v5480_v19, %v4308_v51  ;;  %v949_v61 = vpop.f32.mrb[121].mxu0 }
 0x348   :  { %v950_v6 = vadd.f32 %v5480_v19, %v949_v61  ;;  %v4309_v13 = vpop.f32.mrb[122].mxu0 }
 0x349   :  { %v961_v2 = vadd.f32 %v5480_v19, %v4309_v13  ;;  %v952_v14 = vpop.f32.mrb[123].mxu0 }
 0x34a   :  { %v1100_v24 = vmax.f32 %v950_v6, 0.0  ;;  %v953_v7 = vadd.f32 %v5480_v19, %v952_v14 }
 0x34b   :  { %v1103_v11 = vmax.f32 %v961_v2, 0.0 }
 0x34c   :  { %2481 = vadd.xlane.f32.xlu0 %v2480_v62  ;;  %v2248_v62 = vpop.xlane.xlu0 %2247  ;;  %v1101_v12 = vmax.f32 %v953_v7, 0.0  ;;  %v2293_v7 = vpop.xlane.xlu1 %2292 }
 0x34d   :  { %v2602_v43 = vadd.f32 %v5318_v38, %v2248_v62 }
 0x34e   :  { %v1168_v17 = vpack.c.bf16 %v1101_v12, %v1100_v24  ;;  %v1791_v24 = vadd.f32 %v5350_v1, %v5414_v8  ;;  %v1783_v12 = vadd.f32 %v5350_v1, %v5416_v10 }
 0x350   :  { %2475 = vadd.xlane.f32.xlu0 %v2474_v63  ;;  %v1102_v63 = vmax.f32 %v958_v33, 0.0  ;;  %4442 = vmatprep.mubr.msk.bf16.mxu1 %vm1200_vm1, %v1168_v17  ;;  %v5558_v32 = vpop.xlane.xlu0 %2265  ;;  %v2287_v17 = vpop.xlane.xlu1 %2286  ;;  %v2027_v21 = vmax.f32 %v1783_v12, 0.0 }
 0x351   :  { %v2615_v18 = vadd.f32 %v5318_v38, %v2287_v17  ;;  %v2608_v28 = vadd.f32 %v5318_v38, %v5558_v32 }
 0x352   :  { %v1169_v15 = vpack.c.bf16 %v1103_v11, %v1102_v63  ;;  %v2029_v11 = vmax.f32 %v1791_v24, 0.0  ;;  %v2159_v22 = vmul.f32 %v5364_v9, %v2027_v21 }
 0x354   :  { %4443 = vmatmul.mubr.msk.bf16.gmra.mrb[120].mxu1 %vm1200_vm1, %v1169_v15  ;;  %v2161_v20 = vmul.f32 %v5364_v9, %v2029_v11  ;;  %v2465_v10 = vsel %vm242_vm0, %v2159_v22, 0.0 }
 0x356   :  { %v2471_v8 = vsel %vm242_vm0, %v2161_v20, 0.0 }
 0x366   :  { %2912 = vperm.xlu0 %4452, %v2609_v50   ;;  %v5565_v50 = vpop.xlane.xlu0 %2259 }
 0x36a   :  { %2448 = vadd.xlane.f32.xlu1 %v2447_v37  ;;  %2906 = vperm.xlu0 %4452, %v2607_v42  }
 0x36e   :  { %2442 = vadd.xlane.f32.xlu1 %v2441_v47  ;;  %v1828_v47 = vadd.f32 %v5350_v1, %v5507_v59 }
 0x370   :  { %v2038_v16 = vmax.f32 %v1828_v47, 0.0  ;;  %v2042_v47 = vmax.f32 %v1844_v31, 0.0 }
 0x372   :  { %v2170_v49 = vmul.f32 %v5364_v9, %v2038_v16  ;;  %v2174_v44 = vmul.f32 %v5364_v9, %v2042_v47 }
 0x374   :  { %v2498_v54 = vsel %vm242_vm0, %v2170_v49, 0.0  ;;  %v2510_v32 = vsel %vm242_vm0, %v2174_v44, 0.0  ;;  %v2033_v49 = vmax.f32 %v1807_v46, 0.0 }
 0x37f   :  { %2885 = vperm.xlu1 %4451, %v2600_v45   ;;  %v2172_v45 = vmul.f32 %v5364_v9, %v2040_v39 }
 0x381   :  { %v2504_v55 = vsel %vm242_vm0, %v2172_v45, 0.0 }
 0x383   :  { %2879 = vperm.xlu1 %4451, %v2598_v52   ;;  %v5585_v52 = vpop.xlane.xlu0 %2277 }
 0x389   :  { %2493 = vadd.xlane.f32.xlu0 %v2492_v4 }
 0x38d   :  { %2487 = vadd.xlane.f32.xlu0 %v2486_v58  ;;  %v5590_v58 = vpop.xlane.xlu0 %2271 }
 0x391   :  { %v5600_v15 = vpop.xlane.xlu0 %2289 }
 0x3a1   :  { %v4312_v56 = vpop.f32.mrb[124].mxu0 }
 0x3a2   :  { %v974_v57 = vadd.f32 %v5480_v19, %v4312_v56  ;;  %v965_v59 = vpop.f32.mrb[125].mxu0 }
 0x3a3   :  { %2924 = vperm.xlu0 %4452, %v2613_v23   ;;  %v966_v4 = vadd.f32 %v5480_v19, %v965_v59  ;;  %v4313_v35 = vpop.f32.mrb[126].mxu0  ;;  %v5607_v23 = vpop.xlane.xlu0 %2283  ;;  %v2165_v59 = vmul.f32 %v5364_v9, %v2033_v49 }
 0x3a4   :  { %v5574_v42 = vpop.f32.mrb[108].mxu1  ;;  %v1106_v51 = vmax.f32 %v974_v57, 0.0  ;;  %v977_v33 = vadd.f32 %v5480_v19, %v4313_v35  ;;  %v968_v61 = vpop.f32.mrb[127].mxu0 }
 0x3a5   :  { %v5577_v37 = vpop.f32.mrb[109].mxu1  ;;  %v1104_v6 = vmax.f32 %v966_v4, 0.0  ;;  %v969_v13 = vadd.f32 %v5480_v19, %v968_v61  ;;  %v2617_v19 = vadd.f32 %v5318_v38, %v2293_v7  ;;  %v2483_v60 = vsel %vm242_vm0, %v2165_v59, 0.0 }
 0x3a6   :  { %v1107_v62 = vmax.f32 %v977_v33, 0.0  ;;  %v5610_v25 = vpop.f32.mrb[110].mxu1  ;;  %v1860_v24 = vadd.f32 %v5350_v1, %v5577_v37  ;;  %v2610_v7 = vadd.f32 %v5318_v38, %v5590_v58  ;;  %v1823_v37 = vadd.f32 %v5350_v1, %v5494_v34 }
 0x3a7   :  { %2460 = vadd.xlane.f32.xlu1 %v2459_v0  ;;  %2918 = vperm.xlu0 %4452, %v2611_v27   ;;  %v1105_v63 = vmax.f32 %v969_v13, 0.0  ;;  %v5612_v26 = vpop.f32.mrb[111].mxu1  ;;  %v5629_v45 = vpop.xlane.xlu0 %2301  ;;  %v1868_v13 = vadd.f32 %v5350_v1, %v5574_v42 }
 0x3a8   :  { %v1171_v2 = vpack.c.bf16 %v1107_v62, %v1106_v51  ;;  %v2046_v12 = vmax.f32 %v1860_v24, 0.0  ;;  %v2037_v21 = vmax.f32 %v1823_v37, 0.0 }
 0x3a9   :  { %v1170_v14 = vpack.c.bf16 %v1105_v63, %v1104_v6  ;;  %v2612_v63 = vadd.f32 %v5318_v38, %v5585_v52 }
 0x3aa   :  { %v2178_v42 = vmul.f32 %v5364_v9, %v2046_v12 }
 0x3ab   :  { %2454 = vadd.xlane.f32.xlu1 %v2453_v5  ;;  %4446 = vmatprep.mubr.msk.bf16.mxu1 %vm1200_vm1, %v1170_v14  ;;  %v2044_v5 = vmax.f32 %v1852_v48, 0.0  ;;  %v5632_v16 = vpop.xlane.xlu0 %2295  ;;  %v2048_v14 = vmax.f32 %v1868_v13, 0.0  ;;  %v2169_v48 = vmul.f32 %v5364_v9, %v2037_v21 }
 0x3ac   :  { %4447 = vmatmul.mubr.msk.bf16.gmra.mrb[124].mxu1 %vm1200_vm1, %v1171_v2  ;;  %v2522_v52 = vsel %vm242_vm0, %v2178_v42, 0.0  ;;  %vm3335_vm1 = vcmask 1048512  }
 0x3ad   :  { %v2176_v39 = vmul.f32 %v5364_v9, %v2044_v5  ;;  %v2180_v11 = vmul.f32 %v5364_v9, %v2048_v14  ;;  %v2495_v34 = vsel %vm242_vm0, %v2169_v48, 0.0 }
 0x3af   :  { %v5639_v56 = vpop.xlane.xlu0 %2313 }
 0x3b3   :  { %v5645_v33 = vpop.xlane.xlu0 %2307 }
 0x3b7   :  { %v5667_v17 = vpop.xlane.xlu0 %2325 }
 0x3bb   :  { %v5670_v20 = vpop.xlane.xlu0 %2319 }
 0x3bc   :  { %2897 = vperm.xlu1 %4451, %v2604_v36   ;;  %v2606_v36 = vadd.f32 %v5318_v38, %v5565_v50  ;;  %v2305_v50 = vpop.xlane.xlu1 %2304 }
 0x3c0   :  { %2891 = vperm.xlu1 %4451, %v2602_v43   ;;  %v2516_v43 = vsel %vm242_vm0, %v2176_v39, 0.0  ;;  %v2299_v57 = vpop.xlane.xlu1 %2298 }
 0x3c1   :  { %v2619_v35 = vadd.f32 %v5318_v38, %v2299_v57 }
 0x3c4   :  { %v2317_v58 = vpop.xlane.xlu1 %2316 }
 0x3c5   :  { %v2625_v22 = vadd.f32 %v5318_v38, %v2317_v58 }
 0x3c6   :  { %2505 = vadd.xlane.f32.xlu0 %v2504_v55  ;;  %v1799_v55 = vadd.f32 %v5350_v1, %v5461_v3 }
 0x3c8   :  { %v2031_v4 = vmax.f32 %v1799_v55, 0.0  ;;  %v2614_v55 = vadd.f32 %v5318_v38, %v5607_v23  ;;  %v1839_v23 = vadd.f32 %v5350_v1, %v5530_v40 }
 0x3ca   :  { %2499 = vadd.xlane.f32.xlu0 %v2498_v54  ;;  %v2621_v54 = vadd.f32 %v5318_v38, %v2305_v50  ;;  %v2163_v51 = vmul.f32 %v5364_v9, %v2031_v4  ;;  %v2041_v13 = vmax.f32 %v1839_v23, 0.0  ;;  %v5777_v23 = vld [vmem:[%s6616_s3 + $0x3] ss:$0 sm:$0xff] }
 0x3cc   :  { %v2477_v3 = vsel %vm242_vm0, %v2163_v51, 0.0 }
 0x3e0   :  { %2936 = vperm.xlu0 %4452, %v2617_v19   ;;  %v2528_v19 = vsel %vm242_vm0, %v2180_v11, 0.0  ;;  %v2173_v11 = vmul.f32 %v5364_v9, %v2041_v13 }
 0x3e1   :  { %v5616_v27 = vpop.f32.mrb[112].mxu1 }
 0x3e2   :  { %v5620_v0 = vpop.f32.mrb[113].mxu1  ;;  %v1884_v44 = vadd.f32 %v5350_v1, %v5616_v27  ;;  %v2507_v40 = vsel %vm242_vm0, %v2173_v11, 0.0 }
 0x3e3   :  { %v5648_v61 = vpop.f32.mrb[114].mxu1  ;;  %v1876_v49 = vadd.f32 %v5350_v1, %v5620_v0 }
 0x3e4   :  { %2472 = vadd.xlane.f32.xlu1 %v2471_v8  ;;  %2930 = vperm.xlu0 %4452, %v2615_v18   ;;  %v5650_v6 = vpop.f32.mrb[115].mxu1  ;;  %v1815_v18 = vadd.f32 %v5350_v1, %v5498_v53  ;;  %v5677_v8 = vpop.xlane.xlu0 %2337  ;;  %v2052_v50 = vmax.f32 %v1884_v44, 0.0  ;;  %v2618_v44 = vadd.f32 %v5318_v38, %v5632_v16 }
 0x3e5   :  { %v2050_v57 = vmax.f32 %v1876_v49, 0.0 }
 0x3e7   :  { %v2182_v27 = vmul.f32 %v5364_v9, %v2050_v57 }
 0x3e8   :  { %2466 = vadd.xlane.f32.xlu1 %v2465_v10  ;;  %v2311_v10 = vpop.xlane.xlu1 %2310 }
 0x3e9   :  { %v2623_v5 = vadd.f32 %v5318_v38, %v2311_v10 }
 0x3f9   :  { %2909 = vperm.xlu1 %4451, %v2608_v28   ;;  %v2035_v28 = vmax.f32 %v1815_v18, 0.0 }
 0x3fb   :  { %v2167_v31 = vmul.f32 %v5364_v9, %v2035_v28 }
 0x3fc   :  { %v5654_v62 = vpop.f32.mrb[116].mxu1 }
 0x3fd   :  { %2903 = vperm.xlu1 %4451, %v2606_v36   ;;  %v5658_v2 = vpop.f32.mrb[117].mxu1  ;;  %v5683_v36 = vpop.xlane.xlu0 %2331  ;;  %v2489_v53 = vsel %vm242_vm0, %v2167_v31, 0.0  ;;  %v1900_v10 = vadd.f32 %v5350_v1, %v5654_v62 }
 0x3fe   :  { %v5686_v39 = vpop.f32.mrb[118].mxu1 }
 0x3ff   :  { %v5688_v47 = vpop.f32.mrb[119].mxu1 }
 0x401   :  { %v5705_v4 = vpop.xlane.xlu0 %2349 }
 0x403   :  { %2517 = vadd.xlane.f32.xlu0 %v2516_v43 }
 0x405   :  { %v5708_v51 = vpop.xlane.xlu0 %2343 }
 0x407   :  { %2511 = vadd.xlane.f32.xlu0 %v2510_v32  ;;  %v2616_v32 = vadd.f32 %v5318_v38, %v5600_v15  ;;  %v2329_v15 = vpop.xlane.xlu1 %2328 }
 0x408   :  { %v2629_v14 = vadd.f32 %v5318_v38, %v2329_v15 }
 0x40b   :  { %v2323_v0 = vpop.xlane.xlu1 %2322 }
 0x40c   :  { %v2627_v42 = vadd.f32 %v5318_v38, %v2323_v0 }
 0x41d   :  { %2948 = vperm.xlu0 %4452, %v2621_v54   ;;  %v2184_v54 = vmul.f32 %v5364_v9, %v2052_v50 }
 0x41f   :  { %v2540_v59 = vsel %vm242_vm0, %v2184_v54, 0.0 }
 0x421   :  { %2484 = vadd.xlane.f32.xlu1 %v2483_v60  ;;  %2942 = vperm.xlu0 %4452, %v2619_v35   ;;  %v2534_v35 = vsel %vm242_vm0, %v2182_v27, 0.0  ;;  %v2341_v60 = vpop.xlane.xlu1 %2340 }
 0x422   :  { %v2633_v13 = vadd.f32 %v5777_v23, %v2341_v60 }
 0x425   :  { %2478 = vadd.xlane.f32.xlu1 %v2477_v3  ;;  %v2335_v3 = vpop.xlane.xlu1 %2334 }
 0x427   :  { %v5692_v43 = vpop.f32.mrb[120].mxu1 }
 0x428   :  { %v5696_v46 = vpop.f32.mrb[121].mxu1 }
 0x429   :  { %v5715_v24 = vpop.xlane.xlu1 %2352  ;;  %v5732_v18 = vpop.f32.mrb[122].mxu1 }
 0x436   :  { %2921 = vperm.xlu1 %4451, %v2612_v63   ;;  %v1831_v63 = vadd.f32 %v5350_v1, %v5532_v41 }
 0x438   :  { %v2039_v12 = vmax.f32 %v1831_v63, 0.0 }
 0x43a   :  { %2915 = vperm.xlu1 %4451, %v2610_v7   ;;  %v5717_v7 = vpop.xlane.xlu0 %2361 }
 0x43e   :  { %v5725_v37 = vpop.xlane.xlu0 %2355 }
 0x440   :  { %2529 = vadd.xlane.f32.xlu0 %v2528_v19  ;;  %v2171_v19 = vmul.f32 %v5364_v9, %v2039_v12 }
 0x442   :  { %v2501_v41 = vsel %vm242_vm0, %v2171_v19, 0.0 }
 0x444   :  { %2523 = vadd.xlane.f32.xlu0 %v2522_v52  ;;  %v5723_v52 = vpop.xlane.xlu1 %2346 }
 0x448   :  { %v5728_v58 = vpop.xlane.xlu1 %2364 }
 0x44c   :  { %v5730_v21 = vpop.xlane.xlu1 %2358 }
 0x450   :  { %v5740_v28 = vpop.xlane.xlu1 %2376 }
 0x45a   :  { %2960 = vperm.xlu0 %4452, %v2625_v22   ;;  %v5734_v22 = vpop.f32.mrb[123].mxu1 }
 0x45e   :  { %2496 = vadd.xlane.f32.xlu1 %v2495_v34  ;;  %2954 = vperm.xlu0 %4452, %v2623_v5   ;;  %v2620_v5 = vadd.f32 %v5318_v38, %v5629_v45  ;;  %v2056_v34 = vmax.f32 %v1900_v10, 0.0 }
 0x460   :  { %v2188_v62 = vmul.f32 %v5364_v9, %v2056_v34  ;;  %v1916_v34 = vadd.f32 %v5350_v1, %v5692_v43 }
 0x462   :  { %2490 = vadd.xlane.f32.xlu1 %v2489_v53  ;;  %v1892_v53 = vadd.f32 %v5350_v1, %v5658_v2  ;;  %v2552_v45 = vsel %vm242_vm0, %v2188_v62, 0.0 }
 0x464   :  { %v2054_v50 = vmax.f32 %v1892_v53, 0.0  ;;  %v2624_v53 = vadd.f32 %v5777_v23, %v5639_v56 }
 0x466   :  { %v2186_v49 = vmul.f32 %v5364_v9, %v2054_v50  ;;  %v2060_v50 = vmax.f32 %v1916_v34, 0.0 }
 0x468   :  { %v2546_v2 = vsel %vm242_vm0, %v2186_v49, 0.0  ;;  %v5812_v49 = vld [vmem:[%s6616_s3 + $0x1] ss:$0 sm:$0xff]  ;;  %v2192_v43 = vmul.f32 %v5364_v9, %v2060_v50 }
 0x473   :  { %2933 = vperm.xlu1 %4451, %v2616_v32   ;;  %v5750_v32 = vpop.xlane.xlu1 %2370 }
 0x477   :  { %2927 = vperm.xlu1 %4451, %v2614_v55   ;;  %v5755_v55 = vpop.xlane.xlu0 %2373  ;;  %v5757_v54 = vpop.xlane.xlu1 %2388 }
 0x47b   :  { %v5760_v57 = vpop.xlane.xlu0 %2367  ;;  %v5762_v38 = vpop.xlane.xlu1 %2382 }
 0x47d   :  { %2541 = vadd.xlane.f32.xlu0 %v2540_v59  ;;  %v1855_v59 = vadd.f32 %v5350_v1, %v5568_v29  ;;  %v2631_v29 = vadd.f32 %v5777_v23, %v2335_v3 }
 0x47f   :  { %v5738_v48 = vpop.f32.mrb[124].mxu1  ;;  %v5764_v16 = vpop.xlane.xlu1 %2400  ;;  %v2045_v15 = vmax.f32 %v1855_v59, 0.0 }
 0x480   :  { %v5744_v31 = vpop.f32.mrb[125].mxu1  ;;  %v5780_v63 = vpop.xlane.xlu0 %2385 }
 0x481   :  { %2535 = vadd.xlane.f32.xlu0 %v2534_v35  ;;  %v1847_v35 = vadd.f32 %v5350_v1, %v5570_v30  ;;  %v2622_v1 = vadd.f32 %v5777_v23, %v5645_v33 }
 0x483   :  { %v5766_v27 = vpop.xlane.xlu1 %2394  ;;  %v2043_v11 = vmax.f32 %v1847_v35, 0.0  ;;  %v2564_v35 = vsel %vm242_vm0, %v2192_v43, 0.0  ;;  %v5855_v43 = vld [vmem:[%s6616_s3 + $0x2] ss:$0 sm:$0xff] }
 0x484   :  { %v5788_v19 = vpop.xlane.xlu0 %2379 }
 0x485   :  { %v2175_v30 = vmul.f32 %v5364_v9, %v2043_v11 }
 0x487   :  { %v5772_v0 = vpop.xlane.xlu1 %2412  ;;  %v2513_v60 = vsel %vm242_vm0, %v2175_v30, 0.0 }
 0x48b   :  { %v5784_v12 = vpop.xlane.xlu1 %2406 }
 0x497   :  { %2972 = vperm.xlu0 %4452, %v2629_v14   ;;  %v2177_v14 = vmul.f32 %v5364_v9, %v2045_v15 }
 0x49b   :  { %2508 = vadd.xlane.f32.xlu1 %v2507_v40  ;;  %2966 = vperm.xlu0 %4452, %v2627_v42   ;;  %v2519_v42 = vsel %vm242_vm0, %v2177_v14, 0.0  ;;  %v5791_v40 = vpop.permute.xlu1 %2849 }
 0x49c   :  { %6624 = vst [vmem:[#allocation2_spill] sm:$0xff] %v5791_v40 }
 0x49f   :  { %2502 = vadd.xlane.f32.xlu1 %v2501_v41  ;;  %v5793_v41 = vpop.xlane.xlu0 %2397  ;;  %v5795_v10 = vpop.xlane.xlu1 %2424 }
 0x4a3   :  { %v5797_v3 = vpop.xlane.xlu0 %2391 }
 0x4a7   :  { %v5807_v62 = vpop.xlane.xlu0 %2409 }
 0x4ab   :  { %v5821_v59 = vpop.xlane.xlu0 %2403 }
 0x4b0   :  { %2945 = vperm.xlu1 %4451, %v2620_v5   ;;  %v5799_v5 = vpop.permute.xlu1 %2852 }
 0x4b1   :  { %6625 = vst [vmem:[#allocation3_spill] sm:$0xff] %v5799_v5 }
 0x4b4   :  { %2939 = vperm.xlu1 %4451, %v2618_v44   ;;  %v5805_v44 = vpop.xlane.xlu1 %2418 }
 0x4ba   :  { %2553 = vadd.xlane.f32.xlu0 %v2552_v45  ;;  %v1908_v45 = vadd.f32 %v5812_v49, %v5696_v46 }
 0x4bc   :  { %v2058_v56 = vmax.f32 %v1908_v45, 0.0  ;;  %v1863_v45 = vadd.f32 %v5812_v49, %v5612_v26 }
 0x4be   :  { %2547 = vadd.xlane.f32.xlu0 %v2546_v2  ;;  %v5819_v2 = vpop.permute.xlu1 %2846  ;;  %v2190_v15 = vmul.f32 %v5364_v9, %v2058_v56 }
 0x4bf   :  { %6626 = vst [vmem:[#allocation4_spill] sm:$0xff] %v5819_v2 }
 0x4c0   :  { %v2558_v46 = vsel %vm242_vm0, %v2190_v15, 0.0  ;;  %v2047_v15 = vmax.f32 %v1863_v45, 0.0 }
 0x4c2   :  { %v5827_v14 = vpop.permute.xlu1 %2861  ;;  %v2179_v26 = vmul.f32 %v5855_v43, %v2047_v15 }
 0x4c3   :  { %6627 = vst [vmem:[#allocation5_spill] sm:$0xff] %v5827_v14 }
 0x4c6   :  { %v5832_v11 = vpop.permute.xlu1 %2855 }
 0x4c7   :  { %6628 = vst [vmem:[#allocation6_spill] sm:$0xff] %v5832_v11 }
 0x4d4   :  { %2984 = vperm.xlu0 %4452, %v2633_v13   ;;  %v5825_v13 = vpop.xlane.xlu0 %2421 }
 0x4d8   :  { %2520 = vadd.xlane.f32.xlu1 %v2519_v42  ;;  %2978 = vperm.xlu0 %4452, %v2631_v29   ;;  %v5830_v33 = vpop.xlane.xlu0 %2415  ;;  %v5834_v29 = vpop.xlane.xlu1 %2436 }
 0x4dc   :  { %2514 = vadd.xlane.f32.xlu1 %v2513_v60  ;;  %v5836_v30 = vpop.permute.xlu0 %2843  ;;  %v5840_v9 = vpop.permute.xlu1 %2864  ;;  %v1871_v60 = vadd.f32 %v5812_v49, %v5610_v25 }
 0x4dd   :  { %6629 = vst [vmem:[#allocation7_spill] sm:$0xff] %v5836_v30  ;;  %6630 = vst [vmem:[#allocation8_spill] sm:$0xff] %v5840_v9 }
 0x4de   :  { %v2049_v50 = vmax.f32 %v1871_v60, 0.0 }
 0x4e0   :  { %v5838_v42 = vpop.xlane.xlu0 %2433  ;;  %v5844_v34 = vpop.xlane.xlu1 %2430  ;;  %v2181_v56 = vmul.f32 %v5855_v43, %v2049_v50  ;;  %v2525_v50 = vsel %vm242_vm0, %v2179_v26, 0.0 }
 0x4e4   :  { %v5858_v25 = vpop.permute.xlu1 %2858 }
 0x4e5   :  { %6631 = vst [vmem:[#allocation9_spill] sm:$0xff] %v5858_v25 }
 0x4e8   :  { %v5866_v60 = vpop.permute.xlu1 %2873 }
 0x4e9   :  { %6632 = vst [vmem:[#allocation10_spill] sm:$0xff] %v5866_v60 }
 0x4ec   :  { %v5871_v45 = vpop.permute.xlu1 %2867 }
 0x4ed   :  { %2957 = vperm.xlu1 %4451, %v2624_v53   ;;  %v5846_v53 = vpop.xlane.xlu0 %2427  ;;  %6633 = vst [vmem:[#allocation11_spill] sm:$0xff] %v5871_v45 }
 0x4f0   :  { %v5875_v14 = vpop.xlane.xlu1 %2448 }
 0x4f1   :  { %2951 = vperm.xlu1 %4451, %v2622_v1   ;;  %v2637_v1 = vadd.f32 %v5777_v23, %v5715_v24  ;;  %v2531_v24 = vsel %vm242_vm0, %v2181_v56, 0.0  ;;  %v1932_v56 = vadd.f32 %v5812_v49, %v5738_v48 }
 0x4f3   :  { %v2064_v26 = vmax.f32 %v1932_v56, 0.0 }
 0x4f4   :  { %v5881_v15 = vpop.xlane.xlu1 %2442 }
 0x4f7   :  { %2565 = vadd.xlane.f32.xlu0 %v2564_v35  ;;  %v5860_v35 = vpop.xlane.xlu0 %2445 }
 0x4f8   :  { %v5891_v60 = vpop.permute.xlu1 %2885 }
 0x4f9   :  { %6636 = vst [vmem:[#allocation14_spill] sm:$0xff] %v5891_v60  ;;  %v2641_v60 = vadd.f32 %v5777_v23, %v5728_v58  ;;  %v2645_v58 = vadd.f32 %v5777_v23, %v5740_v28  ;;  %v2647_v28 = vadd.f32 %v5777_v23, %v5762_v38  ;;  %v2630_v38 = vadd.f32 %v5777_v23, %v5683_v36 }
 0x4fb   :  { %2559 = vadd.xlane.f32.xlu0 %v2558_v46  ;;  %v2635_v46 = vadd.f32 %v5777_v23, %v5723_v52  ;;  %v5868_v9 = vpop.xlane.xlu0 %2439 }
 0x4fc   :  { %v5898_v56 = vpop.permute.xlu1 %2879 }
 0x4fd   :  { %6637 = vst [vmem:[#allocation15_spill] sm:$0xff] %v5898_v56 }
 0x511   :  { %2996 = vperm.xlu0 %4452, %v2637_v1   ;;  %v5873_v1 = vpop.permute.xlu0 %2876 }
 0x512   :  { %6634 = vst [vmem:[#allocation12_spill] sm:$0xff] %v5873_v1  ;;  %v2626_v1 = vadd.f32 %v5777_v23, %v5670_v20  ;;  %v5903_v20 = vpop.xlane.xlu1 %2460 }
 0x515   :  { %2532 = vadd.xlane.f32.xlu1 %v2531_v24  ;;  %2990 = vperm.xlu0 %4452, %v2635_v46   ;;  %v5877_v52 = vpop.permute.xlu0 %2870  ;;  %v2628_v46 = vadd.f32 %v5777_v23, %v5667_v17 }
 0x516   :  { %6635 = vst [vmem:[#allocation13_spill] sm:$0xff] %v5877_v52  ;;  %v2196_v52 = vmul.f32 %v5855_v43, %v2064_v26  ;;  %v5907_v26 = vpop.xlane.xlu1 %2454 }
 0x518   :  { %v2576_v25 = vsel %vm242_vm0, %v2196_v52, 0.0  ;;  %v1887_v52 = vadd.f32 %v5812_v49, %v5648_v61  ;;  %v2639_v61 = vadd.f32 %v5777_v23, %v5730_v21  ;;  %v2643_v21 = vadd.f32 %v5777_v23, %v5750_v32 }
 0x519   :  { %2526 = vadd.xlane.f32.xlu1 %v2525_v50  ;;  %v5885_v24 = vpop.xlane.xlu0 %2457  ;;  %v1924_v50 = vadd.f32 %v5812_v49, %v5744_v31  ;;  %v2653_v32 = vadd.f32 %v5777_v23, %v5764_v16  ;;  %v2657_v16 = vadd.f32 %v5777_v23, %v5772_v0  ;;  %v2659_v0 = vadd.f32 %v5777_v23, %v5805_v44 }
 0x51a   :  { %v2669_v44 = vadd.f32 %v5777_v23, %v5875_v14  ;;  %v2673_v14 = vadd.f32 %v5777_v23, %v5903_v20 }
 0x51b   :  { %v2062_v48 = vmax.f32 %v1924_v50, 0.0 }
 0x51d   :  { %v5894_v45 = vpop.xlane.xlu0 %2451  ;;  %v2194_v17 = vmul.f32 %v5855_v43, %v2062_v48 }
 0x51f   :  { %v2570_v31 = vsel %vm242_vm0, %v2194_v17, 0.0  ;;  %v1879_v17 = vadd.f32 %v5812_v49, %v5650_v6 }
 0x521   :  { %v5900_v5 = vpop.permute.xlu0 %2888  ;;  %v2051_v11 = vmax.f32 %v1879_v17, 0.0 }
 0x522   :  { %6638 = vst [vmem:[#allocation16_spill] sm:$0xff] %v5900_v5 }
 0x52a   :  { %2969 = vperm.xlu1 %4451, %v2628_v46   ;;  %v5905_v46 = vpop.permute.xlu0 %2882 }
 0x52b   :  { %6639 = vst [vmem:[#allocation17_spill] sm:$0xff] %v5905_v46 }
 0x52e   :  { %2963 = vperm.xlu1 %4451, %v2626_v1   ;;  %v5909_v50 = vpop.xlane.xlu0 %2469  ;;  %v5911_v1 = vpop.permute.xlu1 %2897 }
 0x52f   :  { %6640 = vst [vmem:[#allocation18_spill] sm:$0xff] %v5911_v1 }
 0x532   :  { %v5913_v48 = vpop.xlane.xlu0 %2463  ;;  %v5917_v5 = vpop.permute.xlu1 %2891 }
 0x534   :  { %2577 = vadd.xlane.f32.xlu0 %v2576_v25  ;;  %v2053_v25 = vmax.f32 %v1887_v52, 0.0  ;;  %v2183_v52 = vmul.f32 %v5855_v43, %v2051_v11 }
 0x536   :  { %v5925_v46 = vpop.xlane.xlu1 %2472  ;;  %v2185_v56 = vmul.f32 %v5855_v43, %v2053_v25 }
 0x537   :  { %v2677_v20 = vadd.f32 %v5777_v23, %v5925_v46  ;;  %v2636_v46 = vadd.f32 %v5777_v23, %v5705_v4 }
 0x538   :  { %2571 = vadd.xlane.f32.xlu0 %v2570_v31  ;;  %v5921_v31 = vpop.permute.xlu0 %2900  ;;  %v2543_v6 = vsel %vm242_vm0, %v2185_v56, 0.0  ;;  %v2649_v56 = vadd.f32 %v5777_v23, %v5757_v54  ;;  %v2651_v54 = vadd.f32 %v5777_v23, %v5766_v27  ;;  %v5977_v27 = vpop.f32.mrb[126].mxu1 }
 0x539   :  { %6641 = vst [vmem:[#allocation19_spill] sm:$0xff] %v5921_v31  ;;  %v5979_v36 = vpop.f32.mrb[127].mxu1 }
 0x53a   :  { %v5934_v31 = vpop.xlane.xlu1 %2466 }
 0x53c   :  { %v5930_v40 = vpop.permute.xlu0 %2894 }
 0x53d   :  { %6642 = vst [vmem:[#allocation20_spill] sm:$0xff] %v5930_v40 }
 0x53e   :  { %v5943_v25 = vpop.permute.xlu1 %2909 }
 0x53f   :  { %6643 = vst [vmem:[#allocation21_spill] sm:$0xff] %v5943_v25 }
 0x540   :  { %v5938_v30 = vpop.xlane.xlu0 %2481 }
 0x542   :  { %v5949_v17 = vpop.permute.xlu1 %2903 }
 0x543   :  { %6644 = vst [vmem:[#allocation22_spill] sm:$0xff] %v5949_v17 }
 0x544   :  { %v5945_v11 = vpop.xlane.xlu0 %2475 }
 0x54e   :  { %3008 = vperm.xlu0 %4452, %v2641_v60   ;;  %v2537_v60 = vsel %vm242_vm0, %v2183_v52, 0.0  ;;  %v5955_v52 = vpop.xlane.xlu1 %2484 }
 0x552   :  { %2544 = vadd.xlane.f32.xlu1 %v2543_v6  ;;  %3002 = vperm.xlu0 %4452, %v2639_v61   ;;  %v5953_v61 = vpop.permute.xlu0 %2912  ;;  %v2632_v6 = vadd.f32 %v5777_v23, %v5677_v8 }
 0x553   :  { %6645 = vst [vmem:[#allocation23_spill] sm:$0xff] %v5953_v61 }
 0x556   :  { %2538 = vadd.xlane.f32.xlu1 %v2537_v60  ;;  %3020 = vperm.xlu0 %4452, %v2645_v58   ;;  %v5961_v58 = vpop.permute.xlu0 %2906  ;;  %v2479_v60 = vpop.xlane.xlu1 %2478 }
 0x557   :  { %6646 = vst [vmem:[#allocation24_spill] sm:$0xff] %v5961_v58 }
 0x55a   :  { %3014 = vperm.xlu0 %4452, %v2643_v21   ;;  %v5967_v21 = vpop.xlane.xlu0 %2493  ;;  %v5971_v8 = vpop.permute.xlu1 %2921 }
 0x55b   :  { %6647 = vst [vmem:[#allocation25_spill] sm:$0xff] %v5971_v8 }
 0x55e   :  { %3032 = vperm.xlu0 %4452, %v2649_v56   ;;  %v2655_v56 = vadd.f32 %v5777_v23, %v5784_v12  ;;  %v2665_v12 = vadd.f32 %v5777_v23, %v5834_v29 }
 0x562   :  { %3026 = vperm.xlu0 %4452, %v2647_v28   ;;  %v5975_v28 = vpop.xlane.xlu0 %2487 }
 0x566   :  { %3044 = vperm.xlu0 %4452, %v2653_v32   ;;  %v2661_v32 = vadd.f32 %v5777_v23, %v5795_v10  ;;  %v2663_v10 = vadd.f32 %v5777_v23, %v5844_v34  ;;  %v2667_v34 = vadd.f32 %v5777_v23, %v5881_v15  ;;  %v2671_v15 = vadd.f32 %v5777_v23, %v5907_v26 }
 0x567   :  { %2981 = vperm.xlu1 %4451, %v2632_v6   ;;  %v5983_v6 = vpop.permute.xlu1 %2915 }
 0x568   :  { %6648 = vst [vmem:[#allocation26_spill] sm:$0xff] %v5983_v6 }
 0x56a   :  { %3038 = vperm.xlu0 %4452, %v2651_v54   ;;  %v5985_v54 = vpop.permute.xlu0 %2924 }
 0x56b   :  { %2975 = vperm.xlu1 %4451, %v2630_v38   ;;  %6649 = vst [vmem:[#allocation27_spill] sm:$0xff] %v5985_v54  ;;  %v2497_v38 = vpop.xlane.xlu1 %2496 }
 0x56e   :  { %3056 = vperm.xlu0 %4452, %v2657_v16   ;;  %v5991_v16 = vpop.permute.xlu0 %2918 }
 0x56f   :  { %6650 = vst [vmem:[#allocation28_spill] sm:$0xff] %v5991_v16 }
 0x572   :  { %3050 = vperm.xlu0 %4452, %v2655_v56   ;;  %v2491_v56 = vpop.xlane.xlu1 %2490  ;;  %v5995_v8 = vpop.xlane.xlu0 %2505 }
 0x576   :  { %3068 = vperm.xlu0 %4452, %v2661_v32   ;;  %v1903_v32 = vadd.f32 %v5812_v49, %v5686_v39  ;;  %v6003_v54 = vpop.xlane.xlu0 %2499 }
 0x578   :  { %v2057_v29 = vmax.f32 %v1903_v32, 0.0 }
 0x57a   :  { %3062 = vperm.xlu0 %4452, %v2659_v0   ;;  %v6001_v0 = vpop.permute.xlu1 %2933  ;;  %v2189_v16 = vmul.f32 %v5855_v43, %v2057_v29 }
 0x57b   :  { %6651 = vst [vmem:[#allocation29_spill] sm:$0xff] %v6001_v0 }
 0x57e   :  { %3080 = vperm.xlu0 %4452, %v2665_v12   ;;  %v1895_v12 = vadd.f32 %v5812_v49, %v5688_v47  ;;  %v6010_v39 = vpop.permute.xlu1 %2927  ;;  %v2555_v47 = vsel %vm242_vm0, %v2189_v16, 0.0 }
 0x57f   :  { %6652 = vst [vmem:[#allocation30_spill] sm:$0xff] %v6010_v39 }
 0x580   :  { %v2055_v61 = vmax.f32 %v1895_v12, 0.0 }
 0x582   :  { %3074 = vperm.xlu0 %4452, %v2663_v10   ;;  %v6014_v10 = vpop.permute.xlu0 %2936  ;;  %v2187_v32 = vmul.f32 %v5855_v43, %v2055_v61  ;;  %v2675_v61 = vadd.f32 %v5777_v23, %v5934_v31  ;;  %v2685_v31 = vadd.f32 %v5777_v23, %v2497_v38 }
 0x583   :  { %6653 = vst [vmem:[#allocation31_spill] sm:$0xff] %v6014_v10 }
 0x584   :  { %v2549_v12 = vsel %vm242_vm0, %v2187_v32, 0.0  ;;  %v2679_v32 = vadd.f32 %v5777_v23, %v2479_v60 }
 0x586   :  { %3092 = vperm.xlu0 %4452, %v2669_v44   ;;  %v2509_v44 = vpop.xlane.xlu1 %2508  ;;  %v6020_v29 = vpop.permute.xlu0 %2930 }
 0x587   :  { %6654 = vst [vmem:[#allocation32_spill] sm:$0xff] %v6020_v29  ;;  %v2689_v4 = vadd.f32 %v5777_v23, %v2509_v44  ;;  %v3226_v29 = vlaneseq }
 0x58a   :  { %3086 = vperm.xlu0 %4452, %v2667_v34   ;;  %v2503_v34 = vpop.xlane.xlu1 %2502  ;;  %v6025_v10 = vpop.xlane.xlu0 %2517 }
 0x58e   :  { %3104 = vperm.xlu0 %4452, %v2673_v14   ;;  %v6029_v16 = vpop.permute.xlu1 %2945  ;;  %v6031_v26 = vpop.xlane.xlu0 %2511  ;;  %v2681_v14 = vadd.f32 %v5777_v23, %v5955_v52 }
 0x58f   :  { %2556 = vadd.xlane.f32.xlu1 %v2555_v47 }
 0x592   :  { %3098 = vperm.xlu0 %4452, %v2671_v15   ;;  %v6036_v47 = vpop.permute.xlu1 %2939  ;;  %v6040_v15 = vpop.permute.xlu0 %2948 }
 0x593   :  { %2550 = vadd.xlane.f32.xlu1 %v2549_v12 }
 0x596   :  { %3116 = vperm.xlu0 %4452, %v2677_v20   ;;  %v2521_v12 = vpop.xlane.xlu1 %2520  ;;  %v2634_v20 = vadd.f32 %v5777_v23, %v5708_v51  ;;  %v2943_v52 = vpop.permute.xlu0 %2942 }
 0x59a   :  { %3110 = vperm.xlu0 %4452, %v2675_v61   ;;  %v2683_v61 = vadd.f32 %v5777_v23, %v2491_v56  ;;  %v2515_v60 = vpop.xlane.xlu1 %2514 }
 0x59b   :  { %v2691_v56 = vadd.f32 %v5777_v23, %v2515_v60  ;;  %v1911_v60 = vadd.f32 %v5812_v49, %v5734_v22 }
 0x59e   :  { %3128 = vperm.xlu0 %4452, %v2681_v14   ;;  %v2530_v14 = vpop.xlane.xlu0 %2529  ;;  %v6048_v0 = vpop.permute.xlu1 %2957 }
 0x59f   :  { %v2696_v44 = vadd.f32 %v5777_v23, %v2530_v14 }
 0x5a2   :  { %3122 = vperm.xlu0 %4452, %v2679_v32   ;;  %v2687_v32 = vadd.f32 %v5777_v23, %v2503_v34  ;;  %v2524_v38 = vpop.xlane.xlu0 %2523  ;;  %v2952_v51 = vpop.permute.xlu1 %2951  ;;  %v1919_v34 = vadd.f32 %v5812_v49, %v5732_v18  ;;  %v6068_v18 = vand.u32 127, %v3226_v29 }
 0x5a4   :  { %2993 = vperm.xlu1 %4451, %v2636_v46   ;;  %v2693_v46 = vadd.f32 %v5777_v23, %v2521_v12  ;;  %v3232_v6 = vadd.s32 4294967288, %v6068_v18 }
 0x5a6   :  { %3140 = vperm.xlu0 %4452, %v2685_v31   ;;  %v6051_v31 = vpop.permute.xlu0 %2960 }
 0x5a8   :  { %2987 = vperm.xlu1 %4451, %v2634_v20   ;;  %v6054_v20 = vpop.xlane.xlu1 %2532 }
 0x5aa   :  { %3134 = vperm.xlu0 %4452, %v2683_v61   ;;  %v2955_v61 = vpop.permute.xlu0 %2954 }
 0x5ae   :  { %3152 = vperm.xlu0 %4452, %v2689_v4   ;;  %v2694_v4 = vadd.f32 %v5777_v23, %v2524_v38  ;;  %v6060_v12 = vpop.xlane.xlu0 %2541  ;;  %v6070_v38 = vshrl.u32 %v3226_v29, 7 }
 0x5b0   :  { %v6077_v22 = vsub.s32 %v6068_v18, %v6070_v38 }
 0x5b2   :  { %3146 = vperm.xlu0 %4452, %v2687_v32   ;;  %v2527_v32 = vpop.xlane.xlu1 %2526  ;;  %v6066_v39 = vpop.xlane.xlu0 %2535  ;;  %v3419_v29 = vrot.slane %v6036_v47, %v6077_v22 }
 0x5b3   :  { %6655 = vst [vmem:[#allocation33_spill] sm:$0xff] %v6066_v39  ;;  %v3281_v39 = vadd.s32 4294967232, %v6068_v18 }
 0x5b6   :  { %3164 = vperm.xlu0 %4452, %v2693_v46   ;;  %v2061_v46 = vmax.f32 %v1919_v34, 0.0 }
 0x5b8   :  { %v2193_v14 = vmul.f32 %v5855_v43, %v2061_v46  ;;  %v6080_v46 = vpop.permute.xlu0 %2972 }
 0x5ba   :  { %3158 = vperm.xlu0 %4452, %v2691_v56   ;;  %v2695_v56 = vadd.f32 %v5777_v23, %v2527_v32  ;;  %v3239_v32 = vadd.s32 4294967280, %v6068_v18 }
 0x5bc   :  { %v6092_v25 = vsub.s32 %v3239_v32, %v6070_v38  ;;  %v2967_v17 = vpop.permute.xlu0 %2966 }
 0x5be   :  { %3173 = vperm.xlu0 %4452, %v2696_v44   ;;  %v2059_v44 = vmax.f32 %v1911_v60, 0.0  ;;  %v6083_v60 = vsub.s32 %v3232_v6, %v6070_v38  ;;  %v3428_v47 = vrot.slane %v6029_v16, %v6092_v25 }
 0x5c0   :  { %v2191_v34 = vmul.f32 %v5855_v43, %v2059_v44  ;;  %v3253_v44 = vadd.s32 4294967264, %v6068_v18 }
 0x5c2   :  { %3167 = vperm.xlu0 %4452, %v2694_v4   ;;  %v2567_v4 = vsel %vm242_vm0, %v2193_v14, 0.0  ;;  %v3246_v14 = vadd.s32 4294967272, %v6068_v18  ;;  %v6096_v6 = vsub.s32 %v3253_v44, %v6070_v38  ;;  %v3267_v44 = vadd.s32 4294967248, %v6068_v18 }
 0x5c4   :  { %v3438_v1 = vrot.slane %v2952_v51, %v6096_v6  ;;  %v3274_v51 = vadd.s32 4294967240, %v6068_v18  ;;  %v6120_v2 = vsub.s32 %v3267_v44, %v6070_v38 }
 0x5c6   :  { %3170 = vperm.xlu0 %4452, %v2695_v56   ;;  %v2561_v56 = vsel %vm242_vm0, %v2191_v34, 0.0  ;;  %v6101_v34 = vsub.s32 %v3246_v14, %v6070_v38 }
 0x5cc   :  { %2568 = vadd.xlane.f32.xlu1 %v2567_v4  ;;  %v3423_v4 = vrot.slane %v2943_v52, %v6083_v60  ;;  %v2970_v52 = vpop.permute.xlu1 %2969 }
 0x5ce   :  { %v3424_v58 = vsel %vm3237_vm2, %v3423_v4, %v3419_v29  ;;  %v3433_v29 = vrot.slane %v6040_v15, %v6101_v34  ;;  %v6109_v4 = vpop.xlane.xlu0 %2553 }
 0x5cf   :  { %v3429_v32 = vsel %vm3244_vm3, %v3428_v47, %v3424_v58  ;;  %6656 = vst [vmem:[#allocation34_spill] sm:$0xff] %v6109_v4 }
 0x5d0   :  { %2562 = vadd.xlane.f32.xlu1 %v2561_v56  ;;  %v3260_v56 = vadd.s32 4294967256, %v6068_v18  ;;  %v3434_v14 = vsel %vm3251_vm4, %v3433_v29, %v3429_v32  ;;  %v2964_v15 = vpop.permute.xlu1 %2963  ;;  %v3448_v32 = vrot.slane %v6048_v0, %v6120_v2  ;;  %v6134_v29 = vsub.s32 %v3274_v51, %v6070_v38 }
 0x5d1   :  { %v3439_v58 = vsel %vm3258_vm5, %v3438_v1, %v3434_v14  ;;  %v2640_v1 = vadd.f32 %v5777_v23, %v5717_v7  ;;  %v3295_v0 = vadd.s32 4294967216, %v6068_v18  ;;  %v2638_v7 = vadd.f32 %v5777_v23, %v5725_v37 }
 0x5d2   :  { %v6112_v16 = vsub.s32 %v3260_v56, %v6070_v38  ;;  %v6124_v56 = vsub.s32 %v3281_v39, %v6070_v38  ;;  %v6126_v40 = vpop.xlane.xlu0 %2547  ;;  %v3309_v37 = vadd.s32 4294967200, %v6068_v18 }
 0x5d4   :  { %v3443_v47 = vrot.slane %v2955_v61, %v6112_v16  ;;  %6657 = vst [vmem:[#allocation35_spill] sm:$0xff] %v6124_v56  ;;  %v3288_v61 = vadd.s32 4294967224, %v6068_v18  ;;  %v3458_v39 = vrot.slane %v2964_v15, %v6124_v56 }
 0x5d6   :  { %v3444_v4 = vsel %vm3265_vm6, %v3443_v47, %v3439_v58  ;;  %v3453_v47 = vrot.slane %v6051_v31, %v6134_v29  ;;  %v6145_v51 = vsub.s32 %v3288_v61, %v6070_v38  ;;  %v3316_v61 = vadd.s32 4294967192, %v6068_v18 }
 0x5d7   :  { %v3449_v14 = vsel %vm3272_vm7, %v3448_v32, %v3444_v4  ;;  %v2985_v32 = vpop.permute.xlu0 %2984 }
 0x5d8   :  { %6658 = vst [vmem:[#allocation36_spill] sm:$0xff] %v6145_v51  ;;  %v3454_v4 = vsel %vm3279_vm8, %v3453_v47, %v3449_v14  ;;  %v3463_v56 = vrot.slane %v2967_v17, %v6145_v51  ;;  %v3330_v17 = vadd.s32 4294967176, %v6068_v18  ;;  %v6169_v51 = vsub.s32 %v3316_v61, %v6070_v38 }
 0x5df   :  { %v2545_v44 = vpop.xlane.xlu1 %2544 }
 0x5e0   :  { %v2701_v58 = vadd.f32 %v5777_v23, %v2545_v44  ;;  %v3459_v44 = vsel %vm3286_vm9, %v3458_v39, %v3454_v4  ;;  %v3323_v39 = vadd.s32 4294967184, %v6068_v18 }
 0x5e1   :  { %3005 = vperm.xlu1 %4451, %v2640_v1   ;;  %v3302_v1 = vadd.s32 4294967208, %v6068_v18  ;;  %v3464_v14 = vsel %vm3293_vm10, %v3463_v56, %v3459_v44 }
 0x5e2   :  { %3188 = vperm.xlu0 %4452, %v2701_v58   ;;  %v6153_v58 = vsub.s32 %v3295_v0, %v6070_v38  ;;  %v6165_v0 = vsub.s32 %v3309_v37, %v6070_v38 }
 0x5e3   :  { %v2539_v15 = vpop.xlane.xlu1 %2538 }
 0x5e4   :  { %v2699_v31 = vadd.f32 %v5777_v23, %v2539_v15  ;;  %v3468_v4 = vrot.slane %v2970_v52, %v6153_v58  ;;  %v6161_v15 = vsub.s32 %v3302_v1, %v6070_v38  ;;  %v6174_v52 = vsub.s32 %v3323_v39, %v6070_v38 }
 0x5e5   :  { %2999 = vperm.xlu1 %4451, %v2638_v7   ;;  %v2979_v7 = vpop.permute.xlu0 %2978  ;;  %v6178_v1 = vsub.s32 %v3330_v17, %v6070_v38  ;;  %v1935_v17 = vadd.f32 %v5812_v49, %v5977_v27  ;;  %v2644_v27 = vadd.f32 %v5777_v23, %v5755_v55  ;;  %v2646_v55 = vadd.f32 %v5777_v23, %v5788_v19 }
 0x5e6   :  { %3182 = vperm.xlu0 %4452, %v2699_v31   ;;  %v3469_v31 = vsel %vm6623_vm11, %v3468_v4, %v3464_v14  ;;  %v3473_v56 = vrot.slane %v6080_v46, %v6161_v15  ;;  %v3483_v37 = vrot.slane %v2979_v7, %v6169_v51  ;;  %v2650_v19 = vadd.f32 %v5777_v23, %v5797_v3 }
 0x5e7   :  { %v2982_v47 = vpop.permute.xlu1 %2981  ;;  %v3493_v39 = vrot.slane %v2985_v32, %v6178_v1  ;;  %v2065_v7 = vmax.f32 %v1935_v17, 0.0  ;;  %v2664_v3 = vadd.f32 %v5777_v23, %v5838_v42  ;;  %v2672_v42 = vadd.f32 %v5777_v23, %v5885_v24 }
 0x5e8   :  { %v3474_v14 = vsel %vm6622_vm12, %v3473_v56, %v3469_v31  ;;  %v3488_v61 = vrot.slane %v2982_v47, %v6174_v52  ;;  %v1927_v47 = vadd.f32 %v5812_v49, %v5979_v36  ;;  %v2674_v24 = vadd.f32 %v5777_v23, %v5913_v48 }
 0x5e9   :  { %v2197_v31 = vmul.f32 %v5855_v43, %v2065_v7  ;;  %v2678_v48 = vadd.f32 %v5777_v23, %v5945_v11  ;;  %v2682_v11 = vadd.f32 %v5777_v23, %v5975_v28  ;;  %v2690_v28 = vadd.f32 %v5777_v23, %v6031_v26 }
 0x5ea   :  { %v2063_v56 = vmax.f32 %v1927_v47, 0.0 }
 0x5eb   :  { %v2976_v44 = vpop.permute.xlu1 %2975 }
 0x5ec   :  { %v3478_v18 = vrot.slane %v2976_v44, %v6165_v0  ;;  %v2195_v32 = vmul.f32 %v5855_v43, %v2063_v56  ;;  %v2642_v43 = vadd.f32 %v5777_v23, %v5760_v57 }
 0x5ee   :  { %v3479_v46 = vsel %vm3314_vm13, %v3478_v18, %v3474_v14  ;;  %v2579_v18 = vsel %vm242_vm0, %v2197_v31, 0.0  ;;  %v6198_v14 = vpop.xlane.xlu0 %2565 }
 0x5ef   :  { %v3484_v4 = vsel %vm3321_vm14, %v3483_v37, %v3479_v46  ;;  %v2573_v37 = vsel %vm242_vm0, %v2195_v32, 0.0  ;;  %vm3890_vm0 = vcmask 1041409  }
 0x5f0   :  { %v3489_v44 = vsel %vm3328_vm15, %v3488_v61, %v3484_v4 }
 0x5f1   :  { %v6188_v38 = vsel %vm3335_vm1, %v3493_v39, %v3489_v44  ;;  %v2648_v44 = vadd.f32 %v5777_v23, %v5780_v63  ;;  %v2652_v63 = vadd.f32 %v5777_v23, %v5793_v41  ;;  %v2660_v41 = vadd.f32 %v5777_v23, %v5825_v13 }
 0x5f2   :  { %v6200_v61 = vpop.xlane.xlu0 %2559  ;;  %v2668_v13 = vadd.f32 %v5777_v23, %v5860_v35  ;;  %v2676_v35 = vadd.f32 %v5777_v23, %v5909_v50 }
 0x5f6   :  { %v2997_v36 = vpop.permute.xlu0 %2996 }
 0x5f7   :  { %v3512_v32 = vrot.slane %v2997_v36, %v6101_v34 }
 0x5fa   :  { %v2991_v7 = vpop.permute.xlu0 %2990 }
 0x5fb   :  { %v3502_v31 = vrot.slane %v2991_v7, %v6083_v60 }
 0x5fe   :  { %v6231_v36 = vpop.xlane.xlu0 %2577 }
 0x609   :  { %2580 = vadd.xlane.f32.xlu1 %v2579_v18 }
 0x60d   :  { %2574 = vadd.xlane.f32.xlu1 %v2573_v37 }
 0x61c   :  { %v2557_v46 = vpop.xlane.xlu1 %2556 }
 0x61d   :  { %v2705_v49 = vadd.f32 %v5777_v23, %v2557_v46  ;;  %v2656_v46 = vadd.f32 %v5777_v23, %v5807_v62  ;;  %v6235_v62 = vpop.xlane.xlu0 %2571 }
 0x61e   :  { %3017 = vperm.xlu1 %4451, %v2644_v27  }
 0x61f   :  { %3200 = vperm.xlu0 %4452, %v2705_v49   ;;  %v2654_v49 = vadd.f32 %v5777_v23, %v5821_v59  ;;  %v2662_v59 = vadd.f32 %v5777_v23, %v5846_v53 }
 0x620   :  { %v2551_v39 = vpop.xlane.xlu1 %2550 }
 0x621   :  { %v2703_v4 = vadd.f32 %v5777_v23, %v2551_v39  ;;  %v3009_v39 = vpop.permute.xlu0 %3008 }
 0x622   :  { %3011 = vperm.xlu1 %4451, %v2642_v43   ;;  %v2658_v43 = vadd.f32 %v5777_v23, %v5830_v33  ;;  %v2666_v33 = vadd.f32 %v5777_v23, %v5868_v9 }
 0x623   :  { %3194 = vperm.xlu0 %4452, %v2703_v4  }
 0x624   :  { %v2994_v17 = vpop.permute.xlu1 %2993 }
 0x625   :  { %v3507_v56 = vrot.slane %v2994_v17, %v6092_v25  ;;  %v3003_v4 = vpop.permute.xlu0 %3002 }
 0x626   :  { %3029 = vperm.xlu1 %4451, %v2648_v44   ;;  %v2670_v44 = vadd.f32 %v5777_v23, %v5894_v45  ;;  %v2697_v45 = vadd.f32 %v5777_v23, %v6054_v20 }
 0x628   :  { %v2988_v47 = vpop.permute.xlu1 %2987 }
 0x629   :  { %v3498_v57 = vrot.slane %v2988_v47, %v6077_v22  ;;  %v6247_v17 = vpop.permute.xlu0 %3020 }
 0x62a   :  { %3023 = vperm.xlu1 %4451, %v2646_v55  }
 0x62b   :  { %v3503_v18 = vsel %vm3237_vm2, %v3502_v31, %v3498_v57  ;;  %v2680_v31 = vadd.f32 %v5777_v23, %v5938_v30 }
 0x62c   :  { %v3508_v37 = vsel %vm3244_vm3, %v3507_v56, %v3503_v18 }
 0x62d   :  { %v3513_v27 = vsel %vm3251_vm4, %v3512_v32, %v3508_v37  ;;  %v6254_v55 = vpop.permute.xlu0 %3014  ;;  %v3522_v32 = vrot.slane %v3003_v4, %v6112_v16 }
 0x62e   :  { %3041 = vperm.xlu1 %4451, %v2652_v63   ;;  %v3532_v63 = vrot.slane %v3009_v39, %v6134_v29  ;;  %v2700_v39 = vadd.f32 %v5777_v23, %v6060_v12 }
 0x631   :  { %v6262_v50 = vpop.permute.xlu0 %3032 }
 0x632   :  { %3035 = vperm.xlu1 %4451, %v2650_v19  }
 0x635   :  { %v6273_v19 = vpop.permute.xlu0 %3026 }
 0x636   :  { %3053 = vperm.xlu1 %4451, %v2656_v46  }
 0x63a   :  { %3047 = vperm.xlu1 %4451, %v2654_v49   ;;  %v2684_v49 = vadd.f32 %v5777_v23, %v5967_v21  ;;  %v2692_v21 = vadd.f32 %v5777_v23, %v6025_v10  ;;  %v6660_v10 = vld [vmem:[#allocation4_spill] sm:$0xff] }
 0x63b   :  { %v3236_v4 = vrot.slane %v6660_v10, %v6083_v60 }
 0x63e   :  { %3065 = vperm.xlu1 %4451, %v2660_v41   ;;  %v2688_v41 = vadd.f32 %v5777_v23, %v5995_v8  ;;  %v3340_v8 = vrot.slane %v5917_v5, %v6077_v22  ;;  %v6663_v5 = vld [vmem:[#allocation7_spill] sm:$0xff] }
 0x63f   :  { %v3231_v12 = vrot.slane %v6663_v5, %v6077_v22  ;;  %v6673_v5 = vld [vmem:[#allocation5_spill] sm:$0xff] }
 0x642   :  { %3059 = vperm.xlu1 %4451, %v2658_v43  }
 0x646   :  { %3077 = vperm.xlu1 %4451, %v2664_v3   ;;  %v2686_v3 = vadd.f32 %v5777_v23, %v6003_v54  ;;  %v6659_v54 = vld [vmem:[#allocation20_spill] sm:$0xff] }
 0x64a   :  { %3071 = vperm.xlu1 %4451, %v2662_v59  }
 0x64e   :  { %3089 = vperm.xlu1 %4451, %v2668_v13  }
 0x652   :  { %3083 = vperm.xlu1 %4451, %v2666_v33   ;;  %v3344_v33 = vrot.slane %v6659_v54, %v6083_v60 }
 0x656   :  { %3101 = vperm.xlu1 %4451, %v2672_v42   ;;  %v3345_v42 = vsel %vm3237_vm2, %v3344_v33, %v3340_v8  ;;  %v2702_v33 = vadd.f32 %v5777_v23, %v6126_v40 }
 0x659   :  { %v6249_v53 = vpop.xlane.xlu1 %2568 }
 0x65a   :  { %3095 = vperm.xlu1 %4451, %v2670_v44   ;;  %v6661_v44 = vld [vmem:[#allocation33_spill] sm:$0xff] }
 0x65b   :  { %v2698_v26 = vadd.f32 %v5777_v23, %v6661_v44  ;;  %v6672_v44 = vld [vmem:[#allocation21_spill] sm:$0xff] }
 0x65d   :  { %v2563_v7 = vpop.xlane.xlu1 %2562 }
 0x65e   :  { %v2707_v9 = vadd.f32 %v5777_v23, %v2563_v7  ;;  %3113 = vperm.xlu1 %4451, %v2676_v35   ;;  %v6662_v35 = vld [vmem:[#allocation18_spill] sm:$0xff] }
 0x65f   :  { %v3349_v7 = vrot.slane %v6662_v35, %v6092_v25 }
 0x660   :  { %3206 = vperm.xlu0 %4452, %v2707_v9  }
 0x661   :  { %v3006_v47 = vpop.permute.xlu1 %3005 }
 0x662   :  { %3107 = vperm.xlu1 %4451, %v2674_v24   ;;  %v3527_v18 = vrot.slane %v3006_v47, %v6120_v2  ;;  %v3350_v24 = vsel %vm3244_vm3, %v3349_v7, %v3345_v42  ;;  %v6664_v47 = vld [vmem:[#allocation22_spill] sm:$0xff]  ;;  %v2708_v7 = vadd.f32 %v5777_v23, %v6198_v14 }
 0x664   :  { %3176 = vperm.xlu0 %4452, %v2697_v45   ;;  %v3359_v45 = vrot.slane %v6664_v47, %v6096_v6  ;;  %v6675_v47 = vld [vmem:[#allocation26_spill] sm:$0xff] }
 0x665   :  { %v3000_v57 = vpop.permute.xlu1 %2999 }
 0x666   :  { %v3517_v56 = vrot.slane %v3000_v57, %v6096_v6  ;;  %3125 = vperm.xlu1 %4451, %v2680_v31   ;;  %v3238_v31 = vsel %vm3237_vm2, %v3236_v4, %v3231_v12  ;;  %v6665_v57 = vld [vmem:[#allocation19_spill] sm:$0xff]  ;;  %v3271_v12 = vrot.slane %v6673_v5, %v6120_v2  ;;  %v6683_v5 = vld [vmem:[#allocation10_spill] sm:$0xff] }
 0x668   :  { %v3518_v20 = vsel %vm3258_vm5, %v3517_v56, %v3513_v27  ;;  %v6282_v27 = vpop.permute.xlu0 %3044  ;;  %v3354_v56 = vrot.slane %v6665_v57, %v6101_v34  ;;  %v6676_v57 = vld [vmem:[#allocation23_spill] sm:$0xff] }
 0x669   :  { %v3523_v30 = vsel %vm3265_vm6, %v3522_v32, %v3518_v20  ;;  %v6666_v32 = vld [vmem:[#allocation34_spill] sm:$0xff] }
 0x66a   :  { %3119 = vperm.xlu1 %4451, %v2678_v48   ;;  %v3528_v37 = vsel %vm3272_vm7, %v3527_v18, %v3523_v30  ;;  %v2704_v48 = vadd.f32 %v5777_v23, %v6666_v32  ;;  %v6667_v18 = vld [vmem:[#allocation2_spill] sm:$0xff] }
 0x66b   :  { %v6276_v46 = vsel %vm3279_vm8, %v3532_v63, %v3528_v37  ;;  %v3243_v20 = vrot.slane %v6667_v18, %v6092_v25  ;;  %v3355_v63 = vsel %vm3251_vm4, %v3354_v56, %v3350_v24  ;;  %v6668_v37 = vld [vmem:[#allocation6_spill] sm:$0xff]  ;;  %v6674_v24 = vld [vmem:[#allocation35_spill] sm:$0xff]  ;;  %v3374_v56 = vrot.slane %v6676_v57, %v6134_v29 }
 0x66c   :  { %v6286_v43 = vpop.permute.xlu0 %3038  ;;  %v6677_v18 = vld [vmem:[#allocation11_spill] sm:$0xff] }
 0x66d   :  { %v3245_v30 = vsel %vm3244_vm3, %v3243_v20, %v3238_v31  ;;  %v3285_v14 = vrot.slane %v6677_v18, %v6674_v24  ;;  %v6685_v57 = vld [vmem:[#allocation27_spill] sm:$0xff] }
 0x66e   :  { %3137 = vperm.xlu1 %4451, %v2684_v49   ;;  %v3257_v49 = vrot.slane %v6668_v37, %v6096_v6 }
 0x670   :  { %v6292_v59 = vpop.permute.xlu0 %3056 }
 0x672   :  { %3131 = vperm.xlu1 %4451, %v2682_v11   ;;  %v3360_v11 = vsel %vm3258_vm5, %v3359_v45, %v3355_v63  ;;  %v3379_v45 = vrot.slane %v6675_v47, %v6674_v24  ;;  %v6678_v63 = vld [vmem:[#allocation8_spill] sm:$0xff]  ;;  %v6684_v47 = vld [vmem:[#allocation30_spill] sm:$0xff] }
 0x674   :  { %v6296_v13 = vpop.permute.xlu0 %3050 }
 0x676   :  { %3149 = vperm.xlu1 %4451, %v2688_v41  }
 0x678   :  { %v6311_v9 = vpop.permute.xlu0 %3068 }
 0x67a   :  { %3143 = vperm.xlu1 %4451, %v2686_v3   ;;  %v6669_v3 = vld [vmem:[#allocation3_spill] sm:$0xff] }
 0x67c   :  { %v6330_v41 = vpop.permute.xlu0 %3062 }
 0x67e   :  { %3161 = vperm.xlu1 %4451, %v2692_v21   ;;  %v3250_v21 = vrot.slane %v6669_v3, %v6101_v34 }
 0x680   :  { %v3252_v10 = vsel %vm3251_vm4, %v3250_v21, %v3245_v30  ;;  %v6353_v31 = vpop.permute.xlu0 %3080  ;;  %v3278_v30 = vrot.slane %v6678_v63, %v6134_v29  ;;  %v6679_v21 = vld [vmem:[#allocation36_spill] sm:$0xff] }
 0x681   :  { %v3259_v42 = vsel %vm3258_vm5, %v3257_v49, %v3252_v10  ;;  %v2706_v49 = vadd.f32 %v5777_v23, %v6200_v61  ;;  %v6681_v10 = vld [vmem:[#allocation13_spill] sm:$0xff]  ;;  %v2709_v61 = vadd.f32 %v5777_v23, %v6249_v53 }
 0x682   :  { %3155 = vperm.xlu1 %4451, %v2690_v28   ;;  %v6670_v28 = vld [vmem:[#allocation9_spill] sm:$0xff] }
 0x683   :  { %v3264_v8 = vrot.slane %v6670_v28, %v6112_v16  ;;  %v6680_v28 = vld [vmem:[#allocation28_spill] sm:$0xff] }
 0x685   :  { %v3266_v35 = vsel %vm3265_vm6, %v3264_v8, %v3259_v42  ;;  %v3384_v8 = vrot.slane %v6680_v28, %v6679_v21 }
 0x686   :  { %3185 = vperm.xlu1 %4451, %v2700_v39   ;;  %v6671_v39 = vld [vmem:[#allocation24_spill] sm:$0xff] }
 0x687   :  { %v3364_v54 = vrot.slane %v6671_v39, %v6112_v16 }
 0x689   :  { %v3365_v4 = vsel %vm3265_vm6, %v3364_v54, %v3360_v11 }
 0x68a   :  { %3179 = vperm.xlu1 %4451, %v2698_v26   ;;  %v3369_v26 = vrot.slane %v6672_v44, %v6120_v2  ;;  %v6682_v44 = vld [vmem:[#allocation25_spill] sm:$0xff] }
 0x68c   :  { %v3370_v40 = vsel %vm3272_vm7, %v3369_v26, %v3365_v4  ;;  %v3292_v4 = vrot.slane %v6681_v10, %v6679_v21  ;;  %v3389_v26 = vrot.slane %v6682_v44, %v6153_v58 }
 0x68d   :  { %v3375_v37 = vsel %vm3279_vm8, %v3374_v56, %v3370_v40  ;;  %v3394_v56 = vrot.slane %v6685_v57, %v6161_v15  ;;  %v6691_v57 = vld [vmem:[#allocation14_spill] sm:$0xff] }
 0x68e   :  { %3197 = vperm.xlu1 %4451, %v2704_v48   ;;  %v3273_v48 = vsel %vm3272_vm7, %v3271_v12, %v3266_v35  ;;  %v3380_v11 = vsel %vm3286_vm9, %v3379_v45, %v3375_v37  ;;  %v3299_v12 = vrot.slane %v6683_v5, %v6153_v58  ;;  %v3399_v45 = vrot.slane %v6684_v47, %v6165_v0 }
 0x68f   :  { %v3280_v3 = vsel %vm3279_vm8, %v3278_v30, %v3273_v48  ;;  %v3385_v42 = vsel %vm3293_vm10, %v3384_v8, %v3380_v11  ;;  %v6686_v48 = vld [vmem:[#allocation15_spill] sm:$0xff]  ;;  %v3542_v8 = vrot.slane %v6254_v55, %v6679_v21  ;;  %v6690_v55 = vld [vmem:[#allocation29_spill] sm:$0xff] }
 0x690   :  { %v3287_v54 = vsel %vm3286_vm9, %v3285_v14, %v3280_v3  ;;  %v3390_v40 = vsel %vm6623_vm11, %v3389_v26, %v3385_v42  ;;  %v3313_v18 = vrot.slane %v6686_v48, %v6165_v0  ;;  %v6688_v3 = vld [vmem:[#allocation32_spill] sm:$0xff] }
 0x691   :  { %v3294_v35 = vsel %vm3293_vm10, %v3292_v4, %v3287_v54  ;;  %v3395_v30 = vsel %vm6622_vm12, %v3394_v56, %v3390_v40  ;;  %v3404_v28 = vrot.slane %v6688_v3, %v6169_v51  ;;  %v3572_v3 = vrot.slane %v6262_v50, %v6178_v1 }
 0x692   :  { %3191 = vperm.xlu1 %4451, %v2702_v33   ;;  %v6371_v33 = vpop.permute.xlu0 %3074 }
 0x696   :  { %v2581_v32 = vpop.xlane.xlu1 %2580  ;;  %3209 = vperm.xlu1 %4451, %v2708_v7   ;;  %v6395_v14 = vpop.permute.xlu0 %3092 }
 0x697   :  { %v2713_v20 = vadd.f32 %v5777_v23, %v2581_v32  ;;  %v4466_v23 = vld [vmem:[%s6616_s3 + $0x3] ss:$0 sm:$0xff]  ;;  %v3301_v32 = vsel %vm6623_vm11, %v3299_v12, %v3294_v35  ;;  %v3552_v35 = vrot.slane %v6247_v17, %v6161_v15  ;;  %v3327_v17 = vrot.slane %v6691_v57, %v6174_v52 }
 0x698   :  { %v2710_v53 = vadd.f32 %v4466_v23, %v6235_v62  ;;  %v2712_v47 = vadd.f32 %v4466_v23, %v6231_v36 }
 0x699   :  { %3224 = vperm.xlu0 %4452, %v2713_v20   ;;  %v6687_v20 = vld [vmem:[#allocation12_spill] sm:$0xff] }
 0x69a   :  { %v2575_v39 = vpop.xlane.xlu1 %2574  ;;  %3203 = vperm.xlu1 %4451, %v2706_v49   ;;  %v3306_v63 = vrot.slane %v6687_v20, %v6161_v15  ;;  %v3400_v49 = vsel %vm3314_vm13, %v3399_v45, %v3395_v30  ;;  %v6419_v40 = vpop.permute.xlu0 %3086 }
 0x69b   :  { %v2711_v54 = vadd.f32 %v4466_v23, %v2575_v39  ;;  %v3405_v26 = vsel %vm3321_vm14, %v3404_v28, %v3400_v49  ;;  %v3409_v39 = vrot.slane %v6690_v55, %v6174_v52  ;;  %v3562_v23 = vrot.slane %v6273_v19, %v6169_v51 }
 0x69c   :  { %v3308_v62 = vsel %vm6622_vm12, %v3306_v63, %v3301_v32  ;;  %v6693_v63 = vld [vmem:[#allocation16_spill] sm:$0xff] }
 0x69d   :  { %v3315_v10 = vsel %vm3314_vm13, %v3313_v18, %v3308_v62  ;;  %v3410_v56 = vsel %vm3328_vm15, %v3409_v39, %v3405_v26  ;;  %v3334_v30 = vrot.slane %v6693_v63, %v6178_v1 }
 0x69e   :  { %v3018_v7 = vpop.permute.xlu1 %3017  ;;  %3212 = vperm.xlu1 %4451, %v2709_v61   ;;  %v6689_v61 = vld [vmem:[#allocation17_spill] sm:$0xff] }
 0x69f   :  { %v3547_v4 = vrot.slane %v3018_v7, %v6153_v58  ;;  %v3320_v44 = vrot.slane %v6689_v61, %v6169_v51 }
 0x6a2   :  { %v3012_v37 = vpop.permute.xlu1 %3011  ;;  %3215 = vperm.xlu1 %4451, %v2710_v53   ;;  %v6692_v53 = vld [vmem:[#allocation31_spill] sm:$0xff] }
 0x6a3   :  { %v3537_v11 = vrot.slane %v3012_v37, %v6674_v24  ;;  %v3414_v32 = vrot.slane %v6692_v53, %v6178_v1  ;;  %v6437_v37 = vpop.permute.xlu0 %3104 }
 0x6a5   :  { %v3538_v42 = vsel %vm3286_vm9, %v3537_v11, %v6276_v46  ;;  %v3322_v46 = vsel %vm3321_vm14, %v3320_v44, %v3315_v10  ;;  %v3415_v36 = vsel %vm3335_vm1, %v3414_v32, %v3410_v56  ;;  %v3581_v44 = vrot.slane %v6286_v43, %v6083_v60 }
 0x6a6   :  { %v3543_v5 = vsel %vm3293_vm10, %v3542_v8, %v3538_v42  ;;  %v3030_v12 = vpop.permute.xlu1 %3029  ;;  %3218 = vperm.xlu1 %4451, %v2711_v54   ;;  %v3329_v18 = vsel %vm3328_vm15, %v3327_v17, %v3322_v46 }
 0x6a7   :  { %v3548_v7 = vsel %vm6623_vm11, %v3547_v4, %v3543_v5  ;;  %v3567_v49 = vrot.slane %v3030_v12, %v6174_v52  ;;  %v3336_v62 = vsel %vm3335_vm1, %v3334_v30, %v3329_v18  ;;  %vm3894_vm11 = vcmask 1043459   ;;  %v6450_v26 = vpop.permute.xlu0 %3098 }
 0x6a8   :  { %v3553_v45 = vsel %vm6622_vm12, %v3552_v35, %v3548_v7  ;;  %vm3892_vm12 = vcmask 1042434   ;;  %v3891_v54 = vsel %vm3890_vm0, %v3415_v36, %v3336_v62  ;;  %v3591_v5 = vrot.slane %v6282_v27, %v6101_v34 }
 0x6a9   :  { %v3893_v19 = vsel %vm3892_vm12, %v6188_v38, %v3891_v54  ;;  %v3611_v27 = vrot.slane %v6292_v59, %v6134_v29  ;;  %v3631_v36 = vrot.slane %v6311_v9, %v6161_v15  ;;  %vm6695_vm12 = vcmask 786112  }
 0x6aa   :  { %v3024_v48 = vpop.permute.xlu1 %3023  ;;  %3221 = vperm.xlu1 %4451, %v2712_v47   ;;  %v3601_v47 = vrot.slane %v6296_v13, %v6112_v16  ;;  %v3621_v13 = vrot.slane %v6330_v41, %v6679_v21  ;;  %v3651_v9 = vrot.slane %v6353_v31, %v6178_v1  ;;  %vm3896_vm0 = vcmask 1044484  }
 0x6ab   :  { %v3557_v20 = vrot.slane %v3024_v48, %v6165_v0  ;;  %v6459_v7 = vpop.permute.xlu0 %3116  ;;  %v3670_v31 = vrot.slane %v6395_v14, %v6101_v34 }
 0x6ad   :  { %v3558_v11 = vsel %vm3314_vm13, %v3557_v20, %v3553_v45 }
 0x6ae   :  { %v3563_v28 = vsel %vm3321_vm14, %v3562_v23, %v3558_v11  ;;  %v3042_v8 = vpop.permute.xlu1 %3041 }
 0x6af   :  { %v3568_v10 = vsel %vm3328_vm15, %v3567_v49, %v3563_v28  ;;  %v3586_v35 = vrot.slane %v3042_v8, %v6092_v25  ;;  %v3111_v53 = vpop.permute.xlu0 %3110  ;;  %v3641_v8 = vrot.slane %v6371_v33, %v6169_v51  ;;  %v3660_v33 = vrot.slane %v6419_v40, %v6083_v60 }
 0x6b0   :  { %v3573_v4 = vsel %vm3335_vm1, %v3572_v3, %v3568_v10  ;;  %v3680_v40 = vrot.slane %v6450_v26, %v6112_v16 }
 0x6b1   :  { %v3895_v42 = vsel %vm3894_vm11, %v3573_v4, %v3893_v19  ;;  %vm6694_vm11 = vcmask 720512  }
 0x6b2   :  { %v3036_v61 = vpop.permute.xlu1 %3035 }
 0x6b3   :  { %v3577_v50 = vrot.slane %v3036_v61, %v6077_v22  ;;  %v6474_v63 = vpop.permute.xlu0 %3128 }
 0x6b5   :  { %v3582_v12 = vsel %vm3237_vm2, %v3581_v44, %v3577_v50 }
 0x6b6   :  { %v3587_v38 = vsel %vm3244_vm3, %v3586_v35, %v3582_v12  ;;  %v3054_v55 = vpop.permute.xlu1 %3053 }
 0x6b7   :  { %v3592_v39 = vsel %vm3251_vm4, %v3591_v5, %v3587_v38  ;;  %v3606_v45 = vrot.slane %v3054_v55, %v6120_v2  ;;  %v3123_v28 = vpop.permute.xlu0 %3122 }
 0x6ba   :  { %v3048_v46 = vpop.permute.xlu1 %3047 }
 0x6bb   :  { %v3596_v43 = vrot.slane %v3048_v46, %v6096_v6  ;;  %v6493_v50 = vpop.permute.xlu0 %3140 }
 0x6bd   :  { %v3597_v57 = vsel %vm3258_vm5, %v3596_v43, %v3592_v39 }
 0x6be   :  { %v3602_v17 = vsel %vm3265_vm6, %v3601_v47, %v3597_v57  ;;  %v3066_v56 = vpop.permute.xlu1 %3065 }
 0x6bf   :  { %v3607_v32 = vsel %vm3272_vm7, %v3606_v45, %v3602_v17  ;;  %v3626_v30 = vrot.slane %v3066_v56, %v6153_v58  ;;  %v3135_v43 = vpop.permute.xlu0 %3134  ;;  %v3690_v17 = vrot.slane %v6437_v37, %v6134_v29  ;;  %v3710_v37 = vrot.slane %v6459_v7, %v6161_v15 }
 0x6c0   :  { %v3612_v48 = vsel %vm3279_vm8, %v3611_v27, %v3607_v32  ;;  %v3730_v7 = vrot.slane %v6474_v63, %v6178_v1 }
 0x6c2   :  { %v3060_v18 = vpop.permute.xlu1 %3059 }
 0x6c3   :  { %v3616_v20 = vrot.slane %v3060_v18, %v6674_v24  ;;  %v6507_v57 = vpop.permute.xlu0 %3152 }
 0x6c5   :  { %v3617_v59 = vsel %vm3286_vm9, %v3616_v20, %v3612_v48 }
 0x6c6   :  { %v3622_v23 = vsel %vm3293_vm10, %v3621_v13, %v3617_v59  ;;  %v3078_v49 = vpop.permute.xlu1 %3077 }
 0x6c7   :  { %v3627_v11 = vsel %vm6694_vm11, %v3626_v30, %v3622_v23  ;;  %v3646_v54 = vrot.slane %v3078_v49, %v6174_v52  ;;  %v3147_v13 = vpop.permute.xlu0 %3146  ;;  %v3700_v30 = vrot.slane %v3111_v53, %v6679_v21  ;;  %v3720_v53 = vrot.slane %v3123_v28, %v6169_v51 }
 0x6c8   :  { %v3632_v62 = vsel %vm6695_vm12, %v3631_v36, %v3627_v11 }
 0x6ca   :  { %v3072_v3 = vpop.permute.xlu1 %3071 }
 0x6cb   :  { %v3636_v41 = vrot.slane %v3072_v3, %v6165_v0  ;;  %v6525_v3 = vpop.permute.xlu0 %3164 }
 0x6cd   :  { %v3637_v10 = vsel %vm3314_vm13, %v3636_v41, %v3632_v62 }
 0x6ce   :  { %v3642_v19 = vsel %vm3321_vm14, %v3641_v8, %v3637_v10  ;;  %v3090_v4 = vpop.permute.xlu1 %3089 }
 0x6cf   :  { %v3647_v61 = vsel %vm3328_vm15, %v3646_v54, %v3642_v19  ;;  %v3665_v38 = vrot.slane %v3090_v4, %v6092_v25  ;;  %v3159_v4 = vpop.permute.xlu0 %3158 }
 0x6d0   :  { %v3652_v44 = vsel %vm3335_vm1, %v3651_v9, %v3647_v61 }
 0x6d1   :  { %v3897_v35 = vsel %vm3896_vm0, %v3652_v44, %v3895_v42  ;;  %vm3898_vm0 = vcmask 1045509  }
 0x6d2   :  { %v3084_v5 = vpop.permute.xlu1 %3083 }
 0x6d3   :  { %v3656_v12 = vrot.slane %v3084_v5, %v6077_v22  ;;  %v6538_v28 = vpop.permute.xlu0 %3173 }
 0x6d5   :  { %v3661_v55 = vsel %vm3237_vm2, %v3660_v33, %v3656_v12 }
 0x6d6   :  { %v3666_v39 = vsel %vm3244_vm3, %v3665_v38, %v3661_v55  ;;  %v3102_v46 = vpop.permute.xlu1 %3101 }
 0x6d7   :  { %v3671_v47 = vsel %vm3251_vm4, %v3670_v31, %v3666_v39  ;;  %v3685_v27 = vrot.slane %v3102_v46, %v6120_v2  ;;  %v3168_v31 = vpop.permute.xlu0 %3167 }
 0x6da   :  { %v3096_v42 = vpop.permute.xlu1 %3095 }
 0x6db   :  { %v3675_v45 = vrot.slane %v3096_v42, %v6096_v6  ;;  %v6540_v39 = vpop.permute.xlu0 %3170 }
 0x6dd   :  { %v3676_v14 = vsel %vm3258_vm5, %v3675_v45, %v3671_v47  ;;  %v3739_v47 = vrot.slane %v3135_v43, %v6083_v60 }
 0x6de   :  { %v3681_v56 = vsel %vm3265_vm6, %v3680_v40, %v3676_v14  ;;  %v3114_v32 = vpop.permute.xlu1 %3113 }
 0x6df   :  { %v3686_v48 = vsel %vm3272_vm7, %v3685_v27, %v3681_v56  ;;  %v3705_v59 = vrot.slane %v3114_v32, %v6153_v58  ;;  %v3189_v42 = vpop.permute.xlu0 %3188 }
 0x6e0   :  { %v3691_v18 = vsel %vm3279_vm8, %v3690_v17, %v3686_v48  ;;  %v3749_v17 = vrot.slane %v6493_v50, %v6101_v34 }
 0x6e2   :  { %v3108_v20 = vpop.permute.xlu1 %3107 }
 0x6e3   :  { %v3695_v26 = vrot.slane %v3108_v20, %v6674_v24  ;;  %v3183_v32 = vpop.permute.xlu0 %3182  ;;  %v3759_v20 = vrot.slane %v3147_v13, %v6112_v16 }
 0x6e5   :  { %v3696_v36 = vsel %vm3286_vm9, %v3695_v26, %v3691_v18  ;;  %v3818_v26 = vrot.slane %v3183_v32, %v6083_v60 }
 0x6e6   :  { %v3701_v23 = vsel %vm3293_vm10, %v3700_v30, %v3696_v36  ;;  %v3126_v49 = vpop.permute.xlu1 %3125 }
 0x6e7   :  { %v3706_v11 = vsel %vm6694_vm11, %v3705_v59, %v3701_v23  ;;  %v3725_v54 = vrot.slane %v3126_v49, %v6174_v52  ;;  %v3201_v59 = vpop.permute.xlu0 %3200 }
 0x6e8   :  { %v3711_v62 = vsel %vm6695_vm12, %v3710_v37, %v3706_v11 }
 0x6ea   :  { %v3120_v41 = vpop.permute.xlu1 %3119 }
 0x6eb   :  { %v3715_v8 = vrot.slane %v3120_v41, %v6165_v0  ;;  %v3828_v41 = vrot.slane %v3189_v42, %v6101_v34 }
 0x6ed   :  { %v3716_v10 = vsel %vm3314_vm13, %v3715_v8, %v3711_v62  ;;  %v3195_v8 = vpop.permute.xlu0 %3194 }
 0x6ee   :  { %v3721_v9 = vsel %vm3321_vm14, %v3720_v53, %v3716_v10  ;;  %v3138_v19 = vpop.permute.xlu1 %3137 }
 0x6ef   :  { %v3726_v61 = vsel %vm3328_vm15, %v3725_v54, %v3721_v9 }
 0x6f0   :  { %v3731_v44 = vsel %vm3335_vm1, %v3730_v7, %v3726_v61  ;;  %v3779_v7 = vrot.slane %v3159_v4, %v6679_v21 }
 0x6f1   :  { %v6536_v5 = vsel %vm3898_vm0, %v3731_v44, %v3897_v35  ;;  %v3744_v35 = vrot.slane %v3138_v19, %v6092_v25 }
 0x6f2   :  { %v3132_v33 = vpop.permute.xlu1 %3131 }
 0x6f3   :  { %v3735_v63 = vrot.slane %v3132_v33, %v6077_v22 }
 0x6f5   :  { %v3740_v45 = vsel %vm3237_vm2, %v3739_v47, %v3735_v63  ;;  %v3794_v47 = vrot.slane %v3168_v31, %v6165_v0  ;;  %v3804_v31 = vrot.slane %v6538_v28, %v6174_v52 }
 0x6f6   :  { %v3150_v12 = vpop.permute.xlu1 %3149  ;;  %v3745_v27 = vsel %vm3244_vm3, %v3744_v35, %v3740_v45 }
 0x6f7   :  { %v3750_v48 = vsel %vm3251_vm4, %v3749_v17, %v3745_v27  ;;  %v3764_v37 = vrot.slane %v3150_v12, %v6120_v2  ;;  %v3789_v12 = vrot.slane %v6525_v3, %v6161_v15 }
 0x6fa   :  { %v3144_v38 = vpop.permute.xlu1 %3143 }
 0x6fb   :  { %v3754_v14 = vrot.slane %v3144_v38, %v6096_v6 }
 0x6fd   :  { %v3755_v18 = vsel %vm3258_vm5, %v3754_v14, %v3750_v48 }
 0x6fe   :  { %v3162_v55 = vpop.permute.xlu1 %3161  ;;  %v3760_v36 = vsel %vm3265_vm6, %v3759_v20, %v3755_v18 }
 0x6ff   :  { %v3765_v49 = vsel %vm3272_vm7, %v3764_v37, %v3760_v36 }
 0x702   :  { %v3156_v46 = vpop.permute.xlu1 %3155 }
 0x703   :  { %v3774_v11 = vrot.slane %v3156_v46, %v6674_v24  ;;  %v3207_v46 = vpop.permute.xlu0 %3206 }
 0x704   :  { %v3858_v45 = vrot.slane %v3207_v46, %v6679_v21 }
 0x706   :  { %v3186_v40 = vpop.permute.xlu1 %3185 }
 0x707   :  { %v3823_v23 = vrot.slane %v3186_v40, %v6092_v25  ;;  %v3177_v40 = vpop.permute.xlu0 %3176 }
 0x708   :  { %v3809_v18 = vrot.slane %v3177_v40, %v6178_v1 }
 0x70a   :  { %v3180_v56 = vpop.permute.xlu1 %3179 }
 0x70b   :  { %v3814_v43 = vrot.slane %v3180_v56, %v6077_v22  ;;  %v3769_v22 = vrot.slane %v6507_v57, %v6134_v29  ;;  %v3838_v57 = vrot.slane %v3195_v8, %v6112_v16  ;;  %v3848_v16 = vrot.slane %v3201_v59, %v6134_v29 }
 0x70d   :  { %v3819_v50 = vsel %vm3237_vm2, %v3818_v26, %v3814_v43  ;;  %v3770_v53 = vsel %vm3279_vm8, %v3769_v22, %v3765_v49  ;;  %vm6696_vm2 = vmmov %vm6694_vm11 }
 0x70e   :  { %v3198_v30 = vpop.permute.xlu1 %3197  ;;  %v3824_v60 = vsel %vm3244_vm3, %v3823_v23, %v3819_v50  ;;  %v3775_v54 = vsel %vm3286_vm9, %v3774_v11, %v3770_v53  ;;  %vm6697_vm3 = vmmov %vm6695_vm12 }
 0x70f   :  { %v3829_v25 = vsel %vm3251_vm4, %v3828_v41, %v3824_v60  ;;  %v3780_v19 = vsel %vm3293_vm10, %v3779_v7, %v3775_v54  ;;  %v3843_v44 = vrot.slane %v3198_v30, %v6120_v2  ;;  %vm6698_vm4 = vmmov %vm6696_vm2 }
 0x712   :  { %v3192_v62 = vpop.permute.xlu1 %3191 }
 0x713   :  { %v3833_v13 = vrot.slane %v3192_v62, %v6096_v6  ;;  %v3784_v6 = vrot.slane %v3162_v55, %v6153_v58 }
 0x715   :  { %v3834_v9 = vsel %vm3258_vm5, %v3833_v13, %v3829_v25  ;;  %v3785_v33 = vsel %vm6696_vm2, %v3784_v6, %v3780_v19  ;;  %vm6699_vm5 = vmmov %vm6697_vm3 }
 0x716   :  { %v3210_v10 = vpop.permute.xlu1 %3209  ;;  %v3839_v34 = vsel %vm3265_vm6, %v3838_v57, %v3834_v9  ;;  %v3790_v55 = vsel %vm6697_vm3, %v3789_v12, %v3785_v33  ;;  %vm3900_vm6 = vcmask 1046534  }
 0x717   :  { %v3844_v4 = vsel %vm3272_vm7, %v3843_v44, %v3839_v34  ;;  %v3795_v3 = vsel %vm3314_vm13, %v3794_v47, %v3790_v55  ;;  %v3863_v14 = vrot.slane %v3210_v10, %v6153_v58  ;;  %vm3902_vm7 = vcmask 1047559  }
 0x718   :  { %v3849_v42 = vsel %vm3279_vm8, %v3848_v16, %v3844_v4  ;;  %v3225_v43 = vpop.permute.xlu0 %3224 }
 0x719   :  { %v3888_v30 = vrot.slane %v3225_v43, %v6178_v1 }
 0x71a   :  { %v3204_v61 = vpop.permute.xlu1 %3203 }
 0x71b   :  { %v3853_v38 = vrot.slane %v3204_v61, %v6674_v24  ;;  %v3799_v24 = vrot.slane %v6540_v39, %v6169_v51 }
 0x71d   :  { %v3854_v2 = vsel %vm3286_vm9, %v3853_v38, %v3849_v42  ;;  %v3800_v27 = vsel %vm3321_vm14, %v3799_v24, %v3795_v3 }
 0x71e   :  { %v3213_v63 = vpop.permute.xlu1 %3212  ;;  %v3859_v29 = vsel %vm3293_vm10, %v3858_v45, %v3854_v2  ;;  %v3805_v39 = vsel %vm3328_vm15, %v3804_v31, %v3800_v27 }
 0x71f   :  { %v3868_v17 = vrot.slane %v3213_v63, %v6161_v15  ;;  %v3864_v21 = vsel %vm6698_vm4, %v3863_v14, %v3859_v29  ;;  %v3810_v15 = vsel %vm3335_vm1, %v3809_v18, %v3805_v39 }
 0x720   :  { %v3901_v36 = vsel %vm3900_vm6, %v3810_v15, %v6536_v5 }
 0x721   :  { %v3869_v20 = vsel %vm6699_vm5, %v3868_v17, %v3864_v21 }
 0x722   :  { %v3216_v35 = vpop.permute.xlu1 %3215 }
 0x723   :  { %v3873_v32 = vrot.slane %v3216_v35, %v6165_v0 }
 0x725   :  { %v3874_v26 = vsel %vm3314_vm13, %v3873_v32, %v3869_v20 }
 0x726   :  { %v3219_v56 = vpop.permute.xlu1 %3218 }
 0x727   :  { %v3878_v48 = vrot.slane %v3219_v56, %v6169_v51 }
 0x729   :  { %v3879_v0 = vsel %vm3321_vm14, %v3878_v48, %v3874_v26 }
 0x72a   :  { %v3222_v58 = vpop.permute.xlu1 %3221 }
 0x72b   :  { %v3883_v28 = vrot.slane %v3222_v58, %v6174_v52 }
 0x72d   :  { %v3884_v51 = vsel %vm3328_vm15, %v3883_v28, %v3879_v0 }
 0x72e   :  { %v3889_v59 = vsel %vm3335_vm1, %v3888_v30, %v3884_v51 }
 0x72f   :  { %v3903_v37 = vsel %vm3902_vm7, %v3889_v59, %v3901_v36 }
 0x730   :  { %3905 = vst [vmem:[%s6617_s4] sm:$0xff] %v3903_v37 }

</bundles_post_ra>
